<compile_context>
chip_gen: v7x
topology: tpu7x:2x2x1
jax: 0.10.0
libtpu: 0.0.40
codegen_flags: <defaults>
</compile_context>

<pallas_src>
import numpy as np
import jax
import jax.numpy as jnp
from jax import lax
from jax.experimental import pallas as pl
from jax.experimental.pallas import tpu as pltpu

_VMEM_LIMIT = 32 * 1024 * 1024   # per-kernel cap; leaves headroom on v7x (64 MiB/TC)
_TILE_L = 1024                   # MLP row tile (multiple of _CHUNK, multiple of 16)
_CHUNK = 512                     # pooling: streamed feature rows per grid step
_SUB = 32                        # pooling: rows per inner max step (4 f32 vregs)
_TILE_M = 64                     # pooling: pillars per output block


def bev_spatial_shape(point_cloud_range, pillar_size):
    W = int(round((point_cloud_range[3] - point_cloud_range[0]) / pillar_size))
    H = int(round((point_cloud_range[4] - point_cloud_range[1]) / pillar_size))
    return W, H


def _round_up(x, m):
    return ((x + m - 1) // m) * m


# ----------------------------- Pallas kernels -----------------------------

def _mlp_layer_kernel(nvalid_ref, x_ref, w_ref, g_ref, b_ref, o_ref,
                      sum_ref, ssq_ref):
    """Fused Linear(bias=False) + BatchNorm1d(batch stats) + ReLU.

    grid = (2, num_row_tiles):
      phase 0: matmul each (TILE_L, Cin) tile and accumulate per-channel
               sum / sum-of-squares into VMEM scratch (padded rows are exact
               zeros -> no masking needed).
      phase 1: recompute the matmul, normalize with the global batch stats,
               gamma/beta, ReLU, mask only the boundary tile, store.
    """
    phase = pl.program_id(0)
    t = pl.program_id(1)
    tile_l = x_ref.shape[0]
    n_valid = nvalid_ref[0]
    row0 = t * tile_l

    # bf16 x bf16 -> f32 on the MXU (single pass).
    y = jnp.dot(x_ref[...], w_ref[...], preferred_element_type=jnp.float32)

    @pl.when(jnp.logical_and(phase == 0, t == 0))
    def _():
        sum_ref[...] = jnp.zeros_like(sum_ref)
        ssq_ref[...] = jnp.zeros_like(ssq_ref)
        # Defensive: phase 0 parks the out index on block 0 and writes nothing;
        # zero-init so an early writeback could never emit uninitialized data
        # (phase 1 t==0 always overwrites this block before it is finalized).
        o_ref[...] = jnp.zeros_like(o_ref)

    @pl.when(phase == 0)
    def _():
        # Padded x rows are exact zeros and Linear has no bias -> y is exactly
        # zero there and contributes nothing to the stats (no mask multiply).
        # TODO(synk): at production L, single-pass E[y^2]-E[y]^2 in f32 can
        # lose precision; switch to a shifted / Welford-style accumulation.
        sum_ref[...] = sum_ref[...] + jnp.sum(y, axis=0, keepdims=True)
        ssq_ref[...] = ssq_ref[...] + jnp.sum(y * y, axis=0, keepdims=True)

    @pl.when(phase == 1)
    def _():
        n = jnp.maximum(n_valid.astype(jnp.float32), 1.0)   # guard n == 0
        mean = sum_ref[...] / n
        var = jnp.maximum(ssq_ref[...] / n - mean * mean, 0.0)
        inv = lax.rsqrt(var + 1e-3)
        out = jnp.maximum((y - mean) * inv * g_ref[...] + b_ref[...], 0.0)
        boundary = (row0 + tile_l) > n_valid

        @pl.when(jnp.logical_not(boundary))
        def _():                                   # fast path: full tile
            o_ref[...] = out.astype(o_ref.dtype)

        @pl.when(boundary)
        def _():                                   # only the last partial tile
            ridx = row0 + lax.broadcasted_iota(jnp.int32, (tile_l, 1), 0)
            mask = (ridx < n_valid).astype(jnp.float32)
            o_ref[...] = (out * mask).astype(o_ref.dtype)


def linear_bn_relu(x, w, gamma, beta, n_valid, out_dtype, tile_l):
    Lp, Cin = x.shape
    Coutp = w.shape[1]
    num_tiles = Lp // tile_l
    # TODO(synk): on v7x, split into a stats pass + a 'parallel' normalize pass
    # to shard the store-heavy phase across both TensorCores.
    return pl.pallas_call(
        _mlp_layer_kernel,
        out_shape=jax.ShapeDtypeStruct((Lp, Coutp), out_dtype),
        grid_spec=pltpu.PrefetchScalarGridSpec(
            num_scalar_prefetch=1,
            grid=(2, num_tiles),
            in_specs=[
                pl.BlockSpec((tile_l, Cin), lambda p, t, n: (t, 0)),
                pl.BlockSpec((Cin, Coutp), lambda p, t, n: (0, 0)),
                pl.BlockSpec((1, Coutp), lambda p, t, n: (0, 0)),
                pl.BlockSpec((1, Coutp), lambda p, t, n: (0, 0)),
            ],
            # phase 0 writes nothing real; park the out index on block 0 (it is
            # zero-initialized in-kernel), phase 1 streams every row tile out.
            out_specs=pl.BlockSpec((tile_l, Coutp), lambda p, t, n: (p * t, 0)),
            scratch_shapes=[pltpu.VMEM((1, Coutp), jnp.float32),
                            pltpu.VMEM((1, Coutp), jnp.float32)],
        ),
        compiler_params=pltpu.CompilerParams(
            dimension_semantics=("arbitrary", "arbitrary"),
            vmem_limit_bytes=_VMEM_LIMIT),
    )(n_valid, x, w, gamma, beta)


def _make_segmented_max_kernel(tile_m, chunk, sub, max_chunks):
    def kernel(seg_ref, base_ref, ncks_ref, pst_ref, pcnt_ref, feat_ref, o_ref):
        """Streaming per-pillar max over contiguous, pre-sorted point rows.

        grid = (pillar_tile j, chunk k).  feat_ref is one (chunk, C) row block
        chosen by the scalar-prefetched per-tile chunk base; o_ref is the
        (tile_m, C) accumulator, resident across k.  Features are post-ReLU
        (>= 0) so 0-fill / zero-init matches CUDA scatter_max semantics.
        """
        j = pl.program_id(0)
        k = pl.program_id(1)
        C = o_ref.shape[1]

        @pl.when(k == 0)
        def _():
            o_ref[...] = jnp.zeros_like(o_ref)

        kk = jnp.minimum(k, ncks_ref[j] - 1)          # mirrors the index_map clamp
        r0 = (base_ref[j] + kk) * chunk               # global row of feat_ref[0]
        flat = j * max_chunks + k
        p0 = pst_ref[flat]                            # first pillar touching chunk
        pn = pcnt_ref[flat]                           # number of pillars touching
        iota_sub = lax.broadcasted_iota(jnp.int32, (sub, 1), 0)   # hoisted

        @pl.loop(0, pn)
        def _(ii):
            i = p0 + ii                               # local pillar index
            m = j * tile_m + i
            lo = jnp.maximum(seg_ref[m], r0) - r0     # chunk-relative [lo, hi)
            hi = jnp.minimum(seg_ref[m + 1], r0 + chunk) - r0

            @pl.when(lo < hi)
            def _():
                fa = lo // sub
                fb = (hi + sub - 1) // sub
                ia = (lo + sub - 1) // sub            # first fully-inside sub-chunk
                ib = hi // sub                        # one past last fully-inside

                def interior(c, acc):                 # bare max, no masking
                    st = pl.multiple_of(c * sub, sub)
                    return jnp.maximum(acc, feat_ref[pl.ds(st, sub), :])

                def boundary(c, acc):                 # masked (at most 2 per pillar)
                    st = pl.multiple_of(c * sub, sub)
                    rows = feat_ref[pl.ds(st, sub), :]
                    ridx = st + iota_sub
                    in_seg = jnp.logical_and(ridx >= lo, ridx < hi)
                    return jnp.maximum(acc, jnp.where(in_seg, rows, 0.0))

                acc = jnp.zeros((sub, C), jnp.float32)
                acc = lax.fori_loop(fa, jnp.minimum(ia, fb), boundary, acc)
                acc = lax.fori_loop(jnp.maximum(ia, ib), fb, boundary, acc)
                acc = lax.fori_loop(ia, ib, interior, acc)
                row = jnp.max(acc, axis=0, keepdims=True)
                o_ref[pl.ds(i, 1), :] = jnp.maximum(o_ref[pl.ds(i, 1), :], row)

    return kernel


def segmented_max(feat, seg_off, base, ncks, pstart, pcount, Mp, max_chunks):
    Lp, C = feat.shape
    ntiles = Mp // _TILE_M
    kernel = _make_segmented_max_kernel(_TILE_M, _CHUNK, _SUB, max_chunks)
    return pl.pallas_call(
        kernel,
        out_shape=jax.ShapeDtypeStruct((Mp, C), jnp.float32),
        grid_spec=pltpu.PrefetchScalarGridSpec(
            num_scalar_prefetch=5,
            grid=(ntiles, max_chunks),
            in_specs=[pl.BlockSpec(
                (_CHUNK, C),
                # clamp within the tile's chunk range so skipped steps repeat
                # the same block index (pipeliner skips the re-fetch).
                lambda j, k, seg, base_r, ncks_r, pst, pcnt:
                    (base_r[j] + jnp.minimum(k, ncks_r[j] - 1), 0))],
            out_specs=pl.BlockSpec(
                (_TILE_M, C),
                lambda j, k, seg, base_r, ncks_r, pst, pcnt: (j, 0)),
        ),
        compiler_params=pltpu.CompilerParams(
            dimension_semantics=("parallel", "arbitrary"),
            vmem_limit_bytes=_VMEM_LIMIT),
    )(seg_off, base, ncks, pstart, pcount, feat)


# ------------------------------- host glue --------------------------------

def pillar_query_and_group(xyz, xyz_batch_cnt, pt_feature, pillar_size,
                           pc_range, bev_w, bev_h):
    """Host-side glue replicating PillarQueryAndGroup: assign each in-range
    point to its pillar, emit unique pillar (b, y, x) indices, per-point
    pillar ids, and grouped features [point_features, xyz - pillar_center]."""
    xyz = np.asarray(xyz, np.float32)
    cnt = np.asarray(xyz_batch_cnt, np.int32)
    feat = np.asarray(pt_feature, np.float32)
    batch_idx = np.repeat(np.arange(cnt.shape[0]), cnt)
    px = np.floor((xyz[:, 0] - pc_range[0]) / pillar_size).astype(np.int64)
    py = np.floor((xyz[:, 1] - pc_range[1]) / pillar_size).astype(np.int64)
    valid = ((px >= 0) & (px < bev_w) & (py >= 0) & (py < bev_h)
             & (xyz[:, 2] >= pc_range[2]) & (xyz[:, 2] <= pc_range[5]))
    b, px, py = batch_idx[valid], px[valid], py[valid]
    xyz_v, feat_v = xyz[valid], feat[valid]
    key = (b * bev_h + py) * bev_w + px
    uniq, set_idx = np.unique(key, return_inverse=True)
    ub = uniq // (bev_h * bev_w)
    uy = (uniq // bev_w) % bev_h
    ux = uniq % bev_w
    pillar_indices = np.stack([ub, uy, ux], axis=1).astype(np.int32)  # [b,y,x]
    z_center = 0.5 * (pc_range[2] + pc_range[5])
    centers = np.stack([
        (ux.astype(np.float32) + 0.5) * pillar_size + pc_range[0],
        (uy.astype(np.float32) + 0.5) * pillar_size + pc_range[1],
        np.full(ux.shape, z_center, np.float32)], axis=1)
    rel = xyz_v - centers[set_idx]
    group_features = np.concatenate([feat_v, rel], axis=1).astype(np.float32)
    return pillar_indices, set_idx.astype(np.int32), group_features


def _pooling_metadata(seg_off_p, Mp, Lp):
    """Per pillar-tile chunk base/count plus, per (tile, chunk), the range of
    local pillar indices that intersect the chunk (all from host seg offsets).
    TODO(synk): at production scale this numpy precompute should be jitted /
    overlapped with device work."""
    ntiles = Mp // _TILE_M
    nblk = Lp // _CHUNK
    base = np.zeros(ntiles, np.int32)
    ncks = np.ones(ntiles, np.int32)
    for j in range(ntiles):
        rs = int(seg_off_p[j * _TILE_M])
        re = int(seg_off_p[(j + 1) * _TILE_M])
        cb0 = min(rs // _CHUNK, nblk - 1)
        cb1 = min(max(-(-re // _CHUNK), cb0 + 1), nblk)
        base[j] = cb0
        ncks[j] = cb1 - cb0
    max_chunks = int(ncks.max())
    pstart = np.zeros((ntiles, max_chunks), np.int32)
    pcount = np.zeros((ntiles, max_chunks), np.int32)
    for j in range(ntiles):
        seg_t = seg_off_p[j * _TILE_M:(j + 1) * _TILE_M + 1].astype(np.int64)
        s, e = seg_t[:-1], seg_t[1:]
        for kk in range(int(ncks[j])):
            c_lo = (int(base[j]) + kk) * _CHUNK
            c_hi = c_lo + _CHUNK
            inter = np.nonzero((s < c_hi) & (e > c_lo) & (e > s))[0]
            if inter.size:
                pstart[j, kk] = inter[0]
                pcount[j, kk] = inter[-1] - inter[0] + 1
    return (jnp.asarray(base), jnp.asarray(ncks),
            jnp.asarray(pstart.reshape(-1)), jnp.asarray(pcount.reshape(-1)),
            max_chunks)


class PillarMaxPooling:
    def __init__(self, mlps, pillar_size, point_cloud_range, key):
        self.bev_width, self.bev_height = bev_spatial_shape(point_cloud_range,
                                                            pillar_size)
        self.pillar_size = float(pillar_size)
        self.pc_range = list(point_cloud_range)
        self.weights, self.gammas, self.betas, self.coutps = [], [], [], []
        for k in range(len(mlps) - 1):
            key, sub = jax.random.split(key)
            fan_in, fan_out = mlps[k], mlps[k + 1]
            std = (2.0 / (fan_in + fan_out)) ** 0.5          # xavier-normal
            w = (std * jax.random.normal(sub, (fan_in, fan_out))).astype(jnp.float32)
            # TODO(synk): on v5e, benchmark Cout padded to 64 (or true Cout with
            # masked stores) vs 128 — the 4x channel padding costs HBM traffic.
            coutp = _round_up(fan_out, 128)                  # lane-dense channels
            self.weights.append(w)
            self.coutps.append(coutp)
            self.gammas.append(jnp.ones((1, coutp), jnp.float32))   # BN gamma=1
            self.betas.append(jnp.zeros((1, coutp), jnp.float32))   # BN beta=0

    def __call__(self, xyz, xyz_batch_cnt, pt_feature):
        B = int(xyz_batch_cnt.shape[0])
        # TODO(synk): host-side numpy grouping (unique/argsort) has no clean
        # Pallas equivalent; at production point counts it should be jitted /
        # overlapped with device work.
        pillar_indices, set_idx, group_feats = pillar_query_and_group(
            xyz, xyz_batch_cnt, pt_feature, self.pillar_size, self.pc_range,
            self.bev_width, self.bev_height)
        M, L = pillar_indices.shape[0], group_feats.shape[0]

        # Sort points by pillar id: the row-wise MLP, BN stats and max pooling
        # are permutation invariant, and scatter-max becomes a segmented max
        # over contiguous rows driven by M+1 offsets.
        order = np.argsort(set_idx, kind="stable")
        gf_sorted = group_feats[order]
        counts = np.bincount(set_idx, minlength=M)
        seg_off = np.zeros(M + 1, np.int64)
        seg_off[1:] = np.cumsum(counts)

        tile_l = _TILE_L
        Lp = max(_round_up(L, tile_l), tile_l)          # multiple of _CHUNK too
        Mp = max(_round_up(M, _TILE_M), _TILE_M)

        x_np = np.zeros((Lp, gf_sorted.shape[1]), np.float32)
        x_np[:L] = gf_sorted
        x = jnp.asarray(x_np).astype(jnp.bfloat16)       # bf16 matmul operands
        n_valid = jnp.asarray([L], jnp.int32)

        seg_off_p = np.full(Mp + 1, L, np.int32)
        seg_off_p[:M + 1] = seg_off
        base, ncks, pstart, pcount, max_chunks = _pooling_metadata(
            seg_off_p, Mp, Lp)
        seg_dev = jnp.asarray(seg_off_p)

        n_layers = len(self.weights)
        # TODO(synk): for len(mlps) > 2, fuse phase 1 of layer k with phase 0 of
        # layer k+1 to avoid the intermediate (Lp x Cout) HBM round trip.
        for li, (w, g, b, coutp) in enumerate(zip(self.weights, self.gammas,
                                                  self.betas, self.coutps)):
            cin_p = x.shape[1]
            w_pad = np.zeros((cin_p, coutp), np.float32)   # zero-pad channels
            w_pad[:w.shape[0], :w.shape[1]] = np.asarray(w)
            w_pad = jnp.asarray(w_pad).astype(jnp.bfloat16)
            # TODO(synk): on v7x emit the last layer in bf16 and pool in bf16 to
            # halve kernel-2 HBM reads (kept f32 here to stay bit-stable vs ref).
            out_dtype = jnp.float32 if li == n_layers - 1 else jnp.bfloat16
            x = linear_bn_relu(x, w_pad, g, b, n_valid, out_dtype, tile_l)

        pooled = segmented_max(x, seg_dev, base, ncks, pstart, pcount,
                               Mp, max_chunks)
        pooled = pooled[:M, :self.weights[-1].shape[1]]
        # TODO(synk): spconv.SparseConvTensor has no JAX/Pallas equivalent;
        # return its components (features, indices, spatial_shape, batch_size).
        return pooled, jnp.asarray(pillar_indices), (self.bev_width, self.bev_height), B


# --------------------------------- main ------------------------------------

if __name__ == "__main__":
    key = jax.random.PRNGKey(0)
    B = 2
    pts_per_batch = (60, 68)
    C_pt = 5
    pillar_size = 0.8
    pc_range = [0.0, 0.0, -1.0, 6.4, 6.4, 3.0]          # 8 x 8 BEV grid
    mlps = [C_pt + 3, 32]

    k_xyz, k_z, k_feat, k_params = jax.random.split(key, 4)
    N = sum(pts_per_batch)
    xy = jax.random.uniform(k_xyz, (N, 2), minval=0.0, maxval=6.4)
    z = jax.random.uniform(k_z, (N, 1), minval=-1.0, maxval=3.0)
    xyz = jnp.concatenate([xy, z], axis=1).astype(jnp.float32)
    xyz_batch_cnt = jnp.asarray(pts_per_batch, jnp.int32)
    pt_feature = jax.random.normal(k_feat, (N, C_pt), jnp.float32)

    model = PillarMaxPooling(mlps, pillar_size, pc_range, k_params)
    pillar_features, pillar_indices, spatial_shape, batch_size = model(
        xyz, xyz_batch_cnt, pt_feature)
    pillar_features = jax.block_until_ready(pillar_features)

    # ------- numpy reference (same bf16-rounded operands, f32 math) -------
    def bf16_round(a):
        return np.asarray(jnp.asarray(np.asarray(a, np.float32),
                                      jnp.bfloat16).astype(jnp.float32))

    pil_idx_ref, set_idx_ref, gf_ref = pillar_query_and_group(
        xyz, xyz_batch_cnt, pt_feature, pillar_size, pc_range,
        model.bev_width, model.bev_height)
    x_ref = bf16_round(gf_ref)
    n_layers = len(model.weights)
    for li, (w, g, b) in enumerate(zip(model.weights, model.gammas, model.betas)):
        cout = w.shape[1]
        y = x_ref @ bf16_round(np.asarray(w))
        mu = y.mean(0, keepdims=True)
        var = y.var(0, keepdims=True)                    # biased variance
        y = (y - mu) / np.sqrt(var + 1e-3)
        y = y * np.asarray(g)[:, :cout] + np.asarray(b)[:, :cout]
        x_ref = np.maximum(y, 0.0)
        if li != n_layers - 1:
            x_ref = bf16_round(x_ref)                    # bf16 inter-layer act
    ref = np.zeros((pil_idx_ref.shape[0], x_ref.shape[1]), np.float32)
    for l in range(x_ref.shape[0]):
        m = set_idx_ref[l]
        ref[m] = np.maximum(ref[m], x_ref[l])

    assert pillar_features.shape == ref.shape, (pillar_features.shape, ref.shape)
    err = np.abs(np.asarray(pillar_features) - ref).max()
    assert np.allclose(np.asarray(pillar_features), ref, rtol=1e-3, atol=1e-3), err
    print("KERNEL_OK")
</pallas_src>

<mosaic_0001>
module attributes {stable_mosaic.version = 11 : i64} {
  func.func @_mlp_layer_kernel(%arg0: i32, %arg1: i32, %arg2: memref<1xi32, #tpu.memory_space<smem>>, %arg3: memref<1024x8xbf16, #tpu.memory_space<vmem>>, %arg4: memref<8x128xbf16, #tpu.memory_space<vmem>>, %arg5: memref<1x128xf32, #tpu.memory_space<vmem>>, %arg6: memref<1x128xf32, #tpu.memory_space<vmem>>, %arg7: memref<1024x128xf32, #tpu.memory_space<vmem>>, %arg8: memref<1x128xf32, #tpu.memory_space<vmem>>, %arg9: memref<1x128xf32, #tpu.memory_space<vmem>>) attributes {dimension_semantics = [#tpu.dimension_semantics<arbitrary>, #tpu.dimension_semantics<arbitrary>], iteration_bounds = array<i64: 2, 1>, scalar_prefetch = 1 : i64, scratch_operands = 2 : i64, tpu.core_type = #tpu.core_type<tc>, window_params = [{transform_indices = @transform_0, window_bounds = array<i64: 1024, 8>}, {pipeline_mode = #tpu.pipeline_mode<synchronous>, transform_indices = @transform_1, window_bounds = array<i64: 8, 128>}, {pipeline_mode = #tpu.pipeline_mode<synchronous>, transform_indices = @transform_2, window_bounds = array<i64: 1, 128>}, {pipeline_mode = #tpu.pipeline_mode<synchronous>, transform_indices = @transform_3, window_bounds = array<i64: 1, 128>}, {transform_indices = @transform_4, window_bounds = array<i64: 1024, 128>}]} {
    %c0 = arith.constant 0 : index
    %0 = memref.load %arg2[%c0] : memref<1xi32, #tpu.memory_space<smem>>
    %c1024_i32 = arith.constant 1024 : i32
    %1 = arith.muli %arg1, %c1024_i32 : i32
    %c0_0 = arith.constant 0 : index
    %c0_1 = arith.constant 0 : index
    %2 = vector.load %arg3[%c0_0, %c0_1] : memref<1024x8xbf16, #tpu.memory_space<vmem>>, vector<1024x8xbf16>
    %c0_2 = arith.constant 0 : index
    %c0_3 = arith.constant 0 : index
    %3 = vector.load %arg4[%c0_2, %c0_3] : memref<8x128xbf16, #tpu.memory_space<vmem>>, vector<8x128xbf16>
    %cst = arith.constant dense<0.000000e+00> : vector<1024x128xf32>
    %4 = tpu.matmul %2, %3, %cst {dimension_numbers = #tpu.dot_dimension_numbers<[1], [0], [0], [1], [0, 0, 1, 1], [], []>} : vector<1024x8xbf16>, vector<8x128xbf16>, vector<1024x128xf32> -> vector<1024x128xf32>
    %c0_i32 = arith.constant 0 : i32
    %5 = arith.cmpi eq, %arg0, %c0_i32 : i32
    %c0_i32_4 = arith.constant 0 : i32
    %6 = arith.cmpi eq, %arg1, %c0_i32_4 : i32
    %7 = arith.andi %5, %6 : i1
    %8 = arith.extui %7 : i1 to i32
    %c0_i32_5 = arith.constant 0 : i32
    %9 = arith.cmpi ne, %8, %c0_i32_5 : i32
    scf.if %9 {
      %cst_9 = arith.constant 0.000000e+00 : f32
      %16 = vector.broadcast %cst_9 : f32 to vector<1x128xf32>
      %c0_10 = arith.constant 0 : index
      %c0_11 = arith.constant 0 : index
      %17 = vector.load %arg8[%c0_10, %c0_11] : memref<1x128xf32, #tpu.memory_space<vmem>>, vector<1x128xf32>
      tpu.vector_store %arg8[%c0_10, %c0_11], %16 {strides = array<i32>} : memref<1x128xf32, #tpu.memory_space<vmem>>, vector<1x128xf32>,
      %cst_12 = arith.constant 0.000000e+00 : f32
      %18 = vector.broadcast %cst_12 : f32 to vector<1x128xf32>
      %c0_13 = arith.constant 0 : index
      %c0_14 = arith.constant 0 : index
      %19 = vector.load %arg9[%c0_13, %c0_14] : memref<1x128xf32, #tpu.memory_space<vmem>>, vector<1x128xf32>
      tpu.vector_store %arg9[%c0_13, %c0_14], %18 {strides = array<i32>} : memref<1x128xf32, #tpu.memory_space<vmem>>, vector<1x128xf32>,
      %cst_15 = arith.constant 0.000000e+00 : f32
      %20 = vector.broadcast %cst_15 : f32 to vector<1024x128xf32>
      %c0_16 = arith.constant 0 : index
      %c0_17 = arith.constant 0 : index
      %21 = vector.load %arg7[%c0_16, %c0_17] : memref<1024x128xf32, #tpu.memory_space<vmem>>, vector<1024x128xf32>
      tpu.vector_store %arg7[%c0_16, %c0_17], %20 {strides = array<i32>} : memref<1024x128xf32, #tpu.memory_space<vmem>>, vector<1024x128xf32>,
    } else {
    }
    %c0_i32_6 = arith.constant 0 : i32
    %10 = arith.cmpi eq, %arg0, %c0_i32_6 : i32
    %11 = arith.extui %10 : i1 to i32
    %c0_i32_7 = arith.constant 0 : i32
    %12 = arith.cmpi ne, %11, %c0_i32_7 : i32
    scf.if %12 {
      %c0_9 = arith.constant 0 : index
      %c0_10 = arith.constant 0 : index
      %16 = vector.load %arg8[%c0_9, %c0_10] : memref<1x128xf32, #tpu.memory_space<vmem>>, vector<1x128xf32>
      %cst_11 = arith.constant dense<0.000000e+00> : vector<128xf32>
      %17 = vector.multi_reduction <add>, %4, %cst_11 [0] : vector<1024x128xf32> to vector<128xf32>
      %18 = vector.shape_cast %17 : vector<128xf32> to vector<1x128xf32>
      %19 = arith.addf %16, %18 : vector<1x128xf32>
      %c0_12 = arith.constant 0 : index
      %c0_13 = arith.constant 0 : index
      %20 = vector.load %arg8[%c0_12, %c0_13] : memref<1x128xf32, #tpu.memory_space<vmem>>, vector<1x128xf32>
      tpu.vector_store %arg8[%c0_12, %c0_13], %19 {strides = array<i32>} : memref<1x128xf32, #tpu.memory_space<vmem>>, vector<1x128xf32>,
      %c0_14 = arith.constant 0 : index
      %c0_15 = arith.constant 0 : index
      %21 = vector.load %arg9[%c0_14, %c0_15] : memref<1x128xf32, #tpu.memory_space<vmem>>, vector<1x128xf32>
      %22 = arith.mulf %4, %4 : vector<1024x128xf32>
      %cst_16 = arith.constant dense<0.000000e+00> : vector<128xf32>
      %23 = vector.multi_reduction <add>, %22, %cst_16 [0] : vector<1024x128xf32> to vector<128xf32>
      %24 = vector.shape_cast %23 : vector<128xf32> to vector<1x128xf32>
      %25 = arith.addf %21, %24 : vector<1x128xf32>
      %c0_17 = arith.constant 0 : index
      %c0_18 = arith.constant 0 : index
      %26 = vector.load %arg9[%c0_17, %c0_18] : memref<1x128xf32, #tpu.memory_space<vmem>>, vector<1x128xf32>
      tpu.vector_store %arg9[%c0_17, %c0_18], %25 {strides = array<i32>} : memref<1x128xf32, #tpu.memory_space<vmem>>, vector<1x128xf32>,
    } else {
    }
    %c1_i32 = arith.constant 1 : i32
    %13 = arith.cmpi eq, %arg0, %c1_i32 : i32
    %14 = arith.extui %13 : i1 to i32
    %c0_i32_8 = arith.constant 0 : i32
    %15 = arith.cmpi ne, %14, %c0_i32_8 : i32
    scf.if %15 {
      %16 = arith.sitofp %0 : i32 to f32
      %cst_9 = arith.constant 1.000000e+00 : f32
      %17 = arith.maximumf %16, %cst_9 : f32
      %c0_10 = arith.constant 0 : index
      %c0_11 = arith.constant 0 : index
      %18 = vector.load %arg8[%c0_10, %c0_11] : memref<1x128xf32, #tpu.memory_space<vmem>>, vector<1x128xf32>
      %19 = vector.broadcast %17 : f32 to vector<1x128xf32>
      %20 = arith.divf %18, %19 : vector<1x128xf32>
      %c0_12 = arith.constant 0 : index
      %c0_13 = arith.constant 0 : index
      %21 = vector.load %arg9[%c0_12, %c0_13] : memref<1x128xf32, #tpu.memory_space<vmem>>, vector<1x128xf32>
      %22 = vector.broadcast %17 : f32 to vector<1x128xf32>
      %23 = arith.divf %21, %22 : vector<1x128xf32>
      %24 = arith.mulf %20, %20 : vector<1x128xf32>
      %25 = arith.subf %23, %24 : vector<1x128xf32>
      %cst_14 = arith.constant 0.000000e+00 : f32
      %26 = vector.broadcast %cst_14 : f32 to vector<1x128xf32>
      %27 = arith.maximumf %25, %26 : vector<1x128xf32>
      %cst_15 = arith.constant 1.000000e-03 : f32
      %28 = vector.broadcast %cst_15 : f32 to vector<1x128xf32>
      %29 = arith.addf %27, %28 : vector<1x128xf32>
      %30 = math.rsqrt %29 : vector<1x128xf32>
      %31 = vector.broadcast %20 : vector<1x128xf32> to vector<1024x128xf32>
      %32 = arith.subf %4, %31 : vector<1024x128xf32>
      %33 = vector.broadcast %30 : vector<1x128xf32> to vector<1024x128xf32>
      %34 = arith.mulf %32, %33 : vector<1024x128xf32>
      %c0_16 = arith.constant 0 : index
      %c0_17 = arith.constant 0 : index
      %35 = vector.load %arg5[%c0_16, %c0_17] : memref<1x128xf32, #tpu.memory_space<vmem>>, vector<1x128xf32>
      %36 = vector.broadcast %35 : vector<1x128xf32> to vector<1024x128xf32>
      %37 = arith.mulf %34, %36 : vector<1024x128xf32>
      %c0_18 = arith.constant 0 : index
      %c0_19 = arith.constant 0 : index
      %38 = vector.load %arg6[%c0_18, %c0_19] : memref<1x128xf32, #tpu.memory_space<vmem>>, vector<1x128xf32>
      %39 = vector.broadcast %38 : vector<1x128xf32> to vector<1024x128xf32>
      %40 = arith.addf %37, %39 : vector<1024x128xf32>
      %cst_20 = arith.constant 0.000000e+00 : f32
      %41 = vector.broadcast %cst_20 : f32 to vector<1024x128xf32>
      %42 = arith.maximumf %40, %41 : vector<1024x128xf32>
      %c1024_i32_21 = arith.constant 1024 : i32
      %43 = arith.addi %1, %c1024_i32_21 : i32
      %44 = arith.cmpi sgt, %43, %0 : i32
      %true = arith.constant true
      %45 = arith.xori %44, %true : i1
      %46 = arith.extui %45 : i1 to i32
      %c0_i32_22 = arith.constant 0 : i32
      %47 = arith.cmpi ne, %46, %c0_i32_22 : i32
      scf.if %47 {
        %c0_24 = arith.constant 0 : index
        %c0_25 = arith.constant 0 : index
        %50 = vector.load %arg7[%c0_24, %c0_25] : memref<1024x128xf32, #tpu.memory_space<vmem>>, vector<1024x128xf32>
        tpu.vector_store %arg7[%c0_24, %c0_25], %42 {strides = array<i32>} : memref<1024x128xf32, #tpu.memory_space<vmem>>, vector<1024x128xf32>,
      } else {
      }
      %48 = arith.extui %44 : i1 to i32
      %c0_i32_23 = arith.constant 0 : i32
      %49 = arith.cmpi ne, %48, %c0_i32_23 : i32
      scf.if %49 {
        %50 = tpu.iota {dimensions = array<i32: 0>} : vector<1024x1xi32>
        %51 = vector.broadcast %1 : i32 to vector<1024x1xi32>
        %52 = arith.addi %51, %50 : vector<1024x1xi32>
        %53 = vector.broadcast %0 : i32 to vector<1024x1xi32>
        %54 = arith.cmpi slt, %52, %53 : vector<1024x1xi32>
        %55 = arith.extui %54 : vector<1024x1xi1> to vector<1024x1xi32>
        %56 = arith.sitofp %55 : vector<1024x1xi32> to vector<1024x1xf32>
        %57 = vector.broadcast %56 : vector<1024x1xf32> to vector<1024x128xf32>
        %58 = arith.mulf %42, %57 : vector<1024x128xf32>
        %c0_24 = arith.constant 0 : index
        %c0_25 = arith.constant 0 : index
        %59 = vector.load %arg7[%c0_24, %c0_25] : memref<1024x128xf32, #tpu.memory_space<vmem>>, vector<1024x128xf32>
        tpu.vector_store %arg7[%c0_24, %c0_25], %58 {strides = array<i32>} : memref<1024x128xf32, #tpu.memory_space<vmem>>, vector<1024x128xf32>,
      } else {
      }
    } else {
    }
    return
  }
  func.func @transform_0(%arg0: i32, %arg1: i32, %arg2: memref<1xi32, #tpu.memory_space<smem>>) -> (i32, i32) {
    %c0_i32 = arith.constant 0 : i32
    %c0_i32_0 = arith.constant 0 : i32
    return %arg1, %c0_i32 : i32, i32
  }
  func.func @transform_1(%arg0: i32, %arg1: i32, %arg2: memref<1xi32, #tpu.memory_space<smem>>) -> (i32, i32) {
    %c0_i32 = arith.constant 0 : i32
    %c0_i32_0 = arith.constant 0 : i32
    %c0_i32_1 = arith.constant 0 : i32
    return %c0_i32, %c0_i32_0 : i32, i32
  }
  func.func @transform_2(%arg0: i32, %arg1: i32, %arg2: memref<1xi32, #tpu.memory_space<smem>>) -> (i32, i32) {
    %c0_i32 = arith.constant 0 : i32
    %c0_i32_0 = arith.constant 0 : i32
    %c0_i32_1 = arith.constant 0 : i32
    return %c0_i32, %c0_i32_0 : i32, i32
  }
  func.func @transform_3(%arg0: i32, %arg1: i32, %arg2: memref<1xi32, #tpu.memory_space<smem>>) -> (i32, i32) {
    %c0_i32 = arith.constant 0 : i32
    %c0_i32_0 = arith.constant 0 : i32
    %c0_i32_1 = arith.constant 0 : i32
    return %c0_i32, %c0_i32_0 : i32, i32
  }
  func.func @transform_4(%arg0: i32, %arg1: i32, %arg2: memref<1xi32, #tpu.memory_space<smem>>) -> (i32, i32) {
    %0 = arith.muli %arg0, %arg1 : i32
    %c0_i32 = arith.constant 0 : i32
    %c0_i32_0 = arith.constant 0 : i32
    return %0, %c0_i32 : i32, i32
  }
}

</mosaic_0001>

<bundles_post_ra>
// kernel: tpu_custom_call.1
= control target key start
LH: loop header
LB: loop body
LE: loop exit
PB: predicated region body
PF: predicated region fallthrough
CT: control target
= control target key end

     0   :  { %s8628_s0 = inlined_call_operand.<no memory space> [shape: s32[1], index: 0, kind: input, shape index: {}]   ;;  %s8629_s1 = inlined_call_operand.vmem [shape: bf16[1024,8], index: 1, kind: input, shape index: {}]   ;;  %s8630_s2 = inlined_call_operand.vmem [shape: bf16[8,128], index: 2, kind: input, shape index: {}]   ;;  %s8631_s3 = inlined_call_operand.vmem [shape: f32[1,128], index: 3, kind: input, shape index: {}]   ;;  %s8632_s4 = inlined_call_operand.vmem [shape: f32[1,128], index: 4, kind: input, shape index: {}]   ;;  %s8633_s5 = inlined_call_operand.hbm [shape: f32[1024,128], index: 5, kind: output, shape index: {}]  }
   0x1   :  { %10 = sst [smem:[#allocation5]] %s8628_s0 }
   0x2   :  { %11 = vsyncpa [#allocation7], 0 }
   0x3   :  { %13 = vsyncpa [#allocation7 + $0x1], 0  ;;  %s4432_s20 = smov 0   ;;  %s4434_s21 = smov 0  }
   0x4   :  { %s4436_s22 = smov 0  }
   0x5 LB: > { %s3756_s0 = sadd.s32 4294967295, %s4391_s22   ;;  %s3757_s23 = sadd.s32 4294967294, %s4391_s22   ;;  %s4391_s22 = sphi %s4436_s22, %s19_s22   ;;  %s4387_s21 = sphi %s4434_s21, %s10164_s21   ;;  %s4383_s20 = sphi %s4432_s20, %s10163_s20  }
   0x6   : > { %s31_s24 = sadd.s32 1, %s4387_s21  ;;  %p3760_p0 = scmp.ge.s32.totalorder %s4391_s22, 1 }
   0x7   : > { %p33_p1 = scmp.ge.s32.totalorder %s31_s24, 2  ;;  %p182_p2 = scmp.lt.s32.totalorder %s4391_s22, 3 }
   0x9   : > { %s10166_s24 = smov (%p33_p1, %s31_s24), 0  ;;  %p183_p3 = pnand %p3760_p0, %p182_p2 }
   0xb   : > { %186 = sbr.rel (%p183_p3) target bundleno = 1217 (0x4c1), region = 36 }
  0x12   : > { %s4454_s25 = sld [smem:[#allocation5]]  ;;  %v347_v0 = vld [vmem:[%s8630_s2] sm:$0xf]  ;;  %vm861_vm0 = vcmask 1043456   ;;  %vm668_vm1 = vcmask 64512   ;;  %v4273_v4 = vld [vmem:[%s8629_s1 + $0x8] sm:$0xff]  }
  0x13   : > { %v4271_v1 = vld [vmem:[%s8629_s1] sm:$0xff]   ;;  %4228 = vmatprep.subr.msk.bf16.mxu0 %vm861_vm0, %v347_v0  ;;  %4229 = vmatprep.subr.msk.bf16.mxu1 %vm861_vm0, %v347_v0  ;;  %v863_v2 = vsel %vm861_vm0, %v347_v0, 0  ;;  %v4274_v5 = vld [vmem:[%s8629_s1 + $0x108] sm:$0xff]   ;;  %v4275_v6 = vld [vmem:[%s8629_s1 + $0x10] sm:$0xff]   ;;  %p1410_p4 = scmp.eq.s32.totalorder %s4383_s20, 0 }
  0x14   : > { %4097 = vmatpush3.bf16.msra.mxu0 %v863_v2  ;;  %4227 = vmatpush3.bf16.msra.mxu1 %v863_v2  ;;  %v4272_v3 = vld [vmem:[%s8629_s1 + $0x100] sm:$0xff]   ;;  %v4276_v7 = vld [vmem:[%s8629_s1 + $0x110] sm:$0xff]   ;;  %v4277_v8 = vld [vmem:[%s8629_s1 + $0x18] sm:$0xff]  }
  0x15   : > { %4098 = vmatprep.mubr.msk.bf16.mxu0 %vm668_vm1, %v4271_v1  ;;  %4162 = vmatprep.mubr.msk.bf16.mxu1 %vm668_vm1, %v4272_v3  ;;  %v4278_v9 = vld [vmem:[%s8629_s1 + $0x118] sm:$0xff]   ;;  %v4279_v10 = vld [vmem:[%s8629_s1 + $0x20] sm:$0xff]   ;;  %v4281_v12 = vld [vmem:[%s8629_s1 + $0x28] sm:$0xff]  }
  0x16   : > { %v4280_v11 = vld [vmem:[%s8629_s1 + $0x120] sm:$0xff]   ;;  %v4282_v13 = vld [vmem:[%s8629_s1 + $0x128] sm:$0xff]   ;;  %v4283_v14 = vld [vmem:[%s8629_s1 + $0x30] sm:$0xff]  }
  0x17   : > { %4099 = vmatmul.mubr.msk.bf16.vlgmr.msra.gmra.mrb[0].mxu0 %vm668_vm1, %v4273_v4  ;;  %4163 = vmatmul.mubr.msk.bf16.vlgmr.msra.gmra.mrb[0].mxu1 %vm668_vm1, %v4274_v5  ;;  %v4284_v15 = vld [vmem:[%s8629_s1 + $0x130] sm:$0xff]   ;;  %v4285_v16 = vld [vmem:[%s8629_s1 + $0x38] sm:$0xff]   ;;  %v4287_v18 = vld [vmem:[%s8629_s1 + $0x40] sm:$0xff]  }
  0x18   : > { %4102 = vmatprep.mubr.msk.bf16.mxu0 %vm668_vm1, %v4275_v6  ;;  %4166 = vmatprep.mubr.msk.bf16.mxu1 %vm668_vm1, %v4276_v7  ;;  %v4286_v17 = vld [vmem:[%s8629_s1 + $0x138] sm:$0xff]   ;;  %v4288_v19 = vld [vmem:[%s8629_s1 + $0x140] sm:$0xff]   ;;  %v4289_v20 = vld [vmem:[%s8629_s1 + $0x48] sm:$0xff]  }
  0x19   : > { %v4290_v21 = vld [vmem:[%s8629_s1 + $0x148] sm:$0xff]   ;;  %v4291_v22 = vld [vmem:[%s8629_s1 + $0x50] sm:$0xff]   ;;  %v4293_v24 = vld [vmem:[%s8629_s1 + $0x58] sm:$0xff]  }
  0x1a   : > { %v4292_v23 = vld [vmem:[%s8629_s1 + $0x150] sm:$0xff]   ;;  %v4294_v25 = vld [vmem:[%s8629_s1 + $0x158] sm:$0xff]   ;;  %v4295_v26 = vld [vmem:[%s8629_s1 + $0x60] sm:$0xff]  }
  0x1b   : > { %v4296_v27 = vld [vmem:[%s8629_s1 + $0x160] sm:$0xff]   ;;  %v4297_v28 = vld [vmem:[%s8629_s1 + $0x68] sm:$0xff]   ;;  %v4299_v30 = vld [vmem:[%s8629_s1 + $0x70] sm:$0xff]  }
  0x1c   : > { %v4298_v29 = vld [vmem:[%s8629_s1 + $0x168] sm:$0xff]   ;;  %v4300_v31 = vld [vmem:[%s8629_s1 + $0x170] sm:$0xff]   ;;  %v4301_v32 = vld [vmem:[%s8629_s1 + $0x78] sm:$0xff]  }
  0x1d   : > { %v4302_v33 = vld [vmem:[%s8629_s1 + $0x178] sm:$0xff]   ;;  %v4303_v34 = vld [vmem:[%s8629_s1 + $0x80] sm:$0xff]   ;;  %v4305_v36 = vld [vmem:[%s8629_s1 + $0x88] sm:$0xff]  }
  0x1e   : > { %v4304_v35 = vld [vmem:[%s8629_s1 + $0x180] sm:$0xff]   ;;  %v4306_v37 = vld [vmem:[%s8629_s1 + $0x188] sm:$0xff]   ;;  %v4307_v38 = vld [vmem:[%s8629_s1 + $0x90] sm:$0xff]  }
  0x1f   : > { %4103 = vmatmul.mubr.msk.bf16.gmra.mrb[4].mxu0 %vm668_vm1, %v4277_v8  ;;  %4167 = vmatmul.mubr.msk.bf16.gmra.mrb[4].mxu1 %vm668_vm1, %v4278_v9  ;;  %v4308_v39 = vld [vmem:[%s8629_s1 + $0x190] sm:$0xff]   ;;  %v4309_v40 = vld [vmem:[%s8629_s1 + $0x98] sm:$0xff]   ;;  %v4311_v42 = vld [vmem:[%s8629_s1 + $0xa0] sm:$0xff]  }
  0x20   : > { %4106 = vmatprep.mubr.msk.bf16.mxu0 %vm668_vm1, %v4279_v10  ;;  %4170 = vmatprep.mubr.msk.bf16.mxu1 %vm668_vm1, %v4280_v11  ;;  %v4310_v41 = vld [vmem:[%s8629_s1 + $0x198] sm:$0xff]   ;;  %v4312_v43 = vld [vmem:[%s8629_s1 + $0x1a0] sm:$0xff]   ;;  %v4313_v44 = vld [vmem:[%s8629_s1 + $0xa8] sm:$0xff]  }
  0x21   : > { %v4314_v45 = vld [vmem:[%s8629_s1 + $0x1a8] sm:$0xff]   ;;  %v4315_v46 = vld [vmem:[%s8629_s1 + $0xb0] sm:$0xff]   ;;  %v4317_v48 = vld [vmem:[%s8629_s1 + $0xb8] sm:$0xff]  }
  0x22   : > { %v4316_v47 = vld [vmem:[%s8629_s1 + $0x1b0] sm:$0xff]   ;;  %v4318_v49 = vld [vmem:[%s8629_s1 + $0x1b8] sm:$0xff]   ;;  %v4319_v50 = vld [vmem:[%s8629_s1 + $0xc0] sm:$0xff]  }
  0x23   : > { %v4320_v51 = vld [vmem:[%s8629_s1 + $0x1c0] sm:$0xff]   ;;  %v4321_v52 = vld [vmem:[%s8629_s1 + $0xc8] sm:$0xff]   ;;  %v4323_v54 = vld [vmem:[%s8629_s1 + $0xd0] sm:$0xff]  }
  0x24   : > { %v4322_v53 = vld [vmem:[%s8629_s1 + $0x1c8] sm:$0xff]   ;;  %v4324_v55 = vld [vmem:[%s8629_s1 + $0x1d0] sm:$0xff]   ;;  %v4325_v56 = vld [vmem:[%s8629_s1 + $0xd8] sm:$0xff]  }
  0x25   : > { %v4326_v57 = vld [vmem:[%s8629_s1 + $0x1d8] sm:$0xff]   ;;  %v4327_v58 = vld [vmem:[%s8629_s1 + $0xe0] sm:$0xff]   ;;  %v4329_v60 = vld [vmem:[%s8629_s1 + $0xe8] sm:$0xff]  }
  0x26   : > { %v4328_v59 = vld [vmem:[%s8629_s1 + $0x1e0] sm:$0xff]   ;;  %v4330_v61 = vld [vmem:[%s8629_s1 + $0x1e8] sm:$0xff]   ;;  %v4331_v62 = vld [vmem:[%s8629_s1 + $0xf0] sm:$0xff]  }
  0x27   : > { %4107 = vmatmul.mubr.msk.bf16.gmra.mrb[8].mxu0 %vm668_vm1, %v4281_v12  ;;  %4171 = vmatmul.mubr.msk.bf16.gmra.mrb[8].mxu1 %vm668_vm1, %v4282_v13  ;;  %v4332_v63 = vld [vmem:[%s8629_s1 + $0x1f0] sm:$0xff]   ;;  %v4333_v0 = vld [vmem:[%s8629_s1 + $0xf8] sm:$0xff]  }
  0x28   : > { %4110 = vmatprep.mubr.msk.bf16.mxu0 %vm668_vm1, %v4283_v14  ;;  %4174 = vmatprep.mubr.msk.bf16.mxu1 %vm668_vm1, %v4284_v15  ;;  %v4334_v1 = vld [vmem:[%s8629_s1 + $0x1f8] sm:$0xff]  }
  0x2f   : > { %4111 = vmatmul.mubr.msk.bf16.gmra.mrb[12].mxu0 %vm668_vm1, %v4285_v16  ;;  %4175 = vmatmul.mubr.msk.bf16.gmra.mrb[12].mxu1 %vm668_vm1, %v4286_v17 }
  0x30   : > { %4114 = vmatprep.mubr.msk.bf16.mxu0 %vm668_vm1, %v4287_v18  ;;  %4178 = vmatprep.mubr.msk.bf16.mxu1 %vm668_vm1, %v4288_v19 }
  0x37   : > { %4115 = vmatmul.mubr.msk.bf16.gmra.mrb[16].mxu0 %vm668_vm1, %v4289_v20  ;;  %4179 = vmatmul.mubr.msk.bf16.gmra.mrb[16].mxu1 %vm668_vm1, %v4290_v21 }
  0x38   : > { %4118 = vmatprep.mubr.msk.bf16.mxu0 %vm668_vm1, %v4291_v22  ;;  %4182 = vmatprep.mubr.msk.bf16.mxu1 %vm668_vm1, %v4292_v23 }
  0x3f   : > { %4119 = vmatmul.mubr.msk.bf16.gmra.mrb[20].mxu0 %vm668_vm1, %v4293_v24  ;;  %4183 = vmatmul.mubr.msk.bf16.gmra.mrb[20].mxu1 %vm668_vm1, %v4294_v25 }
  0x40   : > { %4122 = vmatprep.mubr.msk.bf16.mxu0 %vm668_vm1, %v4295_v26  ;;  %4186 = vmatprep.mubr.msk.bf16.mxu1 %vm668_vm1, %v4296_v27 }
  0x47   : > { %4123 = vmatmul.mubr.msk.bf16.gmra.mrb[24].mxu0 %vm668_vm1, %v4297_v28  ;;  %4187 = vmatmul.mubr.msk.bf16.gmra.mrb[24].mxu1 %vm668_vm1, %v4298_v29 }
  0x48   : > { %4126 = vmatprep.mubr.msk.bf16.mxu0 %vm668_vm1, %v4299_v30  ;;  %4190 = vmatprep.mubr.msk.bf16.mxu1 %vm668_vm1, %v4300_v31 }
  0x4f   : > { %4127 = vmatmul.mubr.msk.bf16.gmra.mrb[28].mxu0 %vm668_vm1, %v4301_v32  ;;  %4191 = vmatmul.mubr.msk.bf16.gmra.mrb[28].mxu1 %vm668_vm1, %v4302_v33 }
  0x50   : > { %4130 = vmatprep.mubr.msk.bf16.mxu0 %vm668_vm1, %v4303_v34  ;;  %4194 = vmatprep.mubr.msk.bf16.mxu1 %vm668_vm1, %v4304_v35 }
  0x57   : > { %4131 = vmatmul.mubr.msk.bf16.gmra.mrb[32].mxu0 %vm668_vm1, %v4305_v36  ;;  %4195 = vmatmul.mubr.msk.bf16.gmra.mrb[32].mxu1 %vm668_vm1, %v4306_v37 }
  0x58   : > { %4134 = vmatprep.mubr.msk.bf16.mxu0 %vm668_vm1, %v4307_v38  ;;  %4198 = vmatprep.mubr.msk.bf16.mxu1 %vm668_vm1, %v4308_v39 }
  0x5f   : > { %4135 = vmatmul.mubr.msk.bf16.gmra.mrb[36].mxu0 %vm668_vm1, %v4309_v40  ;;  %4199 = vmatmul.mubr.msk.bf16.gmra.mrb[36].mxu1 %vm668_vm1, %v4310_v41 }
  0x60   : > { %4138 = vmatprep.mubr.msk.bf16.mxu0 %vm668_vm1, %v4311_v42  ;;  %4202 = vmatprep.mubr.msk.bf16.mxu1 %vm668_vm1, %v4312_v43 }
  0x67   : > { %4139 = vmatmul.mubr.msk.bf16.gmra.mrb[40].mxu0 %vm668_vm1, %v4313_v44  ;;  %4203 = vmatmul.mubr.msk.bf16.gmra.mrb[40].mxu1 %vm668_vm1, %v4314_v45 }
  0x68   : > { %4142 = vmatprep.mubr.msk.bf16.mxu0 %vm668_vm1, %v4315_v46  ;;  %4206 = vmatprep.mubr.msk.bf16.mxu1 %vm668_vm1, %v4316_v47 }
  0x6f   : > { %4143 = vmatmul.mubr.msk.bf16.gmra.mrb[44].mxu0 %vm668_vm1, %v4317_v48  ;;  %4207 = vmatmul.mubr.msk.bf16.gmra.mrb[44].mxu1 %vm668_vm1, %v4318_v49 }
  0x70   : > { %4146 = vmatprep.mubr.msk.bf16.mxu0 %vm668_vm1, %v4319_v50  ;;  %4210 = vmatprep.mubr.msk.bf16.mxu1 %vm668_vm1, %v4320_v51 }
  0x77   : > { %4147 = vmatmul.mubr.msk.bf16.gmra.mrb[48].mxu0 %vm668_vm1, %v4321_v52  ;;  %4211 = vmatmul.mubr.msk.bf16.gmra.mrb[48].mxu1 %vm668_vm1, %v4322_v53 }
  0x78   : > { %4150 = vmatprep.mubr.msk.bf16.mxu0 %vm668_vm1, %v4323_v54  ;;  %4214 = vmatprep.mubr.msk.bf16.mxu1 %vm668_vm1, %v4324_v55 }
  0x7f   : > { %4151 = vmatmul.mubr.msk.bf16.gmra.mrb[52].mxu0 %vm668_vm1, %v4325_v56  ;;  %4215 = vmatmul.mubr.msk.bf16.gmra.mrb[52].mxu1 %vm668_vm1, %v4326_v57 }
  0x80   : > { %4154 = vmatprep.mubr.msk.bf16.mxu0 %vm668_vm1, %v4327_v58  ;;  %4218 = vmatprep.mubr.msk.bf16.mxu1 %vm668_vm1, %v4328_v59 }
  0x87   : > { %4155 = vmatmul.mubr.msk.bf16.gmra.mrb[56].mxu0 %vm668_vm1, %v4329_v60  ;;  %4219 = vmatmul.mubr.msk.bf16.gmra.mrb[56].mxu1 %vm668_vm1, %v4330_v61 }
  0x88   : > { %4158 = vmatprep.mubr.msk.bf16.mxu0 %vm668_vm1, %v4331_v62  ;;  %4222 = vmatprep.mubr.msk.bf16.mxu1 %vm668_vm1, %v4332_v63 }
  0x8f   : > { %4159 = vmatmul.mubr.msk.bf16.gmra.mrb[60].mxu0 %vm668_vm1, %v4333_v0  ;;  %4223 = vmatmul.mubr.msk.bf16.gmra.mrb[60].mxu1 %vm668_vm1, %v4334_v1 }
  0xea   : > { %v4716_v2 = vpop.f32.mrb[0].mxu0  ;;  %v4718_v3 = vpop.f32.mrb[0].mxu1 }
  0xeb   : > { %8833 = vst [vmem:[#allocation9_spill] sm:$0xff] %v4716_v2  ;;  %8834 = vst [vmem:[#allocation10_spill] sm:$0xff] %v4718_v3  ;;  %v4720_v4 = vpop.f32.mrb[1].mxu0  ;;  %v4722_v5 = vpop.f32.mrb[1].mxu1 }
  0xec   : > { %8835 = vst [vmem:[#allocation11_spill] sm:$0xff] %v4720_v4  ;;  %8836 = vst [vmem:[#allocation12_spill] sm:$0xff] %v4722_v5  ;;  %v4724_v6 = vpop.f32.mrb[2].mxu0  ;;  %v4726_v7 = vpop.f32.mrb[2].mxu1 }
  0xed   : > { %8837 = vst [vmem:[#allocation13_spill] sm:$0xff] %v4726_v7  ;;  %v4728_v8 = vpop.f32.mrb[3].mxu0  ;;  %v4730_v9 = vpop.f32.mrb[3].mxu1 }
  0xee   : > { %8838 = vst [vmem:[#allocation14_spill] sm:$0xff] %v4728_v8  ;;  %8839 = vst [vmem:[#allocation15_spill] sm:$0xff] %v4730_v9 }
  0xf2   : > { %v4732_v10 = vpop.f32.mrb[4].mxu0  ;;  %v4734_v11 = vpop.f32.mrb[4].mxu1 }
  0xf3   : > { %8840 = vst [vmem:[#allocation16_spill] sm:$0xff] %v4734_v11  ;;  %v4736_v12 = vpop.f32.mrb[5].mxu0  ;;  %v4738_v13 = vpop.f32.mrb[5].mxu1 }
  0xf4   : > { %8841 = vst [vmem:[#allocation17_spill] sm:$0xff] %v4738_v13  ;;  %v4740_v14 = vpop.f32.mrb[6].mxu0  ;;  %v4742_v15 = vpop.f32.mrb[6].mxu1 }
  0xf5   : > { %8842 = vst [vmem:[#allocation18_spill] sm:$0xff] %v4742_v15  ;;  %v4744_v16 = vpop.f32.mrb[7].mxu0  ;;  %v4746_v17 = vpop.f32.mrb[7].mxu1 }
  0xf6   : > { %8843 = vst [vmem:[#allocation19_spill] sm:$0xff] %v4746_v17 }
  0xfa   : > { %v4748_v18 = vpop.f32.mrb[8].mxu0  ;;  %v4750_v19 = vpop.f32.mrb[8].mxu1 }
  0xfb   : > { %8844 = vst [vmem:[#allocation20_spill] sm:$0xff] %v4750_v19  ;;  %v4752_v20 = vpop.f32.mrb[9].mxu0  ;;  %v4754_v21 = vpop.f32.mrb[9].mxu1 }
  0xfc   : > { %8845 = vst [vmem:[#allocation21_spill] sm:$0xff] %v4754_v21  ;;  %v4756_v22 = vpop.f32.mrb[10].mxu0  ;;  %v4758_v23 = vpop.f32.mrb[10].mxu1 }
  0xfd   : > { %8846 = vst [vmem:[#allocation22_spill] sm:$0xff] %v4758_v23  ;;  %v4760_v24 = vpop.f32.mrb[11].mxu0  ;;  %v4762_v25 = vpop.f32.mrb[11].mxu1 }
  0xfe   : > { %8847 = vst [vmem:[#allocation23_spill] sm:$0xff] %v4762_v25 }
 0x102   : > { %v4764_v26 = vpop.f32.mrb[12].mxu0  ;;  %v4766_v27 = vpop.f32.mrb[12].mxu1 }
 0x103   : > { %8848 = vst [vmem:[#allocation24_spill] sm:$0xff] %v4766_v27  ;;  %v4768_v28 = vpop.f32.mrb[13].mxu0  ;;  %v4770_v29 = vpop.f32.mrb[13].mxu1 }
 0x104   : > { %8849 = vst [vmem:[#allocation25_spill] sm:$0xff] %v4770_v29  ;;  %v4772_v30 = vpop.f32.mrb[14].mxu0  ;;  %v4774_v31 = vpop.f32.mrb[14].mxu1 }
 0x105   : > { %8850 = vst [vmem:[#allocation26_spill] sm:$0xff] %v4774_v31  ;;  %v4776_v32 = vpop.f32.mrb[15].mxu0  ;;  %v4778_v33 = vpop.f32.mrb[15].mxu1 }
 0x106   : > { %8851 = vst [vmem:[#allocation27_spill] sm:$0xff] %v4778_v33 }
 0x10a   : > { %v4780_v34 = vpop.f32.mrb[16].mxu0  ;;  %v4782_v35 = vpop.f32.mrb[16].mxu1 }
 0x10b   : > { %8852 = vst [vmem:[#allocation28_spill] sm:$0xff] %v4782_v35  ;;  %v4784_v36 = vpop.f32.mrb[17].mxu0  ;;  %v4786_v37 = vpop.f32.mrb[17].mxu1 }
 0x10c   : > { %8853 = vst [vmem:[#allocation29_spill] sm:$0xff] %v4786_v37  ;;  %v4788_v38 = vpop.f32.mrb[18].mxu0  ;;  %v4790_v39 = vpop.f32.mrb[18].mxu1 }
 0x10d   : > { %8854 = vst [vmem:[#allocation30_spill] sm:$0xff] %v4790_v39  ;;  %v4792_v40 = vpop.f32.mrb[19].mxu0  ;;  %v4794_v41 = vpop.f32.mrb[19].mxu1 }
 0x10e   : > { %8855 = vst [vmem:[#allocation31_spill] sm:$0xff] %v4794_v41 }
 0x112   : > { %v4796_v42 = vpop.f32.mrb[20].mxu0  ;;  %v4798_v43 = vpop.f32.mrb[20].mxu1 }
 0x113   : > { %8856 = vst [vmem:[#allocation32_spill] sm:$0xff] %v4798_v43  ;;  %v4800_v44 = vpop.f32.mrb[21].mxu0  ;;  %v4802_v45 = vpop.f32.mrb[21].mxu1 }
 0x114   : > { %8857 = vst [vmem:[#allocation33_spill] sm:$0xff] %v4802_v45  ;;  %v4804_v46 = vpop.f32.mrb[22].mxu0  ;;  %v4806_v47 = vpop.f32.mrb[22].mxu1 }
 0x115   : > { %8858 = vst [vmem:[#allocation34_spill] sm:$0xff] %v4806_v47  ;;  %v4808_v48 = vpop.f32.mrb[23].mxu0  ;;  %v4810_v49 = vpop.f32.mrb[23].mxu1 }
 0x116   : > { %8859 = vst [vmem:[#allocation35_spill] sm:$0xff] %v4810_v49 }
 0x11a   : > { %v4812_v50 = vpop.f32.mrb[24].mxu0  ;;  %v4814_v51 = vpop.f32.mrb[24].mxu1 }
 0x11b   : > { %8860 = vst [vmem:[#allocation36_spill] sm:$0xff] %v4814_v51  ;;  %v4816_v52 = vpop.f32.mrb[25].mxu0  ;;  %v4818_v53 = vpop.f32.mrb[25].mxu1 }
 0x11c   : > { %8861 = vst [vmem:[#allocation37_spill] sm:$0xff] %v4818_v53  ;;  %v4820_v54 = vpop.f32.mrb[26].mxu0  ;;  %v4822_v55 = vpop.f32.mrb[26].mxu1 }
 0x11d   : > { %8862 = vst [vmem:[#allocation38_spill] sm:$0xff] %v4822_v55  ;;  %v4824_v56 = vpop.f32.mrb[27].mxu0  ;;  %v4826_v57 = vpop.f32.mrb[27].mxu1 }
 0x11e   : > { %8863 = vst [vmem:[#allocation39_spill] sm:$0xff] %v4826_v57 }
 0x122   : > { %v4828_v58 = vpop.f32.mrb[28].mxu0  ;;  %v4830_v59 = vpop.f32.mrb[28].mxu1 }
 0x123   : > { %8864 = vst [vmem:[#allocation40_spill] sm:$0xff] %v4830_v59  ;;  %v4832_v60 = vpop.f32.mrb[29].mxu0  ;;  %v4834_v61 = vpop.f32.mrb[29].mxu1 }
 0x124   : > { %8865 = vst [vmem:[#allocation41_spill] sm:$0xff] %v4834_v61  ;;  %v4836_v62 = vpop.f32.mrb[30].mxu0  ;;  %v4838_v63 = vpop.f32.mrb[30].mxu1 }
 0x125   : > { %8866 = vst [vmem:[#allocation42_spill] sm:$0xff] %v4838_v63  ;;  %v4840_v0 = vpop.f32.mrb[31].mxu0  ;;  %v4842_v1 = vpop.f32.mrb[31].mxu1 }
 0x126   : > { %8867 = vst [vmem:[#allocation43_spill] sm:$0xff] %v4842_v1 }
 0x12a   : > { %v4844_v55 = vpop.f32.mrb[32].mxu0  ;;  %v4846_v51 = vpop.f32.mrb[32].mxu1 }
 0x12b   : > { %8868 = vst [vmem:[#allocation44_spill] sm:$0xff] %v4846_v51  ;;  %v4848_v57 = vpop.f32.mrb[33].mxu0  ;;  %v4850_v53 = vpop.f32.mrb[33].mxu1 }
 0x12c   : > { %8869 = vst [vmem:[#allocation45_spill] sm:$0xff] %v4850_v53  ;;  %v4852_v59 = vpop.f32.mrb[34].mxu0  ;;  %v4854_v47 = vpop.f32.mrb[34].mxu1 }
 0x12d   : > { %8870 = vst [vmem:[#allocation46_spill] sm:$0xff] %v4854_v47  ;;  %v4856_v61 = vpop.f32.mrb[35].mxu0  ;;  %v4858_v43 = vpop.f32.mrb[35].mxu1 }
 0x12e   : > { %8871 = vst [vmem:[#allocation47_spill] sm:$0xff] %v4858_v43 }
 0x132   : > { %v4860_v63 = vpop.f32.mrb[36].mxu0  ;;  %v4862_v49 = vpop.f32.mrb[36].mxu1 }
 0x133   : > { %8872 = vst [vmem:[#allocation48_spill] sm:$0xff] %v4862_v49  ;;  %v4864_v1 = vpop.f32.mrb[37].mxu0  ;;  %v4866_v45 = vpop.f32.mrb[37].mxu1 }
 0x134   : > { %8873 = vst [vmem:[#allocation49_spill] sm:$0xff] %v4866_v45  ;;  %v4868_v51 = vpop.f32.mrb[38].mxu0  ;;  %v4870_v39 = vpop.f32.mrb[38].mxu1 }
 0x135   : > { %8874 = vst [vmem:[#allocation50_spill] sm:$0xff] %v4870_v39  ;;  %v4872_v53 = vpop.f32.mrb[39].mxu0  ;;  %v4874_v35 = vpop.f32.mrb[39].mxu1 }
 0x136   : > { %8875 = vst [vmem:[#allocation51_spill] sm:$0xff] %v4874_v35 }
 0x13a   : > { %v4876_v47 = vpop.f32.mrb[40].mxu0  ;;  %v4878_v41 = vpop.f32.mrb[40].mxu1 }
 0x13b   : > { %8876 = vst [vmem:[#allocation52_spill] sm:$0xff] %v4876_v47  ;;  %8877 = vst [vmem:[#allocation53_spill] sm:$0xff] %v4878_v41  ;;  %v4880_v43 = vpop.f32.mrb[41].mxu0  ;;  %v4882_v37 = vpop.f32.mrb[41].mxu1 }
 0x13c   : > { %8878 = vst [vmem:[#allocation54_spill] sm:$0xff] %v4880_v43  ;;  %8879 = vst [vmem:[#allocation55_spill] sm:$0xff] %v4882_v37  ;;  %v4884_v49 = vpop.f32.mrb[42].mxu0  ;;  %v4886_v31 = vpop.f32.mrb[42].mxu1 }
 0x13d   : > { %8880 = vst [vmem:[#allocation56_spill] sm:$0xff] %v4884_v49  ;;  %8881 = vst [vmem:[#allocation57_spill] sm:$0xff] %v4886_v31  ;;  %v4888_v45 = vpop.f32.mrb[43].mxu0  ;;  %v4890_v27 = vpop.f32.mrb[43].mxu1 }
 0x13e   : > { %8882 = vst [vmem:[#allocation58_spill] sm:$0xff] %v4888_v45  ;;  %8883 = vst [vmem:[#allocation59_spill] sm:$0xff] %v4890_v27 }
 0x142   : > { %v4892_v39 = vpop.f32.mrb[44].mxu0  ;;  %v4894_v33 = vpop.f32.mrb[44].mxu1 }
 0x143   : > { %8884 = vst [vmem:[#allocation60_spill] sm:$0xff] %v4892_v39  ;;  %8885 = vst [vmem:[#allocation61_spill] sm:$0xff] %v4894_v33  ;;  %v4896_v35 = vpop.f32.mrb[45].mxu0  ;;  %v4898_v29 = vpop.f32.mrb[45].mxu1 }
 0x144   : > { %8886 = vst [vmem:[#allocation62_spill] sm:$0xff] %v4896_v35  ;;  %8887 = vst [vmem:[#allocation63_spill] sm:$0xff] %v4898_v29  ;;  %v4900_v41 = vpop.f32.mrb[46].mxu0  ;;  %v4902_v23 = vpop.f32.mrb[46].mxu1 }
 0x145   : > { %8888 = vst [vmem:[#allocation64_spill] sm:$0xff] %v4900_v41  ;;  %8889 = vst [vmem:[#allocation65_spill] sm:$0xff] %v4902_v23  ;;  %v4904_v37 = vpop.f32.mrb[47].mxu0  ;;  %v4906_v19 = vpop.f32.mrb[47].mxu1 }
 0x146   : > { %8890 = vst [vmem:[#allocation66_spill] sm:$0xff] %v4904_v37  ;;  %8891 = vst [vmem:[#allocation67_spill] sm:$0xff] %v4906_v19 }
 0x14a   : > { %v4908_v31 = vpop.f32.mrb[48].mxu0  ;;  %v4910_v25 = vpop.f32.mrb[48].mxu1 }
 0x14b   : > { %8892 = vst [vmem:[#allocation68_spill] sm:$0xff] %v4908_v31  ;;  %8893 = vst [vmem:[#allocation69_spill] sm:$0xff] %v4910_v25  ;;  %v4912_v27 = vpop.f32.mrb[49].mxu0  ;;  %v4914_v21 = vpop.f32.mrb[49].mxu1 }
 0x14c   : > { %8894 = vst [vmem:[#allocation70_spill] sm:$0xff] %v4912_v27  ;;  %8895 = vst [vmem:[#allocation71_spill] sm:$0xff] %v4914_v21  ;;  %v4916_v33 = vpop.f32.mrb[50].mxu0  ;;  %v4918_v15 = vpop.f32.mrb[50].mxu1 }
 0x14d   : > { %8896 = vst [vmem:[#allocation72_spill] sm:$0xff] %v4916_v33  ;;  %8897 = vst [vmem:[#allocation73_spill] sm:$0xff] %v4918_v15  ;;  %v4920_v29 = vpop.f32.mrb[51].mxu0  ;;  %v4922_v11 = vpop.f32.mrb[51].mxu1 }
 0x14e   : > { %8898 = vst [vmem:[#allocation74_spill] sm:$0xff] %v4920_v29  ;;  %8899 = vst [vmem:[#allocation75_spill] sm:$0xff] %v4922_v11 }
 0x152   : > { %v4924_v23 = vpop.f32.mrb[52].mxu0  ;;  %v4926_v17 = vpop.f32.mrb[52].mxu1 }
 0x153   : > { %8900 = vst [vmem:[#allocation76_spill] sm:$0xff] %v4924_v23  ;;  %8901 = vst [vmem:[#allocation77_spill] sm:$0xff] %v4926_v17  ;;  %v4928_v19 = vpop.f32.mrb[53].mxu0  ;;  %v4930_v13 = vpop.f32.mrb[53].mxu1 }
 0x154   : > { %8902 = vst [vmem:[#allocation78_spill] sm:$0xff] %v4928_v19  ;;  %8903 = vst [vmem:[#allocation79_spill] sm:$0xff] %v4930_v13  ;;  %v4932_v25 = vpop.f32.mrb[54].mxu0  ;;  %v4934_v7 = vpop.f32.mrb[54].mxu1 }
 0x155   : > { %8904 = vst [vmem:[#allocation80_spill] sm:$0xff] %v4932_v25  ;;  %8905 = vst [vmem:[#allocation81_spill] sm:$0xff] %v4934_v7  ;;  %v4936_v21 = vpop.f32.mrb[55].mxu0  ;;  %v4938_v3 = vpop.f32.mrb[55].mxu1 }
 0x156   : > { %8906 = vst [vmem:[#allocation82_spill] sm:$0xff] %v4936_v21  ;;  %8907 = vst [vmem:[#allocation83_spill] sm:$0xff] %v4938_v3 }
 0x15a   : > { %v4940_v15 = vpop.f32.mrb[56].mxu0  ;;  %v4942_v9 = vpop.f32.mrb[56].mxu1 }
 0x15b   : > { %8908 = vst [vmem:[#allocation84_spill] sm:$0xff] %v4940_v15  ;;  %8909 = vst [vmem:[#allocation85_spill] sm:$0xff] %v4942_v9  ;;  %v4944_v11 = vpop.f32.mrb[57].mxu0  ;;  %v4946_v5 = vpop.f32.mrb[57].mxu1 }
 0x15c   : > { %8910 = vst [vmem:[#allocation86_spill] sm:$0xff] %v4944_v11  ;;  %8911 = vst [vmem:[#allocation87_spill] sm:$0xff] %v4946_v5  ;;  %v4948_v17 = vpop.f32.mrb[58].mxu0  ;;  %v4950_v23 = vpop.f32.mrb[58].mxu1 }
 0x15d   : > { %8912 = vst [vmem:[#allocation88_spill] sm:$0xff] %v4948_v17  ;;  %8913 = vst [vmem:[#allocation89_spill] sm:$0xff] %v4950_v23  ;;  %v4952_v13 = vpop.f32.mrb[59].mxu0  ;;  %v4954_v25 = vpop.f32.mrb[59].mxu1  ;;  %v4393_v23 = vmov (%p1410_p4), 0.0  }
 0x15e   : > { %8914 = vst [vmem:[#allocation90_spill] sm:$0xff] %v4952_v13  ;;  %8915 = vst [vmem:[#allocation91_spill] sm:$0xff] %v4954_v25 }
 0x15f   : > { %1416 = vst [vmem:[#allocation2] sm:$0x1] (%p1410_p4), %v4393_v23  ;;  %1417 = vst [vmem:[#allocation3] sm:$0x1] (%p1410_p4), %v4393_v23 }
 0x160   : > { %1415 = sbr.rel (!%p1410_p4) target bundleno = 420 (0x1a4), region = 40  ;;  %1418 = vst [vmem:[#allocation6] sm:$0xff] (%p1410_p4), %v4393_v23  ;;  %1419 = vst [vmem:[#allocation6 + $0x8] sm:$0xff] (%p1410_p4), %v4393_v23 }
 0x161   : > { %1420 = vst [vmem:[#allocation6 + $0x10] sm:$0xff] (%p1410_p4), %v4393_v23  ;;  %1421 = vst [vmem:[#allocation6 + $0x18] sm:$0xff] (%p1410_p4), %v4393_v23 }
 0x162   : > { %v4956_v7 = vpop.f32.mrb[60].mxu0  ;;  %v4958_v21 = vpop.f32.mrb[60].mxu1  ;;  %1422 = vst [vmem:[#allocation6 + $0x20] sm:$0xff] (%p1410_p4), %v4393_v23  ;;  %1423 = vst [vmem:[#allocation6 + $0x28] sm:$0xff] (%p1410_p4), %v4393_v23 }
 0x163   : > { %8916 = vst [vmem:[#allocation92_spill] sm:$0xff] %v4956_v7  ;;  %8917 = vst [vmem:[#allocation93_spill] sm:$0xff] %v4958_v21  ;;  %v4960_v3 = vpop.f32.mrb[61].mxu0  ;;  %v4962_v15 = vpop.f32.mrb[61].mxu1 }
 0x164   : > { %8918 = vst [vmem:[#allocation94_spill] sm:$0xff] %v4960_v3  ;;  %8919 = vst [vmem:[#allocation95_spill] sm:$0xff] %v4962_v15  ;;  %v4964_v9 = vpop.f32.mrb[62].mxu0  ;;  %v4966_v11 = vpop.f32.mrb[62].mxu1 }
 0x165   : > { %8920 = vst [vmem:[#allocation96_spill] sm:$0xff] %v4964_v9  ;;  %8921 = vst [vmem:[#allocation97_spill] sm:$0xff] %v4966_v11  ;;  %v4968_v5 = vpop.f32.mrb[63].mxu0  ;;  %v4970_v17 = vpop.f32.mrb[63].mxu1 }
 0x166   : > { %8922 = vst [vmem:[#allocation98_spill] sm:$0xff] %v4968_v5  ;;  %8923 = vst [vmem:[#allocation99_spill] sm:$0xff] %v4970_v17 }
 0x167   : > { %1424 = vst [vmem:[#allocation6 + $0x30] sm:$0xff] %v4393_v23  ;;  %1425 = vst [vmem:[#allocation6 + $0x38] sm:$0xff] %v4393_v23 }
 0x168   : > { %1426 = vst [vmem:[#allocation6 + $0x40] sm:$0xff] %v4393_v23  ;;  %1427 = vst [vmem:[#allocation6 + $0x48] sm:$0xff] %v4393_v23 }
 0x169   : > { %1428 = vst [vmem:[#allocation6 + $0x50] sm:$0xff] %v4393_v23  ;;  %1429 = vst [vmem:[#allocation6 + $0x58] sm:$0xff] %v4393_v23 }
 0x16a   : > { %1430 = vst [vmem:[#allocation6 + $0x60] sm:$0xff] %v4393_v23  ;;  %1431 = vst [vmem:[#allocation6 + $0x68] sm:$0xff] %v4393_v23 }
 0x16b   : > { %1432 = vst [vmem:[#allocation6 + $0x70] sm:$0xff] %v4393_v23  ;;  %1433 = vst [vmem:[#allocation6 + $0x78] sm:$0xff] %v4393_v23 }
 0x16c   : > { %1434 = vst [vmem:[#allocation6 + $0x80] sm:$0xff] %v4393_v23  ;;  %1435 = vst [vmem:[#allocation6 + $0x88] sm:$0xff] %v4393_v23 }
 0x16d   : > { %1436 = vst [vmem:[#allocation6 + $0x90] sm:$0xff] %v4393_v23  ;;  %1437 = vst [vmem:[#allocation6 + $0x98] sm:$0xff] %v4393_v23 }
 0x16e   : > { %1438 = vst [vmem:[#allocation6 + $0xa0] sm:$0xff] %v4393_v23  ;;  %1439 = vst [vmem:[#allocation6 + $0xa8] sm:$0xff] %v4393_v23 }
 0x16f   : > { %1440 = vst [vmem:[#allocation6 + $0xb0] sm:$0xff] %v4393_v23  ;;  %1441 = vst [vmem:[#allocation6 + $0xb8] sm:$0xff] %v4393_v23 }
 0x170   : > { %1442 = vst [vmem:[#allocation6 + $0xc0] sm:$0xff] %v4393_v23  ;;  %1443 = vst [vmem:[#allocation6 + $0xc8] sm:$0xff] %v4393_v23 }
 0x171   : > { %1444 = vst [vmem:[#allocation6 + $0xd0] sm:$0xff] %v4393_v23  ;;  %1445 = vst [vmem:[#allocation6 + $0xd8] sm:$0xff] %v4393_v23 }
 0x172   : > { %1446 = vst [vmem:[#allocation6 + $0xe0] sm:$0xff] %v4393_v23  ;;  %1447 = vst [vmem:[#allocation6 + $0xe8] sm:$0xff] %v4393_v23 }
 0x173   : > { %1448 = vst [vmem:[#allocation6 + $0xf0] sm:$0xff] %v4393_v23  ;;  %1449 = vst [vmem:[#allocation6 + $0xf8] sm:$0xff] %v4393_v23 }
 0x174   : > { %1450 = vst [vmem:[#allocation6 + $0x100] sm:$0xff] %v4393_v23  ;;  %1451 = vst [vmem:[#allocation6 + $0x108] sm:$0xff] %v4393_v23 }
 0x175   : > { %1452 = vst [vmem:[#allocation6 + $0x110] sm:$0xff] %v4393_v23  ;;  %1453 = vst [vmem:[#allocation6 + $0x118] sm:$0xff] %v4393_v23 }
 0x176   : > { %1454 = vst [vmem:[#allocation6 + $0x120] sm:$0xff] %v4393_v23  ;;  %1455 = vst [vmem:[#allocation6 + $0x128] sm:$0xff] %v4393_v23 }
 0x177   : > { %1456 = vst [vmem:[#allocation6 + $0x130] sm:$0xff] %v4393_v23  ;;  %1457 = vst [vmem:[#allocation6 + $0x138] sm:$0xff] %v4393_v23 }
 0x178   : > { %1458 = vst [vmem:[#allocation6 + $0x140] sm:$0xff] %v4393_v23  ;;  %1459 = vst [vmem:[#allocation6 + $0x148] sm:$0xff] %v4393_v23 }
 0x179   : > { %1460 = vst [vmem:[#allocation6 + $0x150] sm:$0xff] %v4393_v23  ;;  %1461 = vst [vmem:[#allocation6 + $0x158] sm:$0xff] %v4393_v23 }
 0x17a   : > { %1462 = vst [vmem:[#allocation6 + $0x160] sm:$0xff] %v4393_v23  ;;  %1463 = vst [vmem:[#allocation6 + $0x168] sm:$0xff] %v4393_v23 }
 0x17b   : > { %1464 = vst [vmem:[#allocation6 + $0x170] sm:$0xff] %v4393_v23  ;;  %1465 = vst [vmem:[#allocation6 + $0x178] sm:$0xff] %v4393_v23 }
 0x17c   : > { %1466 = vst [vmem:[#allocation6 + $0x180] sm:$0xff] %v4393_v23  ;;  %1467 = vst [vmem:[#allocation6 + $0x188] sm:$0xff] %v4393_v23 }
 0x17d   : > { %1468 = vst [vmem:[#allocation6 + $0x190] sm:$0xff] %v4393_v23  ;;  %1469 = vst [vmem:[#allocation6 + $0x198] sm:$0xff] %v4393_v23 }
 0x17e   : > { %1470 = vst [vmem:[#allocation6 + $0x1a0] sm:$0xff] %v4393_v23  ;;  %1471 = vst [vmem:[#allocation6 + $0x1a8] sm:$0xff] %v4393_v23 }
 0x17f   : > { %1472 = vst [vmem:[#allocation6 + $0x1b0] sm:$0xff] %v4393_v23  ;;  %1473 = vst [vmem:[#allocation6 + $0x1b8] sm:$0xff] %v4393_v23 }
 0x180   : > { %1474 = vst [vmem:[#allocation6 + $0x1c0] sm:$0xff] %v4393_v23  ;;  %1475 = vst [vmem:[#allocation6 + $0x1c8] sm:$0xff] %v4393_v23 }
 0x181   : > { %1476 = vst [vmem:[#allocation6 + $0x1d0] sm:$0xff] %v4393_v23  ;;  %1477 = vst [vmem:[#allocation6 + $0x1d8] sm:$0xff] %v4393_v23 }
 0x182   : > { %1478 = vst [vmem:[#allocation6 + $0x1e0] sm:$0xff] %v4393_v23  ;;  %1479 = vst [vmem:[#allocation6 + $0x1e8] sm:$0xff] %v4393_v23 }
 0x183   : > { %1480 = vst [vmem:[#allocation6 + $0x1f0] sm:$0xff] %v4393_v23  ;;  %1481 = vst [vmem:[#allocation6 + $0x1f8] sm:$0xff] %v4393_v23 }
 0x184   : > { %1482 = vst [vmem:[#allocation6 + $0x200] sm:$0xff] %v4393_v23  ;;  %1483 = vst [vmem:[#allocation6 + $0x208] sm:$0xff] %v4393_v23 }
 0x185   : > { %1484 = vst [vmem:[#allocation6 + $0x210] sm:$0xff] %v4393_v23  ;;  %1485 = vst [vmem:[#allocation6 + $0x218] sm:$0xff] %v4393_v23 }
 0x186   : > { %1486 = vst [vmem:[#allocation6 + $0x220] sm:$0xff] %v4393_v23  ;;  %1487 = vst [vmem:[#allocation6 + $0x228] sm:$0xff] %v4393_v23 }
 0x187   : > { %1488 = vst [vmem:[#allocation6 + $0x230] sm:$0xff] %v4393_v23  ;;  %1489 = vst [vmem:[#allocation6 + $0x238] sm:$0xff] %v4393_v23 }
 0x188   : > { %1490 = vst [vmem:[#allocation6 + $0x240] sm:$0xff] %v4393_v23  ;;  %1491 = vst [vmem:[#allocation6 + $0x248] sm:$0xff] %v4393_v23 }
 0x189   : > { %1492 = vst [vmem:[#allocation6 + $0x250] sm:$0xff] %v4393_v23  ;;  %1493 = vst [vmem:[#allocation6 + $0x258] sm:$0xff] %v4393_v23 }
 0x18a   : > { %1494 = vst [vmem:[#allocation6 + $0x260] sm:$0xff] %v4393_v23  ;;  %1495 = vst [vmem:[#allocation6 + $0x268] sm:$0xff] %v4393_v23 }
 0x18b   : > { %1496 = vst [vmem:[#allocation6 + $0x270] sm:$0xff] %v4393_v23  ;;  %1497 = vst [vmem:[#allocation6 + $0x278] sm:$0xff] %v4393_v23 }
 0x18c   : > { %1498 = vst [vmem:[#allocation6 + $0x280] sm:$0xff] %v4393_v23  ;;  %1499 = vst [vmem:[#allocation6 + $0x288] sm:$0xff] %v4393_v23 }
 0x18d   : > { %1500 = vst [vmem:[#allocation6 + $0x290] sm:$0xff] %v4393_v23  ;;  %1501 = vst [vmem:[#allocation6 + $0x298] sm:$0xff] %v4393_v23 }
 0x18e   : > { %1502 = vst [vmem:[#allocation6 + $0x2a0] sm:$0xff] %v4393_v23  ;;  %1503 = vst [vmem:[#allocation6 + $0x2a8] sm:$0xff] %v4393_v23 }
 0x18f   : > { %1504 = vst [vmem:[#allocation6 + $0x2b0] sm:$0xff] %v4393_v23  ;;  %1505 = vst [vmem:[#allocation6 + $0x2b8] sm:$0xff] %v4393_v23 }
 0x190   : > { %1506 = vst [vmem:[#allocation6 + $0x2c0] sm:$0xff] %v4393_v23  ;;  %1507 = vst [vmem:[#allocation6 + $0x2c8] sm:$0xff] %v4393_v23 }
 0x191   : > { %1508 = vst [vmem:[#allocation6 + $0x2d0] sm:$0xff] %v4393_v23  ;;  %1509 = vst [vmem:[#allocation6 + $0x2d8] sm:$0xff] %v4393_v23 }
 0x192   : > { %1510 = vst [vmem:[#allocation6 + $0x2e0] sm:$0xff] %v4393_v23  ;;  %1511 = vst [vmem:[#allocation6 + $0x2e8] sm:$0xff] %v4393_v23 }
 0x193   : > { %1512 = vst [vmem:[#allocation6 + $0x2f0] sm:$0xff] %v4393_v23  ;;  %1513 = vst [vmem:[#allocation6 + $0x2f8] sm:$0xff] %v4393_v23 }
 0x194   : > { %1514 = vst [vmem:[#allocation6 + $0x300] sm:$0xff] %v4393_v23  ;;  %1515 = vst [vmem:[#allocation6 + $0x308] sm:$0xff] %v4393_v23 }
 0x195   : > { %1516 = vst [vmem:[#allocation6 + $0x310] sm:$0xff] %v4393_v23  ;;  %1517 = vst [vmem:[#allocation6 + $0x318] sm:$0xff] %v4393_v23 }
 0x196   : > { %1518 = vst [vmem:[#allocation6 + $0x320] sm:$0xff] %v4393_v23  ;;  %1519 = vst [vmem:[#allocation6 + $0x328] sm:$0xff] %v4393_v23 }
 0x197   : > { %1520 = vst [vmem:[#allocation6 + $0x330] sm:$0xff] %v4393_v23  ;;  %1521 = vst [vmem:[#allocation6 + $0x338] sm:$0xff] %v4393_v23 }
 0x198   : > { %1522 = vst [vmem:[#allocation6 + $0x340] sm:$0xff] %v4393_v23  ;;  %1523 = vst [vmem:[#allocation6 + $0x348] sm:$0xff] %v4393_v23 }
 0x199   : > { %1524 = vst [vmem:[#allocation6 + $0x350] sm:$0xff] %v4393_v23  ;;  %1525 = vst [vmem:[#allocation6 + $0x358] sm:$0xff] %v4393_v23 }
 0x19a   : > { %1526 = vst [vmem:[#allocation6 + $0x360] sm:$0xff] %v4393_v23  ;;  %1527 = vst [vmem:[#allocation6 + $0x368] sm:$0xff] %v4393_v23 }
 0x19b   : > { %1528 = vst [vmem:[#allocation6 + $0x370] sm:$0xff] %v4393_v23  ;;  %1529 = vst [vmem:[#allocation6 + $0x378] sm:$0xff] %v4393_v23 }
 0x19c   : > { %1530 = vst [vmem:[#allocation6 + $0x380] sm:$0xff] %v4393_v23  ;;  %1531 = vst [vmem:[#allocation6 + $0x388] sm:$0xff] %v4393_v23 }
 0x19d   : > { %1532 = vst [vmem:[#allocation6 + $0x390] sm:$0xff] %v4393_v23  ;;  %1533 = vst [vmem:[#allocation6 + $0x398] sm:$0xff] %v4393_v23 }
 0x19e   : > { %1534 = vst [vmem:[#allocation6 + $0x3a0] sm:$0xff] %v4393_v23  ;;  %1535 = vst [vmem:[#allocation6 + $0x3a8] sm:$0xff] %v4393_v23 }
 0x19f   : > { %1536 = vst [vmem:[#allocation6 + $0x3b0] sm:$0xff] %v4393_v23  ;;  %1537 = vst [vmem:[#allocation6 + $0x3b8] sm:$0xff] %v4393_v23 }
 0x1a0   : > { %1538 = vst [vmem:[#allocation6 + $0x3c0] sm:$0xff] %v4393_v23  ;;  %1539 = vst [vmem:[#allocation6 + $0x3c8] sm:$0xff] %v4393_v23 }
 0x1a1   : > { %1540 = vst [vmem:[#allocation6 + $0x3d0] sm:$0xff] %v4393_v23  ;;  %1541 = vst [vmem:[#allocation6 + $0x3d8] sm:$0xff] %v4393_v23 }
 0x1a2   : > { %1542 = vst [vmem:[#allocation6 + $0x3e0] sm:$0xff] %v4393_v23  ;;  %1543 = vst [vmem:[#allocation6 + $0x3e8] sm:$0xff] %v4393_v23 }
 0x1a3   : > { %1544 = vst [vmem:[#allocation6 + $0x3f0] sm:$0xff] %v4393_v23  ;;  %1545 = vst [vmem:[#allocation6 + $0x3f8] sm:$0xff] %v4393_v23 }
 0x1a4 PF: > { %p3890_p5 = scmp.ne.s32.totalorder %s4383_s20, 0 }
 0x1a5   : > { %v1550_v11 = vadd.f32 (!%p3890_p5), %v4728_v8, %v4720_v4  ;;  %v1686_v3 = vmul.f32 (!%p3890_p5), %v4720_v4, %v4720_v4 }
 0x1a6   : > { %1548 = sbr.rel (%p3890_p5) target bundleno = 704 (0x2c0), region = 44 }
 0x1a7   : > { %v1551_v21 = vadd.f32 (!%p3890_p5), %v4716_v2, %v1550_v11  ;;  %v1687_v11 = vmul.f32 (!%p3890_p5), %v4728_v8, %v4728_v8 }
 0x1a9   : > { %v1552_v17 = vadd.f32 (!%p3890_p5), %v4724_v6, %v1551_v21 }
 0x1ab   : > { %v1553_v15 = vadd.f32 (!%p3890_p5), %v1552_v17, %v4736_v12  ;;  %v1688_v17 = vmul.f32 (!%p3890_p5), %v4716_v2, %v4716_v2 }
 0x1ad   : > { %v1554_v25 = vadd.f32 %v1553_v15, %v4744_v16 }
 0x1af   : > { %v1555_v9 = vadd.f32 %v4732_v10, %v1554_v25  ;;  %v1814_v25 = vadd.f32 %v1687_v11, %v1686_v3  ;;  %v1693_v11 = vmul.f32 %v4740_v14, %v4740_v14 }
 0x1b1   : > { %v1556_v7 = vadd.f32 %v4740_v14, %v1555_v9  ;;  %v1689_v9 = vmul.f32 %v4724_v6, %v4724_v6  ;;  %v1815_v4 = vadd.f32 %v1814_v25, %v1688_v17  ;;  %v1694_v25 = vmul.f32 %v4752_v20, %v4752_v20 }
 0x1b3   : > { %v1557_v23 = vadd.f32 %v1556_v7, %v4752_v20  ;;  %v1816_v8 = vadd.f32 %v1815_v4, %v1689_v9 }
 0x1b5   : > { %v1558_v5 = vadd.f32 %v1557_v23, %v4760_v24  ;;  %v1690_v23 = vmul.f32 %v4736_v12, %v4736_v12 }
 0x1b7   : > { %v1559_v21 = vadd.f32 %v4748_v18, %v1558_v5  ;;  %v1691_v5 = vmul.f32 %v4744_v16, %v4744_v16  ;;  %v1817_v19 = vadd.f32 %v1816_v8, %v1690_v23 }
 0x1b9   : > { %v1560_v15 = vadd.f32 %v4756_v22, %v1559_v21  ;;  %v1692_v21 = vmul.f32 %v4732_v10, %v4732_v10 }
 0x1bb   : > { %v1561_v7 = vadd.f32 %v1560_v15, %v4768_v28  ;;  %v1818_v15 = vadd.f32 %v1817_v19, %v1691_v5  ;;  %v1697_v5 = vmul.f32 %v4756_v22, %v4756_v22 }
 0x1bd   : > { %v1562_v13 = vadd.f32 %v1561_v7, %v4776_v32  ;;  %v1819_v7 = vadd.f32 %v1818_v15, %v1692_v21  ;;  %v1698_v15 = vmul.f32 %v4768_v28, %v4768_v28 }
 0x1bf   : > { %v1563_v2 = vadd.f32 %v4764_v26, %v1562_v13  ;;  %v1695_v13 = vmul.f32 %v4760_v24, %v4760_v24  ;;  %v1820_v9 = vadd.f32 %v1819_v7, %v1693_v11  ;;  %v1699_v7 = vmul.f32 %v4776_v32, %v4776_v32 }
 0x1c1   : > { %v1564_v3 = vadd.f32 %v4772_v30, %v1563_v2  ;;  %v1696_v2 = vmul.f32 %v4748_v18, %v4748_v18  ;;  %v1821_v23 = vadd.f32 %v1820_v9, %v1694_v25  ;;  %v1700_v9 = vmul.f32 %v4764_v26, %v4764_v26 }
 0x1c3   : > { %v1565_v17 = vadd.f32 %v1564_v3, %v4784_v36  ;;  %v1822_v3 = vadd.f32 %v1821_v23, %v1695_v13  ;;  %v1701_v23 = vmul.f32 %v4772_v30, %v4772_v30 }
 0x1c5   : > { %v1566_v4 = vadd.f32 %v1565_v17, %v4792_v40  ;;  %v1823_v17 = vadd.f32 %v1822_v3, %v1696_v2  ;;  %v1702_v3 = vmul.f32 %v4784_v36, %v4784_v36 }
 0x1c7   : > { %v1567_v8 = vadd.f32 %v4780_v34, %v1566_v4  ;;  %v1824_v4 = vadd.f32 %v1823_v17, %v1697_v5  ;;  %v1703_v17 = vmul.f32 %v4792_v40, %v4792_v40 }
 0x1c9   : > { %v1568_v19 = vadd.f32 %v4788_v38, %v1567_v8  ;;  %v1825_v8 = vadd.f32 %v1824_v4, %v1698_v15  ;;  %v1704_v4 = vmul.f32 %v4780_v34, %v4780_v34 }
 0x1cb   : > { %v1569_v21 = vadd.f32 %v1568_v19, %v4800_v44  ;;  %v1826_v19 = vadd.f32 %v1825_v8, %v1699_v7  ;;  %v1705_v8 = vmul.f32 %v4788_v38, %v4788_v38 }
 0x1cd   : > { %v1570_v11 = vadd.f32 %v1569_v21, %v4808_v48  ;;  %v1827_v21 = vadd.f32 %v1826_v19, %v1700_v9  ;;  %v1706_v19 = vmul.f32 %v4800_v44, %v4800_v44 }
 0x1cf   : > { %v1571_v25 = vadd.f32 %v4796_v42, %v1570_v11  ;;  %v1828_v11 = vadd.f32 %v1827_v21, %v1701_v23  ;;  %v1707_v21 = vmul.f32 %v4808_v48, %v4808_v48 }
 0x1d1   : > { %v1572_v13 = vadd.f32 %v4804_v46, %v1571_v25  ;;  %v1829_v25 = vadd.f32 %v1828_v11, %v1702_v3  ;;  %v1708_v11 = vmul.f32 %v4796_v42, %v4796_v42 }
 0x1d3   : > { %v1573_v2 = vadd.f32 %v1572_v13, %v4816_v52  ;;  %v1830_v13 = vadd.f32 %v1829_v25, %v1703_v17  ;;  %v1709_v25 = vmul.f32 %v4804_v46, %v4804_v46 }
 0x1d5   : > { %v1574_v5 = vadd.f32 %v1573_v2, %v4824_v56  ;;  %v1831_v2 = vadd.f32 %v1830_v13, %v1704_v4  ;;  %v1710_v13 = vmul.f32 %v4816_v52, %v4816_v52 }
 0x1d7   : > { %v1575_v15 = vadd.f32 %v4812_v50, %v1574_v5  ;;  %v1832_v5 = vadd.f32 %v1831_v2, %v1705_v8  ;;  %v1711_v2 = vmul.f32 %v4824_v56, %v4824_v56 }
 0x1d9   : > { %v1576_v7 = vadd.f32 %v4820_v54, %v1575_v15  ;;  %v1833_v15 = vadd.f32 %v1832_v5, %v1706_v19  ;;  %v1712_v5 = vmul.f32 %v4812_v50, %v4812_v50 }
 0x1db   : > { %v1577_v9 = vadd.f32 %v1576_v7, %v4832_v60  ;;  %v1834_v7 = vadd.f32 %v1833_v15, %v1707_v21  ;;  %v1713_v15 = vmul.f32 %v4820_v54, %v4820_v54 }
 0x1dd   : > { %v1578_v23 = vadd.f32 %v1577_v9, %v4840_v0  ;;  %v1835_v9 = vadd.f32 %v1834_v7, %v1708_v11  ;;  %v1714_v7 = vmul.f32 %v4832_v60, %v4832_v60 }
 0x1df   : > { %v1579_v3 = vadd.f32 %v4828_v58, %v1578_v23  ;;  %v1836_v23 = vadd.f32 %v1835_v9, %v1709_v25  ;;  %v1715_v9 = vmul.f32 %v4840_v0, %v4840_v0 }
 0x1e1   : > { %v1580_v17 = vadd.f32 %v4836_v62, %v1579_v3  ;;  %v1837_v3 = vadd.f32 %v1836_v23, %v1710_v13  ;;  %v1716_v23 = vmul.f32 %v4828_v58, %v4828_v58 }
 0x1e3   : > { %v1581_v4 = vadd.f32 %v1580_v17, %v4848_v57  ;;  %v1838_v17 = vadd.f32 %v1837_v3, %v1711_v2  ;;  %v1717_v3 = vmul.f32 %v4836_v62, %v4836_v62 }
 0x1e5   : > { %v1582_v8 = vadd.f32 %v1581_v4, %v4856_v61  ;;  %v1839_v4 = vadd.f32 %v1838_v17, %v1712_v5  ;;  %v1718_v17 = vmul.f32 %v4848_v57, %v4848_v57 }
 0x1e7   : > { %v1583_v19 = vadd.f32 %v4844_v55, %v1582_v8  ;;  %v1840_v8 = vadd.f32 %v1839_v4, %v1713_v15  ;;  %v1719_v4 = vmul.f32 %v4856_v61, %v4856_v61 }
 0x1e9   : > { %v1584_v21 = vadd.f32 %v4852_v59, %v1583_v19  ;;  %v1841_v19 = vadd.f32 %v1840_v8, %v1714_v7  ;;  %v1720_v8 = vmul.f32 %v4844_v55, %v4844_v55 }
 0x1eb   : > { %v1585_v11 = vadd.f32 %v1584_v21, %v4864_v1  ;;  %v1842_v21 = vadd.f32 %v1841_v19, %v1715_v9  ;;  %v1721_v19 = vmul.f32 %v4852_v59, %v4852_v59 }
 0x1ed   : > { %v1586_v25 = vadd.f32 %v1585_v11, %v4872_v53  ;;  %v1843_v11 = vadd.f32 %v1842_v21, %v1716_v23  ;;  %v1722_v21 = vmul.f32 %v4864_v1, %v4864_v1 }
 0x1ef   : > { %v1587_v13 = vadd.f32 %v4860_v63, %v1586_v25  ;;  %v1844_v25 = vadd.f32 %v1843_v11, %v1717_v3  ;;  %v1723_v11 = vmul.f32 %v4872_v53, %v4872_v53 }
 0x1f1   : > { %v1588_v2 = vadd.f32 %v4868_v51, %v1587_v13  ;;  %v1845_v13 = vadd.f32 %v1844_v25, %v1718_v17  ;;  %v1724_v25 = vmul.f32 %v4860_v63, %v4860_v63 }
 0x1f3   : > { %v1589_v5 = vadd.f32 %v1588_v2, %v4880_v43  ;;  %v1846_v2 = vadd.f32 %v1845_v13, %v1719_v4  ;;  %v1725_v13 = vmul.f32 %v4868_v51, %v4868_v51 }
 0x1f5   : > { %v1590_v15 = vadd.f32 %v1589_v5, %v4888_v45  ;;  %v1847_v5 = vadd.f32 %v1846_v2, %v1720_v8  ;;  %v1726_v2 = vmul.f32 %v4880_v43, %v4880_v43  ;;  %v8924_v43 = vld [vmem:[#allocation78_spill] sm:$0xff] }
 0x1f7   : > { %v1591_v7 = vadd.f32 %v4876_v47, %v1590_v15  ;;  %v1848_v15 = vadd.f32 %v1847_v5, %v1721_v19  ;;  %v1727_v5 = vmul.f32 %v4888_v45, %v4888_v45  ;;  %v8925_v45 = vld [vmem:[#allocation82_spill] sm:$0xff] }
 0x1f9   : > { %v1592_v9 = vadd.f32 %v4884_v49, %v1591_v7  ;;  %v1849_v7 = vadd.f32 %v1848_v15, %v1722_v21  ;;  %v1728_v15 = vmul.f32 %v4876_v47, %v4876_v47  ;;  %v8926_v47 = vld [vmem:[#allocation76_spill] sm:$0xff] }
 0x1fb   : > { %v1593_v23 = vadd.f32 %v1592_v9, %v4896_v35  ;;  %v1850_v9 = vadd.f32 %v1849_v7, %v1723_v11  ;;  %v1729_v7 = vmul.f32 %v4884_v49, %v4884_v49  ;;  %v8927_v49 = vld [vmem:[#allocation80_spill] sm:$0xff] }
 0x1fd   : > { %v1594_v3 = vadd.f32 %v1593_v23, %v4904_v37  ;;  %v1851_v23 = vadd.f32 %v1850_v9, %v1724_v25  ;;  %v1730_v9 = vmul.f32 %v4896_v35, %v4896_v35  ;;  %v8928_v35 = vld [vmem:[#allocation86_spill] sm:$0xff] }
 0x1ff   : > { %v1595_v17 = vadd.f32 %v4892_v39, %v1594_v3  ;;  %v1852_v3 = vadd.f32 %v1851_v23, %v1725_v13  ;;  %v1731_v23 = vmul.f32 %v4904_v37, %v4904_v37  ;;  %v8929_v37 = vld [vmem:[#allocation90_spill] sm:$0xff] }
 0x201   : > { %v1596_v4 = vadd.f32 %v4900_v41, %v1595_v17  ;;  %v1853_v17 = vadd.f32 %v1852_v3, %v1726_v2  ;;  %v1732_v3 = vmul.f32 %v4892_v39, %v4892_v39  ;;  %v8930_v39 = vld [vmem:[#allocation84_spill] sm:$0xff] }
 0x203   : > { %v1597_v8 = vadd.f32 %v1596_v4, %v4912_v27  ;;  %v1854_v4 = vadd.f32 %v1853_v17, %v1727_v5  ;;  %v1733_v17 = vmul.f32 %v4900_v41, %v4900_v41  ;;  %v8931_v41 = vld [vmem:[#allocation88_spill] sm:$0xff] }
 0x205   : > { %v1598_v19 = vadd.f32 %v1597_v8, %v4920_v29  ;;  %v1855_v8 = vadd.f32 %v1854_v4, %v1728_v15  ;;  %v1734_v4 = vmul.f32 %v4912_v27, %v4912_v27  ;;  %v8932_v27 = vld [vmem:[#allocation94_spill] sm:$0xff] }
 0x207   : > { %v1599_v21 = vadd.f32 %v4908_v31, %v1598_v19  ;;  %v1856_v19 = vadd.f32 %v1855_v8, %v1729_v7  ;;  %v1735_v8 = vmul.f32 %v4920_v29, %v4920_v29  ;;  %v8933_v29 = vld [vmem:[#allocation98_spill] sm:$0xff] }
 0x209   : > { %v1600_v11 = vadd.f32 %v4916_v33, %v1599_v21  ;;  %v1857_v21 = vadd.f32 %v1856_v19, %v1730_v9  ;;  %v1736_v19 = vmul.f32 %v4908_v31, %v4908_v31  ;;  %v8934_v31 = vld [vmem:[#allocation92_spill] sm:$0xff] }
 0x20b   : > { %v1601_v25 = vadd.f32 %v1600_v11, %v8924_v43  ;;  %v1858_v11 = vadd.f32 %v1857_v21, %v1731_v23  ;;  %v1737_v21 = vmul.f32 %v4916_v33, %v4916_v33  ;;  %v8935_v33 = vld [vmem:[#allocation96_spill] sm:$0xff] }
 0x20d   : > { %v1602_v13 = vadd.f32 %v1601_v25, %v8925_v45  ;;  %v1859_v25 = vadd.f32 %v1858_v11, %v1732_v3  ;;  %v1738_v11 = vmul.f32 %v8924_v43, %v8924_v43  ;;  %v8936_v43 = vld [vmem:[#allocation12_spill] sm:$0xff] }
 0x20f   : > { %v1603_v2 = vadd.f32 %v8926_v47, %v1602_v13  ;;  %v1860_v13 = vadd.f32 %v1859_v25, %v1733_v17  ;;  %v1739_v25 = vmul.f32 %v8925_v45, %v8925_v45  ;;  %v8937_v45 = vld [vmem:[#allocation15_spill] sm:$0xff] }
 0x211   : > { %v1604_v5 = vadd.f32 %v8927_v49, %v1603_v2  ;;  %v1861_v2 = vadd.f32 %v1860_v13, %v1734_v4  ;;  %v1740_v13 = vmul.f32 %v8926_v47, %v8926_v47  ;;  %v8938_v47 = vld [vmem:[#allocation10_spill] sm:$0xff] }
 0x213   : > { %v1605_v15 = vadd.f32 %v1604_v5, %v8928_v35  ;;  %v1862_v5 = vadd.f32 %v1861_v2, %v1735_v8  ;;  %v1741_v2 = vmul.f32 %v8927_v49, %v8927_v49  ;;  %v8939_v49 = vld [vmem:[#allocation13_spill] sm:$0xff] }
 0x215   : > { %v1606_v7 = vadd.f32 %v1605_v15, %v8929_v37  ;;  %v1863_v15 = vadd.f32 %v1862_v5, %v1736_v19  ;;  %v1742_v5 = vmul.f32 %v8928_v35, %v8928_v35  ;;  %v8940_v35 = vld [vmem:[#allocation17_spill] sm:$0xff] }
 0x217   : > { %v1607_v9 = vadd.f32 %v8930_v39, %v1606_v7  ;;  %v1864_v7 = vadd.f32 %v1863_v15, %v1737_v21  ;;  %v1743_v15 = vmul.f32 %v8929_v37, %v8929_v37  ;;  %v8941_v37 = vld [vmem:[#allocation19_spill] sm:$0xff] }
 0x219   : > { %v1608_v23 = vadd.f32 %v8931_v41, %v1607_v9  ;;  %v1865_v9 = vadd.f32 %v1864_v7, %v1738_v11  ;;  %v1744_v7 = vmul.f32 %v8930_v39, %v8930_v39  ;;  %v8942_v39 = vld [vmem:[#allocation16_spill] sm:$0xff] }
 0x21b   : > { %v1609_v3 = vadd.f32 %v1608_v23, %v8932_v27  ;;  %v1866_v23 = vadd.f32 %v1865_v9, %v1739_v25  ;;  %v1745_v9 = vmul.f32 %v8931_v41, %v8931_v41  ;;  %v8943_v41 = vld [vmem:[#allocation18_spill] sm:$0xff] }
 0x21d   : > { %v1610_v17 = vadd.f32 %v1609_v3, %v8933_v29  ;;  %v1867_v3 = vadd.f32 %v1866_v23, %v1740_v13  ;;  %v1746_v23 = vmul.f32 %v8932_v27, %v8932_v27  ;;  %v8944_v27 = vld [vmem:[#allocation21_spill] sm:$0xff] }
 0x21f   : > { %v1611_v4 = vadd.f32 %v8934_v31, %v1610_v17  ;;  %v1868_v17 = vadd.f32 %v1867_v3, %v1741_v2  ;;  %v1747_v3 = vmul.f32 %v8933_v29, %v8933_v29  ;;  %v8945_v29 = vld [vmem:[#allocation23_spill] sm:$0xff] }
 0x221   : > { %v1612_v8 = vadd.f32 %v8935_v33, %v1611_v4  ;;  %v1869_v4 = vadd.f32 %v1868_v17, %v1742_v5  ;;  %v1748_v17 = vmul.f32 %v8934_v31, %v8934_v31  ;;  %v8946_v31 = vld [vmem:[#allocation20_spill] sm:$0xff] }
 0x223   : > { %v1613_v19 = vadd.f32 %v1612_v8, %v8936_v43  ;;  %v1870_v8 = vadd.f32 %v1869_v4, %v1743_v15  ;;  %v1749_v4 = vmul.f32 %v8935_v33, %v8935_v33  ;;  %v8947_v33 = vld [vmem:[#allocation22_spill] sm:$0xff] }
 0x225   : > { %v1614_v21 = vadd.f32 %v1613_v19, %v8937_v45  ;;  %v1871_v19 = vadd.f32 %v1870_v8, %v1744_v7  ;;  %v1750_v8 = vmul.f32 %v8936_v43, %v8936_v43  ;;  %v8948_v43 = vld [vmem:[#allocation25_spill] sm:$0xff] }
 0x227   : > { %v1615_v11 = vadd.f32 %v8938_v47, %v1614_v21  ;;  %v1872_v21 = vadd.f32 %v1871_v19, %v1745_v9  ;;  %v1751_v19 = vmul.f32 %v8937_v45, %v8937_v45  ;;  %v8949_v45 = vld [vmem:[#allocation27_spill] sm:$0xff] }
 0x229   : > { %v1616_v25 = vadd.f32 %v8939_v49, %v1615_v11  ;;  %v1873_v11 = vadd.f32 %v1872_v21, %v1746_v23  ;;  %v1752_v21 = vmul.f32 %v8938_v47, %v8938_v47  ;;  %v8950_v47 = vld [vmem:[#allocation24_spill] sm:$0xff] }
 0x22b   : > { %v1617_v13 = vadd.f32 %v1616_v25, %v8940_v35  ;;  %v1874_v25 = vadd.f32 %v1873_v11, %v1747_v3  ;;  %v1753_v11 = vmul.f32 %v8939_v49, %v8939_v49  ;;  %v8951_v49 = vld [vmem:[#allocation26_spill] sm:$0xff] }
 0x22d   : > { %v1618_v2 = vadd.f32 %v1617_v13, %v8941_v37  ;;  %v1875_v13 = vadd.f32 %v1874_v25, %v1748_v17  ;;  %v1754_v25 = vmul.f32 %v8940_v35, %v8940_v35  ;;  %v8952_v35 = vld [vmem:[#allocation29_spill] sm:$0xff] }
 0x22f   : > { %v1619_v5 = vadd.f32 %v8942_v39, %v1618_v2  ;;  %v1876_v2 = vadd.f32 %v1875_v13, %v1749_v4  ;;  %v1755_v13 = vmul.f32 %v8941_v37, %v8941_v37  ;;  %v8953_v37 = vld [vmem:[#allocation31_spill] sm:$0xff] }
 0x231   : > { %v1620_v15 = vadd.f32 %v8943_v41, %v1619_v5  ;;  %v1877_v5 = vadd.f32 %v1876_v2, %v1750_v8  ;;  %v1756_v2 = vmul.f32 %v8942_v39, %v8942_v39  ;;  %v8954_v39 = vld [vmem:[#allocation28_spill] sm:$0xff] }
 0x233   : > { %v1621_v7 = vadd.f32 %v1620_v15, %v8944_v27  ;;  %v1878_v15 = vadd.f32 %v1877_v5, %v1751_v19  ;;  %v1757_v5 = vmul.f32 %v8943_v41, %v8943_v41  ;;  %v8955_v41 = vld [vmem:[#allocation30_spill] sm:$0xff] }
 0x235   : > { %v1622_v9 = vadd.f32 %v1621_v7, %v8945_v29  ;;  %v1879_v7 = vadd.f32 %v1878_v15, %v1752_v21  ;;  %v1758_v15 = vmul.f32 %v8944_v27, %v8944_v27  ;;  %v8956_v27 = vld [vmem:[#allocation33_spill] sm:$0xff] }
 0x237   : > { %v1623_v23 = vadd.f32 %v8946_v31, %v1622_v9  ;;  %v1880_v9 = vadd.f32 %v1879_v7, %v1753_v11  ;;  %v1759_v7 = vmul.f32 %v8945_v29, %v8945_v29  ;;  %v8957_v29 = vld [vmem:[#allocation35_spill] sm:$0xff] }
 0x239   : > { %v1624_v3 = vadd.f32 %v8947_v33, %v1623_v23  ;;  %v1881_v23 = vadd.f32 %v1880_v9, %v1754_v25  ;;  %v1760_v9 = vmul.f32 %v8946_v31, %v8946_v31  ;;  %v8958_v31 = vld [vmem:[#allocation32_spill] sm:$0xff] }
 0x23b   : > { %v1625_v17 = vadd.f32 %v1624_v3, %v8948_v43  ;;  %v1882_v3 = vadd.f32 %v1881_v23, %v1755_v13  ;;  %v1761_v23 = vmul.f32 %v8947_v33, %v8947_v33  ;;  %v8959_v33 = vld [vmem:[#allocation34_spill] sm:$0xff] }
 0x23d   : > { %v1626_v4 = vadd.f32 %v1625_v17, %v8949_v45  ;;  %v1883_v17 = vadd.f32 %v1882_v3, %v1756_v2  ;;  %v1762_v3 = vmul.f32 %v8948_v43, %v8948_v43  ;;  %v8960_v43 = vld [vmem:[#allocation37_spill] sm:$0xff] }
 0x23f   : > { %v1627_v8 = vadd.f32 %v8950_v47, %v1626_v4  ;;  %v1884_v4 = vadd.f32 %v1883_v17, %v1757_v5  ;;  %v1763_v17 = vmul.f32 %v8949_v45, %v8949_v45  ;;  %v8961_v45 = vld [vmem:[#allocation39_spill] sm:$0xff] }
 0x241   : > { %v1628_v19 = vadd.f32 %v8951_v49, %v1627_v8  ;;  %v1885_v8 = vadd.f32 %v1884_v4, %v1758_v15  ;;  %v1764_v4 = vmul.f32 %v8950_v47, %v8950_v47  ;;  %v8962_v47 = vld [vmem:[#allocation36_spill] sm:$0xff] }
 0x243   : > { %v1629_v21 = vadd.f32 %v1628_v19, %v8952_v35  ;;  %v1886_v19 = vadd.f32 %v1885_v8, %v1759_v7  ;;  %v1765_v8 = vmul.f32 %v8951_v49, %v8951_v49  ;;  %v8963_v49 = vld [vmem:[#allocation38_spill] sm:$0xff] }
 0x245   : > { %v1630_v11 = vadd.f32 %v1629_v21, %v8953_v37  ;;  %v1887_v21 = vadd.f32 %v1886_v19, %v1760_v9  ;;  %v1766_v19 = vmul.f32 %v8952_v35, %v8952_v35  ;;  %v8964_v35 = vld [vmem:[#allocation41_spill] sm:$0xff] }
 0x247   : > { %v1631_v25 = vadd.f32 %v8954_v39, %v1630_v11  ;;  %v1888_v11 = vadd.f32 %v1887_v21, %v1761_v23  ;;  %v1767_v21 = vmul.f32 %v8953_v37, %v8953_v37  ;;  %v8965_v37 = vld [vmem:[#allocation43_spill] sm:$0xff] }
 0x249   : > { %v1632_v13 = vadd.f32 %v8955_v41, %v1631_v25  ;;  %v1889_v25 = vadd.f32 %v1888_v11, %v1762_v3  ;;  %v1768_v11 = vmul.f32 %v8954_v39, %v8954_v39  ;;  %v8966_v39 = vld [vmem:[#allocation40_spill] sm:$0xff] }
 0x24b   : > { %v1633_v2 = vadd.f32 %v1632_v13, %v8956_v27  ;;  %v1890_v13 = vadd.f32 %v1889_v25, %v1763_v17  ;;  %v1769_v25 = vmul.f32 %v8955_v41, %v8955_v41  ;;  %v8967_v41 = vld [vmem:[#allocation42_spill] sm:$0xff] }
 0x24d   : > { %v1634_v5 = vadd.f32 %v1633_v2, %v8957_v29  ;;  %v1891_v2 = vadd.f32 %v1890_v13, %v1764_v4  ;;  %v1770_v13 = vmul.f32 %v8956_v27, %v8956_v27  ;;  %v8968_v27 = vld [vmem:[#allocation45_spill] sm:$0xff] }
 0x24f   : > { %v1635_v15 = vadd.f32 %v8958_v31, %v1634_v5  ;;  %v1892_v5 = vadd.f32 %v1891_v2, %v1765_v8  ;;  %v1771_v2 = vmul.f32 %v8957_v29, %v8957_v29  ;;  %v8969_v29 = vld [vmem:[#allocation47_spill] sm:$0xff] }
 0x251   : > { %v1636_v7 = vadd.f32 %v8959_v33, %v1635_v15  ;;  %v1893_v15 = vadd.f32 %v1892_v5, %v1766_v19  ;;  %v1772_v5 = vmul.f32 %v8958_v31, %v8958_v31  ;;  %v8970_v31 = vld [vmem:[#allocation44_spill] sm:$0xff] }
 0x253   : > { %v1637_v9 = vadd.f32 %v1636_v7, %v8960_v43  ;;  %v1894_v7 = vadd.f32 %v1893_v15, %v1767_v21  ;;  %v1773_v15 = vmul.f32 %v8959_v33, %v8959_v33  ;;  %v8971_v33 = vld [vmem:[#allocation46_spill] sm:$0xff] }
 0x255   : > { %v1638_v23 = vadd.f32 %v1637_v9, %v8961_v45  ;;  %v1895_v9 = vadd.f32 %v1894_v7, %v1768_v11  ;;  %v1774_v7 = vmul.f32 %v8960_v43, %v8960_v43  ;;  %v8972_v43 = vld [vmem:[#allocation49_spill] sm:$0xff] }
 0x257   : > { %v1639_v3 = vadd.f32 %v8962_v47, %v1638_v23  ;;  %v1896_v23 = vadd.f32 %v1895_v9, %v1769_v25  ;;  %v1775_v9 = vmul.f32 %v8961_v45, %v8961_v45  ;;  %v8973_v45 = vld [vmem:[#allocation51_spill] sm:$0xff] }
 0x259   : > { %v1640_v17 = vadd.f32 %v8963_v49, %v1639_v3  ;;  %v1897_v3 = vadd.f32 %v1896_v23, %v1770_v13  ;;  %v1776_v23 = vmul.f32 %v8962_v47, %v8962_v47  ;;  %v8974_v47 = vld [vmem:[#allocation48_spill] sm:$0xff] }
 0x25b   : > { %v1641_v4 = vadd.f32 %v1640_v17, %v8964_v35  ;;  %v1898_v17 = vadd.f32 %v1897_v3, %v1771_v2  ;;  %v1777_v3 = vmul.f32 %v8963_v49, %v8963_v49  ;;  %v8975_v49 = vld [vmem:[#allocation50_spill] sm:$0xff] }
 0x25d   : > { %v1642_v8 = vadd.f32 %v1641_v4, %v8965_v37  ;;  %v1899_v4 = vadd.f32 %v1898_v17, %v1772_v5  ;;  %v1778_v17 = vmul.f32 %v8964_v35, %v8964_v35  ;;  %v8976_v35 = vld [vmem:[#allocation55_spill] sm:$0xff] }
 0x25f   : > { %v1643_v19 = vadd.f32 %v8966_v39, %v1642_v8  ;;  %v1900_v8 = vadd.f32 %v1899_v4, %v1773_v15  ;;  %v1779_v4 = vmul.f32 %v8965_v37, %v8965_v37  ;;  %v8977_v37 = vld [vmem:[#allocation59_spill] sm:$0xff] }
 0x261   : > { %v1644_v21 = vadd.f32 %v8967_v41, %v1643_v19  ;;  %v1901_v19 = vadd.f32 %v1900_v8, %v1774_v7  ;;  %v1780_v8 = vmul.f32 %v8966_v39, %v8966_v39  ;;  %v8978_v39 = vld [vmem:[#allocation53_spill] sm:$0xff] }
 0x263   : > { %v1645_v11 = vadd.f32 %v1644_v21, %v8968_v27  ;;  %v1902_v21 = vadd.f32 %v1901_v19, %v1775_v9  ;;  %v1781_v19 = vmul.f32 %v8967_v41, %v8967_v41  ;;  %v8979_v41 = vld [vmem:[#allocation57_spill] sm:$0xff] }
 0x265   : > { %v1646_v25 = vadd.f32 %v1645_v11, %v8969_v29  ;;  %v1903_v11 = vadd.f32 %v1902_v21, %v1776_v23  ;;  %v1782_v21 = vmul.f32 %v8968_v27, %v8968_v27  ;;  %v8980_v27 = vld [vmem:[#allocation63_spill] sm:$0xff] }
 0x267   : > { %v1647_v13 = vadd.f32 %v8970_v31, %v1646_v25  ;;  %v1904_v25 = vadd.f32 %v1903_v11, %v1777_v3  ;;  %v1783_v11 = vmul.f32 %v8969_v29, %v8969_v29  ;;  %v8981_v29 = vld [vmem:[#allocation67_spill] sm:$0xff] }
 0x269   : > { %v1648_v2 = vadd.f32 %v8971_v33, %v1647_v13  ;;  %v1905_v13 = vadd.f32 %v1904_v25, %v1778_v17  ;;  %v1784_v25 = vmul.f32 %v8970_v31, %v8970_v31  ;;  %v8982_v31 = vld [vmem:[#allocation61_spill] sm:$0xff] }
 0x26b   : > { %v1649_v5 = vadd.f32 %v1648_v2, %v8972_v43  ;;  %v1906_v2 = vadd.f32 %v1905_v13, %v1779_v4  ;;  %v1785_v13 = vmul.f32 %v8971_v33, %v8971_v33  ;;  %v8983_v33 = vld [vmem:[#allocation65_spill] sm:$0xff] }
 0x26d   : > { %v1650_v15 = vadd.f32 %v1649_v5, %v8973_v45  ;;  %v1907_v5 = vadd.f32 %v1906_v2, %v1780_v8  ;;  %v1786_v2 = vmul.f32 %v8972_v43, %v8972_v43  ;;  %v8984_v43 = vld [vmem:[#allocation71_spill] sm:$0xff] }
 0x26f   : > { %v1651_v7 = vadd.f32 %v8974_v47, %v1650_v15  ;;  %v1908_v15 = vadd.f32 %v1907_v5, %v1781_v19  ;;  %v1787_v5 = vmul.f32 %v8973_v45, %v8973_v45  ;;  %v8985_v45 = vld [vmem:[#allocation75_spill] sm:$0xff] }
 0x271   : > { %v1652_v9 = vadd.f32 %v8975_v49, %v1651_v7  ;;  %v1909_v7 = vadd.f32 %v1908_v15, %v1782_v21  ;;  %v1788_v15 = vmul.f32 %v8974_v47, %v8974_v47  ;;  %v8986_v47 = vld [vmem:[#allocation69_spill] sm:$0xff] }
 0x273   : > { %v1653_v23 = vadd.f32 %v1652_v9, %v8976_v35  ;;  %v1910_v9 = vadd.f32 %v1909_v7, %v1783_v11  ;;  %v1789_v7 = vmul.f32 %v8975_v49, %v8975_v49  ;;  %v8987_v49 = vld [vmem:[#allocation73_spill] sm:$0xff] }
 0x275   : > { %v1654_v3 = vadd.f32 %v1653_v23, %v8977_v37  ;;  %v1911_v23 = vadd.f32 %v1910_v9, %v1784_v25  ;;  %v1790_v9 = vmul.f32 %v8976_v35, %v8976_v35  ;;  %v8988_v35 = vld [vmem:[#allocation79_spill] sm:$0xff] }
 0x277   : > { %v1655_v17 = vadd.f32 %v8978_v39, %v1654_v3  ;;  %v1912_v3 = vadd.f32 %v1911_v23, %v1785_v13  ;;  %v1791_v23 = vmul.f32 %v8977_v37, %v8977_v37  ;;  %v8989_v37 = vld [vmem:[#allocation83_spill] sm:$0xff] }
 0x279   : > { %v1656_v4 = vadd.f32 %v8979_v41, %v1655_v17  ;;  %v1913_v17 = vadd.f32 %v1912_v3, %v1786_v2  ;;  %v1792_v3 = vmul.f32 %v8978_v39, %v8978_v39  ;;  %v8990_v39 = vld [vmem:[#allocation77_spill] sm:$0xff] }
 0x27b   : > { %v1657_v8 = vadd.f32 %v1656_v4, %v8980_v27  ;;  %v1914_v4 = vadd.f32 %v1913_v17, %v1787_v5  ;;  %v1793_v17 = vmul.f32 %v8979_v41, %v8979_v41  ;;  %v8991_v41 = vld [vmem:[#allocation81_spill] sm:$0xff] }
 0x27d   : > { %v1658_v19 = vadd.f32 %v1657_v8, %v8981_v29  ;;  %v1915_v8 = vadd.f32 %v1914_v4, %v1788_v15  ;;  %v1794_v4 = vmul.f32 %v8980_v27, %v8980_v27  ;;  %v8992_v27 = vld [vmem:[#allocation87_spill] sm:$0xff] }
 0x27f   : > { %v1659_v21 = vadd.f32 %v8982_v31, %v1658_v19  ;;  %v1916_v19 = vadd.f32 %v1915_v8, %v1789_v7  ;;  %v1795_v8 = vmul.f32 %v8981_v29, %v8981_v29  ;;  %v8993_v29 = vld [vmem:[#allocation91_spill] sm:$0xff] }
 0x281   : > { %v1660_v11 = vadd.f32 %v8983_v33, %v1659_v21  ;;  %v1917_v21 = vadd.f32 %v1916_v19, %v1790_v9  ;;  %v1796_v19 = vmul.f32 %v8982_v31, %v8982_v31  ;;  %v8994_v31 = vld [vmem:[#allocation85_spill] sm:$0xff] }
 0x283   : > { %v1661_v25 = vadd.f32 %v1660_v11, %v8984_v43  ;;  %v1918_v11 = vadd.f32 %v1917_v21, %v1791_v23  ;;  %v1797_v21 = vmul.f32 %v8983_v33, %v8983_v33  ;;  %v8995_v33 = vld [vmem:[#allocation89_spill] sm:$0xff] }
 0x285   : > { %v1662_v13 = vadd.f32 %v1661_v25, %v8985_v45  ;;  %v1919_v25 = vadd.f32 %v1918_v11, %v1792_v3  ;;  %v1798_v11 = vmul.f32 %v8984_v43, %v8984_v43  ;;  %v8996_v43 = vld [vmem:[#allocation95_spill] sm:$0xff] }
 0x287   : > { %v1663_v2 = vadd.f32 %v8986_v47, %v1662_v13  ;;  %v1920_v13 = vadd.f32 %v1919_v25, %v1793_v17  ;;  %v1799_v25 = vmul.f32 %v8985_v45, %v8985_v45  ;;  %v8997_v45 = vld [vmem:[#allocation99_spill] sm:$0xff] }
 0x289   : > { %v1664_v5 = vadd.f32 %v8987_v49, %v1663_v2  ;;  %v1921_v2 = vadd.f32 %v1920_v13, %v1794_v4  ;;  %v1800_v13 = vmul.f32 %v8986_v47, %v8986_v47  ;;  %v8998_v47 = vld [vmem:[#allocation93_spill] sm:$0xff] }
 0x28b   : > { %v1665_v15 = vadd.f32 %v1664_v5, %v8988_v35  ;;  %v1922_v5 = vadd.f32 %v1921_v2, %v1795_v8  ;;  %v1801_v2 = vmul.f32 %v8987_v49, %v8987_v49  ;;  %v8999_v49 = vld [vmem:[#allocation97_spill] sm:$0xff] }
 0x28d   : > { %v1666_v7 = vadd.f32 %v1665_v15, %v8989_v37  ;;  %v1923_v15 = vadd.f32 %v1922_v5, %v1796_v19  ;;  %v1802_v5 = vmul.f32 %v8988_v35, %v8988_v35 }
 0x28f   : > { %v1667_v9 = vadd.f32 %v8990_v39, %v1666_v7  ;;  %v1924_v7 = vadd.f32 %v1923_v15, %v1797_v21  ;;  %v1803_v15 = vmul.f32 %v8989_v37, %v8989_v37  ;;  %v1807_v37 = vmul.f32 %v8993_v29, %v8993_v29 }
 0x291   : > { %v1668_v23 = vadd.f32 %v8991_v41, %v1667_v9  ;;  %v1925_v9 = vadd.f32 %v1924_v7, %v1798_v11  ;;  %v1804_v7 = vmul.f32 %v8990_v39, %v8990_v39  ;;  %v1808_v39 = vmul.f32 %v8994_v31, %v8994_v31 }
 0x293   : > { %v1669_v3 = vadd.f32 %v1668_v23, %v8992_v27  ;;  %v1926_v23 = vadd.f32 %v1925_v9, %v1799_v25  ;;  %v1805_v9 = vmul.f32 %v8991_v41, %v8991_v41  ;;  %v1809_v41 = vmul.f32 %v8995_v33, %v8995_v33 }
 0x295   : > { %v1670_v17 = vadd.f32 %v1669_v3, %v8993_v29  ;;  %v1927_v3 = vadd.f32 %v1926_v23, %v1800_v13  ;;  %v1806_v13 = vmul.f32 %v8992_v27, %v8992_v27  ;;  %v1810_v27 = vmul.f32 %v8996_v43, %v8996_v43 }
 0x296   : > { %v1811_v29 = vmul.f32 %v8997_v45, %v8997_v45 }
 0x297   : > { %v1671_v4 = vadd.f32 %v8994_v31, %v1670_v17  ;;  %v1928_v17 = vadd.f32 %v1927_v3, %v1801_v2  ;;  %v1812_v31 = vmul.f32 %v8998_v47, %v8998_v47 }
 0x299   : > { %v1672_v8 = vadd.f32 %v8995_v33, %v1671_v4  ;;  %v1929_v4 = vadd.f32 %v1928_v17, %v1802_v5  ;;  %v1813_v33 = vmul.f32 %v8999_v49, %v8999_v49 }
 0x29b   : > { %v1673_v19 = vadd.f32 %v1672_v8, %v8996_v43  ;;  %v1930_v8 = vadd.f32 %v1929_v4, %v1803_v15 }
 0x29d   : > { %v1674_v21 = vadd.f32 %v1673_v19, %v8997_v45  ;;  %v1931_v23 = vadd.f32 %v1930_v8, %v1804_v7 }
 0x29f   : > { %v1675_v11 = vadd.f32 %v8998_v47, %v1674_v21  ;;  %v1932_v2 = vadd.f32 %v1931_v23, %v1805_v9 }
 0x2a1   : > { %v1676_v25 = vadd.f32 %v8999_v49, %v1675_v11  ;;  %v1933_v5 = vadd.f32 %v1932_v2, %v1806_v13  ;;  %v1549_v11 = vld [vmem:[#allocation2] sm:$0x1] }
 0x2a3   : > { %v1677_v35 = vrot.slane %v1676_v25, 4  ;;  %v1934_v15 = vadd.f32 %v1933_v5, %v1807_v37 }
 0x2a5   : > { %v1678_v19 = vadd.f32 %v1677_v35, %v1676_v25  ;;  %v1935_v7 = vadd.f32 %v1934_v15, %v1808_v39  ;;  %v1685_v39 = vld [vmem:[#allocation3] sm:$0x1] }
 0x2a7   : > { %v1679_v3 = vrot.slane %v1678_v19, 2  ;;  %v1936_v25 = vadd.f32 %v1935_v7, %v1809_v41 }
 0x2a9   : > { %v1680_v21 = vadd.f32 %v1679_v3, %v1678_v19  ;;  %v1937_v8 = vadd.f32 %v1936_v25, %v1810_v27 }
 0x2ab   : > { %v1681_v17 = vrot.slane %v1680_v21, 1  ;;  %v1938_v35 = vadd.f32 %v1937_v8, %v1811_v29 }
 0x2ad   : > { %v1682_v4 = vadd.f32 %v1681_v17, %v1680_v21  ;;  %v1939_v13 = vadd.f32 %v1938_v35, %v1812_v31 }
 0x2af   : > { %v1683_v9 = vadd.f32 %v1682_v4, %v1549_v11  ;;  %v1940_v23 = vadd.f32 %v1939_v13, %v1813_v33 }
 0x2b1   : > { %1684 = vst [vmem:[#allocation2] sm:$0x1] %v1683_v9  ;;  %v1941_v19 = vrot.slane %v1940_v23, 4 }
 0x2b3   : > { %v1942_v43 = vadd.f32 %v1941_v19, %v1940_v23 }
 0x2b5   : > { %v1943_v37 = vrot.slane %v1942_v43, 2 }
 0x2b7   : > { %v1944_v2 = vadd.f32 %v1943_v37, %v1942_v43 }
 0x2b9   : > { %v1945_v3 = vrot.slane %v1944_v2, 1 }
 0x2bb   : > { %v1946_v45 = vadd.f32 %v1945_v3, %v1944_v2 }
 0x2bd   : > { %v1947_v5 = vadd.f32 %v1946_v45, %v1685_v39 }
 0x2bf   : > { %1948 = vst [vmem:[#allocation3] sm:$0x1] %v1947_v5 }
 0x2c0 PF: > { %p3891_p6 = scmp.ne.s32.totalorder %s4383_s20, 1 }
 0x2c2   : > { %1952 = sbr.rel (%p3891_p6) target bundleno = 1193 (0x4a9), region = 48 }
 0x2c9   : > { %s1953_s17 = scvt.s32.f32 %s4454_s25  ;;  %s4394_s18 = smov 1.0   ;;  %v1967_v49 = vlaneseq  ;;  %v1955_v41 = vld [vmem:[#allocation2] sm:$0x1]  ;;  %v1959_v15 = vld [vmem:[#allocation3] sm:$0x1]  ;;  %v9001_v31 = vld [vmem:[#allocation11_spill] sm:$0xff] }
 0x2ca   : > { %v9002_v33 = vld [vmem:[#allocation14_spill] sm:$0xff]  ;;  %v9003_v13 = vld [vmem:[#allocation9_spill] sm:$0xff]  ;;  %v9090_v43 = vld [vmem:[#allocation99_spill] sm:$0xff]  ;;  %p3896_p7 = scmp.lt.s32.totalorder %s4454_s25, 1024 }
 0x2cb   : > { %s1954_s19 = smax.f32 %s4394_s18, %s1953_s17  ;;  %v5491_v21 = vshrl.u32 %v1967_v49, 7  ;;  %v9082_v37 = vld [vmem:[#allocation77_spill] sm:$0xff]  ;;  %v9089_v49 = vld [vmem:[#allocation95_spill] sm:$0xff] }
 0x2cc   : > { %v1956_v47 = vstv %s1954_s19  ;;  %v9086_v8 = vld [vmem:[#allocation85_spill] sm:$0xff] }
 0x2cd   : > { %4335 = vrcp.f32 %v1956_v47  ;;  %9000 = vst [vmem:[#allocation100_spill] sm:$0xff] %v5491_v21  ;;  %v8816_v17 = vsub.s32 0, %v5491_v21  ;;  %v9091_v23 = vld [vmem:[#allocation93_spill] sm:$0xff] }
 0x2ce   : > { %v9092_v35 = vld [vmem:[#allocation97_spill] sm:$0xff] }
 0x2d7   : > { %v4336_v11 = vpop.eup %4335 }
 0x2d8   : > { %v1958_v27 = vmul.f32 %v4336_v11, %v1955_v41  ;;  %v1960_v7 = vmul.f32 %v4336_v11, %v1959_v15  ;;  %v9005_v15 = vld [vmem:[#allocation58_spill] sm:$0xff]  ;;  %v9006_v11 = vld [vmem:[#allocation52_spill] sm:$0xff]  ;;  %v9088_v41 = vsub.s32 0, %v5491_v21 }
 0x2da   : > { %v1961_v4 = vmul.f32 %v1958_v27, %v1958_v27  ;;  %v5496_v29 = vrot.slane %v1958_v27, %v8816_v17  ;;  %v9007_v27 = vld [vmem:[#allocation56_spill] sm:$0xff]  ;;  %v9087_v17 = vld [vmem:[#allocation89_spill] sm:$0xff] }
 0x2dc   : > { %v1962_v25 = vsub.f32 %v1960_v7, %v1961_v4  ;;  %v9008_v7 = vld [vmem:[#allocation62_spill] sm:$0xff]  ;;  %v9093_v39 = vsub.f32 %v9001_v31, %v5496_v29  ;;  %v9095_v19 = vsub.f32 %v9003_v13, %v5496_v29  ;;  %v9096_v45 = vsub.f32 %v4724_v6, %v5496_v29 }
 0x2de   : > { %v1963_v9 = vmax.f32 %v1962_v25, 0.0  ;;  %v9010_v25 = vld [vmem:[#allocation60_spill] sm:$0xff] }
 0x2e0   : > { %v1964_v3 = vadd.f32 0.001, %v1963_v9  ;;  %v9004_v9 = vld [vmem:[#allocation54_spill] sm:$0xff] }
 0x2e2   : > { %4337 = vrsqrt.f32 %v1964_v3  ;;  %v9009_v3 = vld [vmem:[#allocation66_spill] sm:$0xff] }
 0x2ec   : > { %v5612_v4 = vpop.eup %4337 }
 0x2ed   : > { %v5751_v2 = vrot.slane %v5612_v4, %v9088_v41  ;;  %v9094_v41 = vsub.f32 %v9002_v33, %v5496_v29 }
 0x2ef   : > { %v5765_v21 = vmul.f32 %v5751_v2, %v9093_v39  ;;  %v5771_v4 = vmul.f32 %v5751_v2, %v9094_v41  ;;  %v5777_v5 = vmul.f32 %v5751_v2, %v9095_v19  ;;  %v5783_v31 = vmul.f32 %v5751_v2, %v9096_v45 }
 0x2f0   : > { %v9097_v39 = vsub.f32 %v4736_v12, %v5496_v29  ;;  %v9098_v41 = vsub.f32 %v4744_v16, %v5496_v29  ;;  %v9099_v19 = vsub.f32 %v4732_v10, %v5496_v29  ;;  %v9100_v45 = vsub.f32 %v4740_v14, %v5496_v29 }
 0x2f2   : > { %v5789_v33 = vmul.f32 %v5751_v2, %v9097_v39  ;;  %v5795_v13 = vmul.f32 %v5751_v2, %v9098_v41  ;;  %v5801_v6 = vmul.f32 %v5751_v2, %v9099_v19  ;;  %v5807_v12 = vmul.f32 %v5751_v2, %v9100_v45 }
 0x2f3   : > { %v9101_v39 = vsub.f32 %v4752_v20, %v5496_v29  ;;  %v9102_v41 = vsub.f32 %v4760_v24, %v5496_v29  ;;  %v9103_v19 = vsub.f32 %v4748_v18, %v5496_v29  ;;  %v9104_v45 = vsub.f32 %v4756_v22, %v5496_v29 }
 0x2f5   : > { %v5813_v16 = vmul.f32 %v5751_v2, %v9101_v39  ;;  %v5819_v10 = vmul.f32 %v5751_v2, %v9102_v41  ;;  %v5825_v14 = vmul.f32 %v5751_v2, %v9103_v19  ;;  %v5831_v20 = vmul.f32 %v5751_v2, %v9104_v45 }
 0x2f6   : > { %v9105_v39 = vsub.f32 %v4768_v28, %v5496_v29  ;;  %v9106_v41 = vsub.f32 %v4776_v32, %v5496_v29  ;;  %v9107_v19 = vsub.f32 %v4764_v26, %v5496_v29  ;;  %v9108_v45 = vsub.f32 %v4772_v30, %v5496_v29 }
 0x2f8   : > { %v5837_v24 = vmul.f32 %v5751_v2, %v9105_v39  ;;  %v5843_v18 = vmul.f32 %v5751_v2, %v9106_v41  ;;  %v5849_v22 = vmul.f32 %v5751_v2, %v9107_v19  ;;  %v5855_v28 = vmul.f32 %v5751_v2, %v9108_v45 }
 0x2f9   : > { %v9109_v39 = vsub.f32 %v4784_v36, %v5496_v29  ;;  %v9110_v41 = vsub.f32 %v4792_v40, %v5496_v29  ;;  %v9111_v19 = vsub.f32 %v4780_v34, %v5496_v29  ;;  %v9112_v45 = vsub.f32 %v4788_v38, %v5496_v29 }
 0x2fb   : > { %v5861_v32 = vmul.f32 %v5751_v2, %v9109_v39  ;;  %v5867_v26 = vmul.f32 %v5751_v2, %v9110_v41  ;;  %v5873_v30 = vmul.f32 %v5751_v2, %v9111_v19  ;;  %v5879_v36 = vmul.f32 %v5751_v2, %v9112_v45 }
 0x2fc   : > { %v9113_v39 = vsub.f32 %v4800_v44, %v5496_v29  ;;  %v9114_v41 = vsub.f32 %v4808_v48, %v5496_v29  ;;  %v9115_v19 = vsub.f32 %v4796_v42, %v5496_v29  ;;  %v9116_v45 = vsub.f32 %v4804_v46, %v5496_v29 }
 0x2fe   : > { %v5885_v40 = vmul.f32 %v5751_v2, %v9113_v39  ;;  %v5891_v34 = vmul.f32 %v5751_v2, %v9114_v41  ;;  %v5897_v38 = vmul.f32 %v5751_v2, %v9115_v19  ;;  %v5903_v44 = vmul.f32 %v5751_v2, %v9116_v45 }
 0x2ff   : > { %v9117_v39 = vsub.f32 %v4816_v52, %v5496_v29  ;;  %v9118_v41 = vsub.f32 %v4824_v56, %v5496_v29  ;;  %v9119_v19 = vsub.f32 %v4812_v50, %v5496_v29  ;;  %v9120_v45 = vsub.f32 %v4820_v54, %v5496_v29 }
 0x301   : > { %v5909_v48 = vmul.f32 %v5751_v2, %v9117_v39  ;;  %v5915_v42 = vmul.f32 %v5751_v2, %v9118_v41  ;;  %v5921_v46 = vmul.f32 %v5751_v2, %v9119_v19  ;;  %v5927_v52 = vmul.f32 %v5751_v2, %v9120_v45 }
 0x302   : > { %v9121_v39 = vsub.f32 %v4832_v60, %v5496_v29  ;;  %v9122_v41 = vsub.f32 %v4840_v0, %v5496_v29  ;;  %v9123_v19 = vsub.f32 %v4828_v58, %v5496_v29  ;;  %v9124_v45 = vsub.f32 %v4836_v62, %v5496_v29 }
 0x304   : > { %v5933_v56 = vmul.f32 %v5751_v2, %v9121_v39  ;;  %v5939_v50 = vmul.f32 %v5751_v2, %v9122_v41  ;;  %v5945_v54 = vmul.f32 %v5751_v2, %v9123_v19  ;;  %v5951_v60 = vmul.f32 %v5751_v2, %v9124_v45 }
 0x305   : > { %v9125_v39 = vsub.f32 %v4848_v57, %v5496_v29  ;;  %v9126_v41 = vsub.f32 %v4856_v61, %v5496_v29  ;;  %v9127_v19 = vsub.f32 %v4844_v55, %v5496_v29  ;;  %v9128_v45 = vsub.f32 %v4852_v59, %v5496_v29 }
 0x307   : > { %v5957_v0 = vmul.f32 %v5751_v2, %v9125_v39  ;;  %v5963_v58 = vmul.f32 %v5751_v2, %v9126_v41  ;;  %v5969_v62 = vmul.f32 %v5751_v2, %v9127_v19  ;;  %v5975_v57 = vmul.f32 %v5751_v2, %v9128_v45 }
 0x308   : > { %v9129_v39 = vsub.f32 %v4864_v1, %v5496_v29  ;;  %v9130_v41 = vsub.f32 %v4872_v53, %v5496_v29  ;;  %v9131_v19 = vsub.f32 %v4860_v63, %v5496_v29  ;;  %v9132_v45 = vsub.f32 %v4868_v51, %v5496_v29 }
 0x30a   : > { %v5981_v61 = vmul.f32 %v5751_v2, %v9129_v39  ;;  %v5987_v55 = vmul.f32 %v5751_v2, %v9130_v41  ;;  %v5993_v59 = vmul.f32 %v5751_v2, %v9131_v19  ;;  %v5999_v1 = vmul.f32 %v5751_v2, %v9132_v45 }
 0x30b   : > { %v9133_v39 = vsub.f32 %v9004_v9, %v5496_v29  ;;  %v9134_v41 = vsub.f32 %v9005_v15, %v5496_v29  ;;  %v9135_v19 = vsub.f32 %v9006_v11, %v5496_v29  ;;  %v9136_v45 = vsub.f32 %v9007_v27, %v5496_v29 }
 0x30d   : > { %v6005_v53 = vmul.f32 %v5751_v2, %v9133_v39  ;;  %v6011_v63 = vmul.f32 %v5751_v2, %v9134_v41  ;;  %v6017_v51 = vmul.f32 %v5751_v2, %v9135_v19  ;;  %v6023_v9 = vmul.f32 %v5751_v2, %v9136_v45  ;;  %v9143_v45 = vld [vmem:[#allocation64_spill] sm:$0xff] }
 0x30e   : > { %v9137_v39 = vsub.f32 %v9008_v7, %v5496_v29  ;;  %v9139_v41 = vsub.f32 %v9009_v3, %v5496_v29  ;;  %v9141_v19 = vsub.f32 %v9010_v25, %v5496_v29  ;;  %v9144_v47 = vsub.f32 %v9143_v45, %v5496_v29 }
 0x310   : > { %v6029_v15 = vmul.f32 %v5751_v2, %v9137_v39  ;;  %v6035_v11 = vmul.f32 %v5751_v2, %v9139_v41  ;;  %v6041_v27 = vmul.f32 %v5751_v2, %v9141_v19  ;;  %v6047_v7 = vmul.f32 %v5751_v2, %v9144_v47  ;;  %v9146_v39 = vld [vmem:[#allocation70_spill] sm:$0xff]  ;;  %v9152_v19 = vld [vmem:[#allocation68_spill] sm:$0xff] }
 0x311   : > { %v9149_v41 = vld [vmem:[#allocation74_spill] sm:$0xff]  ;;  %v9155_v47 = vld [vmem:[#allocation72_spill] sm:$0xff] }
 0x312   : > { %9138 = vst [vmem:[#allocation101_spill] sm:$0xff] %v6029_v15  ;;  %9140 = vst [vmem:[#allocation102_spill] sm:$0xff] %v6035_v11  ;;  %v9147_v15 = vsub.f32 %v9146_v39, %v5496_v29  ;;  %v9150_v11 = vsub.f32 %v9149_v41, %v5496_v29 }
 0x313   : > { %9142 = vst [vmem:[#allocation103_spill] sm:$0xff] %v6041_v27  ;;  %9145 = vst [vmem:[#allocation104_spill] sm:$0xff] %v6047_v7  ;;  %v9153_v27 = vsub.f32 %v9152_v19, %v5496_v29  ;;  %v9156_v7 = vsub.f32 %v9155_v47, %v5496_v29 }
 0x314   : > { %v6053_v3 = vmul.f32 %v5751_v2, %v9147_v15  ;;  %v6059_v25 = vmul.f32 %v5751_v2, %v9150_v11  ;;  %v9158_v15 = vld [vmem:[#allocation78_spill] sm:$0xff] }
 0x315   : > { %v6065_v45 = vmul.f32 %v5751_v2, %v9153_v27  ;;  %v6071_v39 = vmul.f32 %v5751_v2, %v9156_v7  ;;  %v9161_v11 = vld [vmem:[#allocation82_spill] sm:$0xff]  ;;  %v9164_v27 = vld [vmem:[#allocation76_spill] sm:$0xff] }
 0x316   : > { %9148 = vst [vmem:[#allocation105_spill] sm:$0xff] %v6053_v3  ;;  %9151 = vst [vmem:[#allocation106_spill] sm:$0xff] %v6059_v25  ;;  %v9159_v3 = vsub.f32 %v9158_v15, %v5496_v29  ;;  %v9162_v25 = vsub.f32 %v9161_v11, %v5496_v29  ;;  %v9167_v7 = vld [vmem:[#allocation80_spill] sm:$0xff] }
 0x317   : > { %9154 = vst [vmem:[#allocation107_spill] sm:$0xff] %v6065_v45  ;;  %9157 = vst [vmem:[#allocation108_spill] sm:$0xff] %v6071_v39  ;;  %v9165_v45 = vsub.f32 %v9164_v27, %v5496_v29  ;;  %v9168_v39 = vsub.f32 %v9167_v7, %v5496_v29 }
 0x318   : > { %v6077_v41 = vmul.f32 %v5751_v2, %v9159_v3  ;;  %v6083_v19 = vmul.f32 %v5751_v2, %v9162_v25  ;;  %v9170_v3 = vld [vmem:[#allocation86_spill] sm:$0xff] }
 0x319   : > { %v6089_v47 = vmul.f32 %v5751_v2, %v9165_v45  ;;  %v6095_v15 = vmul.f32 %v5751_v2, %v9168_v39  ;;  %v9173_v25 = vld [vmem:[#allocation90_spill] sm:$0xff]  ;;  %v9176_v45 = vld [vmem:[#allocation84_spill] sm:$0xff] }
 0x31a   : > { %9160 = vst [vmem:[#allocation109_spill] sm:$0xff] %v6077_v41  ;;  %9163 = vst [vmem:[#allocation110_spill] sm:$0xff] %v6083_v19  ;;  %v9171_v41 = vsub.f32 %v9170_v3, %v5496_v29  ;;  %v9174_v19 = vsub.f32 %v9173_v25, %v5496_v29  ;;  %v9179_v39 = vld [vmem:[#allocation88_spill] sm:$0xff] }
 0x31b   : > { %9166 = vst [vmem:[#allocation111_spill] sm:$0xff] %v6089_v47  ;;  %9169 = vst [vmem:[#allocation112_spill] sm:$0xff] %v6095_v15  ;;  %v9177_v47 = vsub.f32 %v9176_v45, %v5496_v29  ;;  %v9180_v15 = vsub.f32 %v9179_v39, %v5496_v29 }
 0x31c   : > { %v6101_v11 = vmul.f32 %v5751_v2, %v9171_v41  ;;  %v6107_v27 = vmul.f32 %v5751_v2, %v9174_v19  ;;  %v9182_v41 = vld [vmem:[#allocation94_spill] sm:$0xff] }
 0x31d   : > { %v6113_v7 = vmul.f32 %v5751_v2, %v9177_v47  ;;  %v6119_v3 = vmul.f32 %v5751_v2, %v9180_v15  ;;  %v9185_v19 = vld [vmem:[#allocation98_spill] sm:$0xff]  ;;  %v9188_v47 = vld [vmem:[#allocation92_spill] sm:$0xff] }
 0x31e   : > { %9172 = vst [vmem:[#allocation113_spill] sm:$0xff] %v6101_v11  ;;  %9175 = vst [vmem:[#allocation114_spill] sm:$0xff] %v6107_v27  ;;  %v9183_v11 = vsub.f32 %v9182_v41, %v5496_v29  ;;  %v9186_v27 = vsub.f32 %v9185_v19, %v5496_v29  ;;  %v9191_v15 = vld [vmem:[#allocation96_spill] sm:$0xff] }
 0x31f   : > { %9178 = vst [vmem:[#allocation115_spill] sm:$0xff] %v6113_v7  ;;  %9181 = vst [vmem:[#allocation116_spill] sm:$0xff] %v6119_v3  ;;  %v9189_v7 = vsub.f32 %v9188_v47, %v5496_v29  ;;  %v9192_v3 = vsub.f32 %v9191_v15, %v5496_v29 }
 0x320   : > { %v6125_v25 = vmul.f32 %v5751_v2, %v9183_v11  ;;  %v6131_v45 = vmul.f32 %v5751_v2, %v9186_v27  ;;  %v9194_v11 = vld [vmem:[#allocation12_spill] sm:$0xff]  ;;  %v9197_v27 = vld [vmem:[#allocation15_spill] sm:$0xff] }
 0x321   : > { %v6137_v39 = vmul.f32 %v5751_v2, %v9189_v7  ;;  %v6143_v41 = vmul.f32 %v5751_v2, %v9192_v3  ;;  %v9200_v7 = vld [vmem:[#allocation10_spill] sm:$0xff]  ;;  %v9203_v3 = vld [vmem:[#allocation13_spill] sm:$0xff] }
 0x322   : > { %9184 = vst [vmem:[#allocation117_spill] sm:$0xff] %v6125_v25  ;;  %9187 = vst [vmem:[#allocation118_spill] sm:$0xff] %v6131_v45  ;;  %v9195_v25 = vsub.f32 %v9194_v11, %v5496_v29  ;;  %v9198_v45 = vsub.f32 %v9197_v27, %v5496_v29 }
 0x323   : > { %9190 = vst [vmem:[#allocation119_spill] sm:$0xff] %v6137_v39  ;;  %9193 = vst [vmem:[#allocation120_spill] sm:$0xff] %v6143_v41  ;;  %v9201_v39 = vsub.f32 %v9200_v7, %v5496_v29  ;;  %v9204_v41 = vsub.f32 %v9203_v3, %v5496_v29 }
 0x324   : > { %v6149_v19 = vmul.f32 %v5751_v2, %v9195_v25  ;;  %v6155_v47 = vmul.f32 %v5751_v2, %v9198_v45  ;;  %v9206_v25 = vld [vmem:[#allocation17_spill] sm:$0xff]  ;;  %v9209_v45 = vld [vmem:[#allocation19_spill] sm:$0xff] }
 0x325   : > { %v6161_v15 = vmul.f32 %v5751_v2, %v9201_v39  ;;  %v6167_v11 = vmul.f32 %v5751_v2, %v9204_v41  ;;  %v9212_v39 = vld [vmem:[#allocation16_spill] sm:$0xff]  ;;  %v9215_v41 = vld [vmem:[#allocation18_spill] sm:$0xff] }
 0x326   : > { %9196 = vst [vmem:[#allocation121_spill] sm:$0xff] %v6149_v19  ;;  %9199 = vst [vmem:[#allocation122_spill] sm:$0xff] %v6155_v47  ;;  %v9207_v19 = vsub.f32 %v9206_v25, %v5496_v29  ;;  %v9210_v47 = vsub.f32 %v9209_v45, %v5496_v29 }
 0x327   : > { %9202 = vst [vmem:[#allocation123_spill] sm:$0xff] %v6161_v15  ;;  %9205 = vst [vmem:[#allocation124_spill] sm:$0xff] %v6167_v11  ;;  %v9213_v15 = vsub.f32 %v9212_v39, %v5496_v29  ;;  %v9216_v11 = vsub.f32 %v9215_v41, %v5496_v29 }
 0x328   : > { %v6173_v27 = vmul.f32 %v5751_v2, %v9207_v19  ;;  %v6179_v7 = vmul.f32 %v5751_v2, %v9210_v47  ;;  %v9218_v19 = vld [vmem:[#allocation21_spill] sm:$0xff]  ;;  %v9221_v47 = vld [vmem:[#allocation23_spill] sm:$0xff] }
 0x329   : > { %v6185_v3 = vmul.f32 %v5751_v2, %v9213_v15  ;;  %v6191_v25 = vmul.f32 %v5751_v2, %v9216_v11  ;;  %v9224_v15 = vld [vmem:[#allocation20_spill] sm:$0xff]  ;;  %v9227_v11 = vld [vmem:[#allocation22_spill] sm:$0xff] }
 0x32a   : > { %9208 = vst [vmem:[#allocation125_spill] sm:$0xff] %v6173_v27  ;;  %9211 = vst [vmem:[#allocation126_spill] sm:$0xff] %v6179_v7  ;;  %v9219_v27 = vsub.f32 %v9218_v19, %v5496_v29  ;;  %v9222_v7 = vsub.f32 %v9221_v47, %v5496_v29 }
 0x32b   : > { %9214 = vst [vmem:[#allocation127_spill] sm:$0xff] %v6185_v3  ;;  %9217 = vst [vmem:[#allocation128_spill] sm:$0xff] %v6191_v25  ;;  %v9225_v3 = vsub.f32 %v9224_v15, %v5496_v29  ;;  %v9228_v25 = vsub.f32 %v9227_v11, %v5496_v29 }
 0x32c   : > { %v6197_v45 = vmul.f32 %v5751_v2, %v9219_v27  ;;  %v6203_v39 = vmul.f32 %v5751_v2, %v9222_v7  ;;  %v9230_v27 = vld [vmem:[#allocation25_spill] sm:$0xff]  ;;  %v9233_v7 = vld [vmem:[#allocation27_spill] sm:$0xff] }
 0x32d   : > { %v6209_v41 = vmul.f32 %v5751_v2, %v9225_v3  ;;  %v6215_v19 = vmul.f32 %v5751_v2, %v9228_v25  ;;  %v9236_v3 = vld [vmem:[#allocation24_spill] sm:$0xff]  ;;  %v9239_v25 = vld [vmem:[#allocation26_spill] sm:$0xff] }
 0x32e   : > { %9220 = vst [vmem:[#allocation129_spill] sm:$0xff] %v6197_v45  ;;  %9223 = vst [vmem:[#allocation130_spill] sm:$0xff] %v6203_v39  ;;  %v9231_v45 = vsub.f32 %v9230_v27, %v5496_v29  ;;  %v9234_v39 = vsub.f32 %v9233_v7, %v5496_v29 }
 0x32f   : > { %9226 = vst [vmem:[#allocation131_spill] sm:$0xff] %v6209_v41  ;;  %9229 = vst [vmem:[#allocation132_spill] sm:$0xff] %v6215_v19  ;;  %v9237_v41 = vsub.f32 %v9236_v3, %v5496_v29  ;;  %v9240_v19 = vsub.f32 %v9239_v25, %v5496_v29 }
 0x330   : > { %v6221_v47 = vmul.f32 %v5751_v2, %v9231_v45  ;;  %v6227_v15 = vmul.f32 %v5751_v2, %v9234_v39  ;;  %v9242_v45 = vld [vmem:[#allocation29_spill] sm:$0xff]  ;;  %v9245_v39 = vld [vmem:[#allocation31_spill] sm:$0xff] }
 0x331   : > { %v6233_v11 = vmul.f32 %v5751_v2, %v9237_v41  ;;  %v6239_v27 = vmul.f32 %v5751_v2, %v9240_v19  ;;  %v9248_v41 = vld [vmem:[#allocation28_spill] sm:$0xff]  ;;  %v9251_v19 = vld [vmem:[#allocation30_spill] sm:$0xff] }
 0x332   : > { %9232 = vst [vmem:[#allocation133_spill] sm:$0xff] %v6221_v47  ;;  %9235 = vst [vmem:[#allocation134_spill] sm:$0xff] %v6227_v15  ;;  %v9243_v47 = vsub.f32 %v9242_v45, %v5496_v29  ;;  %v9246_v15 = vsub.f32 %v9245_v39, %v5496_v29 }
 0x333   : > { %9238 = vst [vmem:[#allocation135_spill] sm:$0xff] %v6233_v11  ;;  %9241 = vst [vmem:[#allocation136_spill] sm:$0xff] %v6239_v27  ;;  %v9249_v11 = vsub.f32 %v9248_v41, %v5496_v29  ;;  %v9252_v27 = vsub.f32 %v9251_v19, %v5496_v29 }
 0x334   : > { %v6245_v7 = vmul.f32 %v5751_v2, %v9243_v47  ;;  %v6251_v3 = vmul.f32 %v5751_v2, %v9246_v15  ;;  %v9254_v47 = vld [vmem:[#allocation33_spill] sm:$0xff]  ;;  %v9257_v15 = vld [vmem:[#allocation35_spill] sm:$0xff] }
 0x335   : > { %v6257_v25 = vmul.f32 %v5751_v2, %v9249_v11  ;;  %v6263_v45 = vmul.f32 %v5751_v2, %v9252_v27  ;;  %v9260_v11 = vld [vmem:[#allocation32_spill] sm:$0xff]  ;;  %v9263_v27 = vld [vmem:[#allocation34_spill] sm:$0xff] }
 0x336   : > { %9244 = vst [vmem:[#allocation137_spill] sm:$0xff] %v6245_v7  ;;  %9247 = vst [vmem:[#allocation138_spill] sm:$0xff] %v6251_v3  ;;  %v9255_v7 = vsub.f32 %v9254_v47, %v5496_v29  ;;  %v9258_v3 = vsub.f32 %v9257_v15, %v5496_v29 }
 0x337   : > { %9250 = vst [vmem:[#allocation139_spill] sm:$0xff] %v6257_v25  ;;  %9253 = vst [vmem:[#allocation140_spill] sm:$0xff] %v6263_v45  ;;  %v9261_v25 = vsub.f32 %v9260_v11, %v5496_v29  ;;  %v9264_v45 = vsub.f32 %v9263_v27, %v5496_v29 }
 0x338   : > { %v6269_v39 = vmul.f32 %v5751_v2, %v9255_v7  ;;  %v6275_v41 = vmul.f32 %v5751_v2, %v9258_v3  ;;  %v9266_v7 = vld [vmem:[#allocation37_spill] sm:$0xff]  ;;  %v9269_v3 = vld [vmem:[#allocation39_spill] sm:$0xff] }
 0x339   : > { %v6281_v19 = vmul.f32 %v5751_v2, %v9261_v25  ;;  %v6287_v47 = vmul.f32 %v5751_v2, %v9264_v45  ;;  %v9272_v25 = vld [vmem:[#allocation36_spill] sm:$0xff]  ;;  %v9275_v45 = vld [vmem:[#allocation38_spill] sm:$0xff] }
 0x33a   : > { %9256 = vst [vmem:[#allocation141_spill] sm:$0xff] %v6269_v39  ;;  %9259 = vst [vmem:[#allocation142_spill] sm:$0xff] %v6275_v41  ;;  %v9267_v39 = vsub.f32 %v9266_v7, %v5496_v29  ;;  %v9270_v41 = vsub.f32 %v9269_v3, %v5496_v29 }
 0x33b   : > { %9262 = vst [vmem:[#allocation143_spill] sm:$0xff] %v6281_v19  ;;  %9265 = vst [vmem:[#allocation144_spill] sm:$0xff] %v6287_v47  ;;  %v9273_v19 = vsub.f32 %v9272_v25, %v5496_v29  ;;  %v9276_v47 = vsub.f32 %v9275_v45, %v5496_v29 }
 0x33c   : > { %v6293_v15 = vmul.f32 %v5751_v2, %v9267_v39  ;;  %v6299_v11 = vmul.f32 %v5751_v2, %v9270_v41  ;;  %v9278_v39 = vld [vmem:[#allocation41_spill] sm:$0xff]  ;;  %v9281_v41 = vld [vmem:[#allocation43_spill] sm:$0xff] }
 0x33d   : > { %v6305_v27 = vmul.f32 %v5751_v2, %v9273_v19  ;;  %v6311_v7 = vmul.f32 %v5751_v2, %v9276_v47  ;;  %v9284_v19 = vld [vmem:[#allocation40_spill] sm:$0xff]  ;;  %v9287_v47 = vld [vmem:[#allocation42_spill] sm:$0xff] }
 0x33e   : > { %9268 = vst [vmem:[#allocation145_spill] sm:$0xff] %v6293_v15  ;;  %9271 = vst [vmem:[#allocation146_spill] sm:$0xff] %v6299_v11  ;;  %v9279_v15 = vsub.f32 %v9278_v39, %v5496_v29  ;;  %v9282_v11 = vsub.f32 %v9281_v41, %v5496_v29 }
 0x33f   : > { %9274 = vst [vmem:[#allocation147_spill] sm:$0xff] %v6305_v27  ;;  %9277 = vst [vmem:[#allocation148_spill] sm:$0xff] %v6311_v7  ;;  %v9285_v27 = vsub.f32 %v9284_v19, %v5496_v29  ;;  %v9288_v7 = vsub.f32 %v9287_v47, %v5496_v29 }
 0x340   : > { %v6317_v3 = vmul.f32 %v5751_v2, %v9279_v15  ;;  %v6323_v25 = vmul.f32 %v5751_v2, %v9282_v11  ;;  %v9290_v15 = vld [vmem:[#allocation45_spill] sm:$0xff]  ;;  %v9293_v11 = vld [vmem:[#allocation47_spill] sm:$0xff] }
 0x341   : > { %v6329_v45 = vmul.f32 %v5751_v2, %v9285_v27  ;;  %v6335_v39 = vmul.f32 %v5751_v2, %v9288_v7  ;;  %v9296_v27 = vld [vmem:[#allocation44_spill] sm:$0xff]  ;;  %v9299_v7 = vld [vmem:[#allocation46_spill] sm:$0xff] }
 0x342   : > { %9280 = vst [vmem:[#allocation149_spill] sm:$0xff] %v6317_v3  ;;  %9283 = vst [vmem:[#allocation150_spill] sm:$0xff] %v6323_v25  ;;  %v9291_v3 = vsub.f32 %v9290_v15, %v5496_v29  ;;  %v9294_v25 = vsub.f32 %v9293_v11, %v5496_v29 }
 0x343   : > { %9286 = vst [vmem:[#allocation151_spill] sm:$0xff] %v6329_v45  ;;  %9289 = vst [vmem:[#allocation152_spill] sm:$0xff] %v6335_v39  ;;  %v9297_v45 = vsub.f32 %v9296_v27, %v5496_v29  ;;  %v9300_v39 = vsub.f32 %v9299_v7, %v5496_v29 }
 0x344   : > { %v6341_v41 = vmul.f32 %v5751_v2, %v9291_v3  ;;  %v6347_v19 = vmul.f32 %v5751_v2, %v9294_v25  ;;  %v9302_v3 = vld [vmem:[#allocation49_spill] sm:$0xff]  ;;  %v9305_v25 = vld [vmem:[#allocation51_spill] sm:$0xff] }
 0x345   : > { %v6353_v47 = vmul.f32 %v5751_v2, %v9297_v45  ;;  %v6359_v15 = vmul.f32 %v5751_v2, %v9300_v39  ;;  %v9308_v45 = vld [vmem:[#allocation48_spill] sm:$0xff]  ;;  %v9311_v39 = vld [vmem:[#allocation50_spill] sm:$0xff] }
 0x346   : > { %9292 = vst [vmem:[#allocation153_spill] sm:$0xff] %v6341_v41  ;;  %9295 = vst [vmem:[#allocation154_spill] sm:$0xff] %v6347_v19  ;;  %v9303_v41 = vsub.f32 %v9302_v3, %v5496_v29  ;;  %v9306_v19 = vsub.f32 %v9305_v25, %v5496_v29 }
 0x347   : > { %9298 = vst [vmem:[#allocation155_spill] sm:$0xff] %v6353_v47  ;;  %9301 = vst [vmem:[#allocation156_spill] sm:$0xff] %v6359_v15  ;;  %v9309_v47 = vsub.f32 %v9308_v45, %v5496_v29  ;;  %v9312_v15 = vsub.f32 %v9311_v39, %v5496_v29 }
 0x348   : > { %v6365_v11 = vmul.f32 %v5751_v2, %v9303_v41  ;;  %v6371_v27 = vmul.f32 %v5751_v2, %v9306_v19  ;;  %v9314_v41 = vld [vmem:[#allocation55_spill] sm:$0xff] }
 0x349   : > { %v6377_v7 = vmul.f32 %v5751_v2, %v9309_v47  ;;  %v6383_v3 = vmul.f32 %v5751_v2, %v9312_v15  ;;  %v9317_v19 = vld [vmem:[#allocation59_spill] sm:$0xff]  ;;  %v9320_v47 = vld [vmem:[#allocation53_spill] sm:$0xff] }
 0x34a   : > { %9304 = vst [vmem:[#allocation157_spill] sm:$0xff] %v6365_v11  ;;  %9307 = vst [vmem:[#allocation158_spill] sm:$0xff] %v6371_v27  ;;  %v9315_v11 = vsub.f32 %v9314_v41, %v5496_v29  ;;  %v9318_v27 = vsub.f32 %v9317_v19, %v5496_v29  ;;  %v9323_v15 = vld [vmem:[#allocation57_spill] sm:$0xff] }
 0x34b   : > { %9310 = vst [vmem:[#allocation159_spill] sm:$0xff] %v6377_v7  ;;  %9313 = vst [vmem:[#allocation160_spill] sm:$0xff] %v6383_v3  ;;  %v9321_v7 = vsub.f32 %v9320_v47, %v5496_v29  ;;  %v9324_v3 = vsub.f32 %v9323_v15, %v5496_v29 }
 0x34c   : > { %v6389_v25 = vmul.f32 %v5751_v2, %v9315_v11  ;;  %v6395_v45 = vmul.f32 %v5751_v2, %v9318_v27  ;;  %v9326_v11 = vld [vmem:[#allocation63_spill] sm:$0xff] }
 0x34d   : > { %v6401_v39 = vmul.f32 %v5751_v2, %v9321_v7  ;;  %v6407_v41 = vmul.f32 %v5751_v2, %v9324_v3  ;;  %v9329_v27 = vld [vmem:[#allocation67_spill] sm:$0xff]  ;;  %v9332_v7 = vld [vmem:[#allocation61_spill] sm:$0xff] }
 0x34e   : > { %9316 = vst [vmem:[#allocation161_spill] sm:$0xff] %v6389_v25  ;;  %9319 = vst [vmem:[#allocation162_spill] sm:$0xff] %v6395_v45  ;;  %v9327_v25 = vsub.f32 %v9326_v11, %v5496_v29  ;;  %v9330_v45 = vsub.f32 %v9329_v27, %v5496_v29  ;;  %v9335_v3 = vld [vmem:[#allocation65_spill] sm:$0xff] }
 0x34f   : > { %9322 = vst [vmem:[#allocation163_spill] sm:$0xff] %v6401_v39  ;;  %9325 = vst [vmem:[#allocation164_spill] sm:$0xff] %v6407_v41  ;;  %v9333_v39 = vsub.f32 %v9332_v7, %v5496_v29  ;;  %v9336_v41 = vsub.f32 %v9335_v3, %v5496_v29 }
 0x350   : > { %v6413_v19 = vmul.f32 %v5751_v2, %v9327_v25  ;;  %v6419_v47 = vmul.f32 %v5751_v2, %v9330_v45  ;;  %v9338_v25 = vld [vmem:[#allocation71_spill] sm:$0xff] }
 0x351   : > { %v6425_v15 = vmul.f32 %v5751_v2, %v9333_v39  ;;  %v6431_v11 = vmul.f32 %v5751_v2, %v9336_v41  ;;  %v9341_v45 = vld [vmem:[#allocation75_spill] sm:$0xff]  ;;  %v9344_v39 = vld [vmem:[#allocation69_spill] sm:$0xff] }
 0x352   : > { %9328 = vst [vmem:[#allocation165_spill] sm:$0xff] %v6413_v19  ;;  %9331 = vst [vmem:[#allocation166_spill] sm:$0xff] %v6419_v47  ;;  %v9339_v19 = vsub.f32 %v9338_v25, %v5496_v29  ;;  %v9342_v47 = vsub.f32 %v9341_v45, %v5496_v29  ;;  %v9346_v41 = vld [vmem:[#allocation73_spill] sm:$0xff] }
 0x353   : > { %9334 = vst [vmem:[#allocation167_spill] sm:$0xff] %v6425_v15  ;;  %9337 = vst [vmem:[#allocation168_spill] sm:$0xff] %v6431_v11  ;;  %v9345_v15 = vsub.f32 %v9344_v39, %v5496_v29  ;;  %v9347_v11 = vsub.f32 %v9346_v41, %v5496_v29 }
 0x354   : > { %v6437_v27 = vmul.f32 %v5751_v2, %v9339_v19  ;;  %v6443_v7 = vmul.f32 %v5751_v2, %v9342_v47  ;;  %v9349_v19 = vld [vmem:[#allocation79_spill] sm:$0xff] }
 0x355   : > { %v6449_v3 = vmul.f32 %v5751_v2, %v9345_v15  ;;  %v6455_v25 = vmul.f32 %v5751_v2, %v9347_v11  ;;  %v9351_v47 = vld [vmem:[#allocation83_spill] sm:$0xff]  ;;  %v9354_v15 = vsub.f32 %v9082_v37, %v5496_v29  ;;  %v9356_v11 = vld [vmem:[#allocation81_spill] sm:$0xff] }
 0x356   : > { %9340 = vst [vmem:[#allocation169_spill] sm:$0xff] %v6437_v27  ;;  %9343 = vst [vmem:[#allocation170_spill] sm:$0xff] %v6443_v7  ;;  %v9350_v27 = vsub.f32 %v9349_v19, %v5496_v29  ;;  %v9352_v7 = vsub.f32 %v9351_v47, %v5496_v29  ;;  %v9359_v47 = vld [vmem:[#allocation87_spill] sm:$0xff] }
 0x357   : > { %9348 = vst [vmem:[#allocation171_spill] sm:$0xff] %v6455_v25  ;;  %v6473_v41 = vmul.f32 %v5751_v2, %v9354_v15  ;;  %v9357_v25 = vsub.f32 %v9356_v11, %v5496_v29  ;;  %v9361_v37 = vld [vmem:[#allocation91_spill] sm:$0xff] }
 0x358   : > { %v6461_v45 = vmul.f32 %v5751_v2, %v9350_v27  ;;  %v6467_v39 = vmul.f32 %v5751_v2, %v9352_v7  ;;  %v6484_v27 = vld [vmem:[%s8631_s3] ss:$0 sm:$0xff]  ;;  %v9360_v7 = vsub.f32 %v9359_v47, %v5496_v29  ;;  %v9362_v15 = vsub.f32 %v9361_v37, %v5496_v29 }
 0x359   : > { %9355 = vst [vmem:[#allocation173_spill] sm:$0xff] %v6473_v41  ;;  %v6479_v19 = vmul.f32 %v5751_v2, %v9357_v25  ;;  %v9363_v25 = vsub.f32 %v9086_v8, %v5496_v29 }
 0x35a   : > { %9353 = vst [vmem:[#allocation172_spill] sm:$0xff] %v6467_v39  ;;  %v6490_v39 = vmul.f32 %v5751_v2, %v9360_v7  ;;  %v6496_v41 = vmul.f32 %v5751_v2, %v9362_v15  ;;  %v9365_v7 = vsub.f32 %v9089_v49, %v5496_v29  ;;  %v9366_v15 = vsub.f32 %v9090_v43, %v5496_v29 }
 0x35b   : > { %9358 = vst [vmem:[#allocation174_spill] sm:$0xff] %v6479_v19  ;;  %v6502_v11 = vmul.f32 %v5751_v2, %v9363_v25  ;;  %v9364_v19 = vsub.f32 %v9087_v17, %v5496_v29  ;;  %v9367_v25 = vsub.f32 %v9091_v23, %v5496_v29  ;;  %v6540_v43 = vmul.f32 %v6484_v27, %v5771_v4 }
 0x35c   : > { %v6514_v37 = vmul.f32 %v5751_v2, %v9365_v7  ;;  %v6520_v8 = vmul.f32 %v5751_v2, %v9366_v15  ;;  %v6536_v7 = vmul.f32 %v6484_v27, %v5765_v21  ;;  %v6544_v23 = vmul.f32 %v6484_v27, %v5777_v5 }
 0x35d   : > { %v6508_v47 = vmul.f32 %v5751_v2, %v9364_v19  ;;  %v6526_v17 = vmul.f32 %v5751_v2, %v9367_v25  ;;  %v9368_v19 = vsub.f32 %v9092_v35, %v5496_v29  ;;  %v6548_v15 = vmul.f32 %v6484_v27, %v5783_v31  ;;  %v9375_v25 = vld [vmem:[#allocation103_spill] sm:$0xff] }
 0x35e   : > { %v6552_v29 = vmul.f32 %v6484_v27, %v5789_v33  ;;  %v6556_v21 = vmul.f32 %v6484_v27, %v5795_v13  ;;  %v6560_v35 = vmul.f32 %v6484_v27, %v5801_v6  ;;  %v6568_v5 = vmul.f32 %v6484_v27, %v5813_v16 }
 0x35f   : > { %v6532_v49 = vmul.f32 %v5751_v2, %v9368_v19  ;;  %v6564_v2 = vmul.f32 %v6484_v27, %v5807_v12  ;;  %v6572_v4 = vmul.f32 %v6484_v27, %v5819_v10  ;;  %v6576_v31 = vmul.f32 %v6484_v27, %v5825_v14  ;;  %v9377_v19 = vld [vmem:[#allocation104_spill] sm:$0xff] }
 0x360   : > { %v6580_v33 = vmul.f32 %v6484_v27, %v5831_v20  ;;  %v6584_v13 = vmul.f32 %v6484_v27, %v5837_v24  ;;  %v6588_v6 = vmul.f32 %v6484_v27, %v5843_v18  ;;  %v6592_v12 = vmul.f32 %v6484_v27, %v5849_v22 }
 0x361   : > { %v6596_v16 = vmul.f32 %v6484_v27, %v5855_v28  ;;  %v6600_v10 = vmul.f32 %v6484_v27, %v5861_v32  ;;  %v6604_v14 = vmul.f32 %v6484_v27, %v5867_v26  ;;  %v6608_v20 = vmul.f32 %v6484_v27, %v5873_v30 }
 0x362   : > { %v6612_v24 = vmul.f32 %v6484_v27, %v5879_v36  ;;  %v6616_v18 = vmul.f32 %v6484_v27, %v5885_v40  ;;  %v6620_v22 = vmul.f32 %v6484_v27, %v5891_v34  ;;  %v6624_v28 = vmul.f32 %v6484_v27, %v5897_v38 }
 0x363   : > { %v6628_v32 = vmul.f32 %v6484_v27, %v5903_v44  ;;  %v6632_v26 = vmul.f32 %v6484_v27, %v5909_v48  ;;  %v6636_v30 = vmul.f32 %v6484_v27, %v5915_v42  ;;  %v6640_v36 = vmul.f32 %v6484_v27, %v5921_v46 }
 0x364   : > { %v6644_v40 = vmul.f32 %v6484_v27, %v5927_v52  ;;  %v6648_v34 = vmul.f32 %v6484_v27, %v5933_v56  ;;  %v6652_v38 = vmul.f32 %v6484_v27, %v5939_v50  ;;  %v6656_v44 = vmul.f32 %v6484_v27, %v5945_v54 }
 0x365   : > { %v6660_v48 = vmul.f32 %v6484_v27, %v5951_v60  ;;  %v6664_v42 = vmul.f32 %v6484_v27, %v5957_v0  ;;  %v6668_v46 = vmul.f32 %v6484_v27, %v5963_v58  ;;  %v6672_v52 = vmul.f32 %v6484_v27, %v5969_v62 }
 0x366   : > { %v6676_v56 = vmul.f32 %v6484_v27, %v5975_v57  ;;  %v6680_v50 = vmul.f32 %v6484_v27, %v5981_v61  ;;  %v6684_v54 = vmul.f32 %v6484_v27, %v5987_v55  ;;  %v6688_v60 = vmul.f32 %v6484_v27, %v5993_v59  ;;  %v9371_v55 = vld [vmem:[#allocation101_spill] sm:$0xff] }
 0x367   : > { %v6692_v0 = vmul.f32 %v6484_v27, %v5999_v1  ;;  %v6696_v58 = vmul.f32 %v6484_v27, %v6005_v53  ;;  %v6700_v62 = vmul.f32 %v6484_v27, %v6011_v63  ;;  %v6704_v57 = vmul.f32 %v6484_v27, %v6017_v51  ;;  %v9373_v1 = vld [vmem:[#allocation102_spill] sm:$0xff] }
 0x368   : > { %v6708_v61 = vmul.f32 %v6484_v27, %v6023_v9  ;;  %v6712_v59 = vmul.f32 %v6484_v27, %v9371_v55  ;;  %v6716_v53 = vmul.f32 %v6484_v27, %v9373_v1  ;;  %v6720_v63 = vmul.f32 %v6484_v27, %v9375_v25 }
 0x369   : > { %9369 = vst [vmem:[#allocation175_spill] sm:$0xff] %v6704_v57  ;;  %v6724_v51 = vmul.f32 %v6484_v27, %v9377_v19  ;;  %v9379_v57 = vld [vmem:[#allocation105_spill] sm:$0xff] }
 0x36a   : > { %9370 = vst [vmem:[#allocation176_spill] sm:$0xff] %v6708_v61  ;;  %9372 = vst [vmem:[#allocation101_spill] sm:$0xff] %v6712_v59  ;;  %v6728_v9 = vmul.f32 %v6484_v27, %v9379_v57  ;;  %v9381_v61 = vld [vmem:[#allocation106_spill] sm:$0xff]  ;;  %v9383_v59 = vld [vmem:[#allocation107_spill] sm:$0xff] }
 0x36b   : > { %9374 = vst [vmem:[#allocation102_spill] sm:$0xff] %v6716_v53  ;;  %9376 = vst [vmem:[#allocation103_spill] sm:$0xff] %v6720_v63  ;;  %v6732_v55 = vmul.f32 %v6484_v27, %v9381_v61  ;;  %v6736_v1 = vmul.f32 %v6484_v27, %v9383_v59  ;;  %v9385_v53 = vld [vmem:[#allocation108_spill] sm:$0xff]  ;;  %v9387_v63 = vld [vmem:[#allocation109_spill] sm:$0xff] }
 0x36c   : > { %9378 = vst [vmem:[#allocation104_spill] sm:$0xff] %v6724_v51  ;;  %9380 = vst [vmem:[#allocation105_spill] sm:$0xff] %v6728_v9  ;;  %v6740_v25 = vmul.f32 %v6484_v27, %v9385_v53  ;;  %v6744_v19 = vmul.f32 %v6484_v27, %v9387_v63  ;;  %v9389_v51 = vld [vmem:[#allocation110_spill] sm:$0xff]  ;;  %v9391_v9 = vld [vmem:[#allocation111_spill] sm:$0xff] }
 0x36d   : > { %9382 = vst [vmem:[#allocation106_spill] sm:$0xff] %v6732_v55  ;;  %9384 = vst [vmem:[#allocation107_spill] sm:$0xff] %v6736_v1  ;;  %v6748_v57 = vmul.f32 %v6484_v27, %v9389_v51  ;;  %v6752_v61 = vmul.f32 %v6484_v27, %v9391_v9  ;;  %v9393_v55 = vld [vmem:[#allocation112_spill] sm:$0xff]  ;;  %v9395_v1 = vld [vmem:[#allocation113_spill] sm:$0xff] }
 0x36e   : > { %9386 = vst [vmem:[#allocation108_spill] sm:$0xff] %v6740_v25  ;;  %9388 = vst [vmem:[#allocation109_spill] sm:$0xff] %v6744_v19  ;;  %v6756_v59 = vmul.f32 %v6484_v27, %v9393_v55  ;;  %v6760_v53 = vmul.f32 %v6484_v27, %v9395_v1  ;;  %v9397_v25 = vld [vmem:[#allocation114_spill] sm:$0xff]  ;;  %v9399_v19 = vld [vmem:[#allocation115_spill] sm:$0xff] }
 0x36f   : > { %9390 = vst [vmem:[#allocation110_spill] sm:$0xff] %v6748_v57  ;;  %9392 = vst [vmem:[#allocation111_spill] sm:$0xff] %v6752_v61  ;;  %v6764_v63 = vmul.f32 %v6484_v27, %v9397_v25  ;;  %v6768_v51 = vmul.f32 %v6484_v27, %v9399_v19  ;;  %v9401_v57 = vld [vmem:[#allocation116_spill] sm:$0xff]  ;;  %v9403_v61 = vld [vmem:[#allocation117_spill] sm:$0xff] }
 0x370   : > { %9394 = vst [vmem:[#allocation112_spill] sm:$0xff] %v6756_v59  ;;  %9396 = vst [vmem:[#allocation113_spill] sm:$0xff] %v6760_v53  ;;  %v6772_v9 = vmul.f32 %v6484_v27, %v9401_v57  ;;  %v6776_v55 = vmul.f32 %v6484_v27, %v9403_v61  ;;  %v9405_v59 = vld [vmem:[#allocation118_spill] sm:$0xff]  ;;  %v9407_v53 = vld [vmem:[#allocation119_spill] sm:$0xff] }
 0x371   : > { %9398 = vst [vmem:[#allocation114_spill] sm:$0xff] %v6764_v63  ;;  %9400 = vst [vmem:[#allocation115_spill] sm:$0xff] %v6768_v51  ;;  %v6780_v1 = vmul.f32 %v6484_v27, %v9405_v59  ;;  %v6784_v25 = vmul.f32 %v6484_v27, %v9407_v53  ;;  %v9409_v63 = vld [vmem:[#allocation120_spill] sm:$0xff]  ;;  %v9411_v51 = vld [vmem:[#allocation121_spill] sm:$0xff] }
 0x372   : > { %9402 = vst [vmem:[#allocation116_spill] sm:$0xff] %v6772_v9  ;;  %9404 = vst [vmem:[#allocation117_spill] sm:$0xff] %v6776_v55  ;;  %v6788_v19 = vmul.f32 %v6484_v27, %v9409_v63  ;;  %v6792_v57 = vmul.f32 %v6484_v27, %v9411_v51  ;;  %v9413_v9 = vld [vmem:[#allocation122_spill] sm:$0xff]  ;;  %v9415_v55 = vld [vmem:[#allocation123_spill] sm:$0xff] }
 0x373   : > { %9406 = vst [vmem:[#allocation118_spill] sm:$0xff] %v6780_v1  ;;  %9408 = vst [vmem:[#allocation119_spill] sm:$0xff] %v6784_v25  ;;  %v6796_v61 = vmul.f32 %v6484_v27, %v9413_v9  ;;  %v6800_v59 = vmul.f32 %v6484_v27, %v9415_v55  ;;  %v9417_v1 = vld [vmem:[#allocation124_spill] sm:$0xff]  ;;  %v9419_v25 = vld [vmem:[#allocation125_spill] sm:$0xff] }
 0x374   : > { %9410 = vst [vmem:[#allocation120_spill] sm:$0xff] %v6788_v19  ;;  %9412 = vst [vmem:[#allocation121_spill] sm:$0xff] %v6792_v57  ;;  %v6804_v53 = vmul.f32 %v6484_v27, %v9417_v1  ;;  %v6808_v63 = vmul.f32 %v6484_v27, %v9419_v25  ;;  %v9421_v19 = vld [vmem:[#allocation126_spill] sm:$0xff]  ;;  %v9423_v57 = vld [vmem:[#allocation127_spill] sm:$0xff] }
 0x375   : > { %9414 = vst [vmem:[#allocation122_spill] sm:$0xff] %v6796_v61  ;;  %9416 = vst [vmem:[#allocation123_spill] sm:$0xff] %v6800_v59  ;;  %v6812_v51 = vmul.f32 %v6484_v27, %v9421_v19  ;;  %v6816_v9 = vmul.f32 %v6484_v27, %v9423_v57  ;;  %v9425_v61 = vld [vmem:[#allocation128_spill] sm:$0xff]  ;;  %v9427_v59 = vld [vmem:[#allocation129_spill] sm:$0xff] }
 0x376   : > { %9418 = vst [vmem:[#allocation124_spill] sm:$0xff] %v6804_v53  ;;  %9420 = vst [vmem:[#allocation125_spill] sm:$0xff] %v6808_v63  ;;  %v6820_v55 = vmul.f32 %v6484_v27, %v9425_v61  ;;  %v6824_v1 = vmul.f32 %v6484_v27, %v9427_v59  ;;  %v9429_v53 = vld [vmem:[#allocation130_spill] sm:$0xff]  ;;  %v9431_v63 = vld [vmem:[#allocation131_spill] sm:$0xff] }
 0x377   : > { %9422 = vst [vmem:[#allocation126_spill] sm:$0xff] %v6812_v51  ;;  %9424 = vst [vmem:[#allocation127_spill] sm:$0xff] %v6816_v9  ;;  %v6828_v25 = vmul.f32 %v6484_v27, %v9429_v53  ;;  %v6832_v19 = vmul.f32 %v6484_v27, %v9431_v63  ;;  %v9433_v51 = vld [vmem:[#allocation132_spill] sm:$0xff]  ;;  %v9435_v9 = vld [vmem:[#allocation133_spill] sm:$0xff] }
 0x378   : > { %9426 = vst [vmem:[#allocation128_spill] sm:$0xff] %v6820_v55  ;;  %9428 = vst [vmem:[#allocation129_spill] sm:$0xff] %v6824_v1  ;;  %v6836_v57 = vmul.f32 %v6484_v27, %v9433_v51  ;;  %v6840_v61 = vmul.f32 %v6484_v27, %v9435_v9  ;;  %v9437_v55 = vld [vmem:[#allocation134_spill] sm:$0xff]  ;;  %v9439_v1 = vld [vmem:[#allocation135_spill] sm:$0xff] }
 0x379   : > { %9430 = vst [vmem:[#allocation130_spill] sm:$0xff] %v6828_v25  ;;  %9432 = vst [vmem:[#allocation131_spill] sm:$0xff] %v6832_v19  ;;  %v6844_v59 = vmul.f32 %v6484_v27, %v9437_v55  ;;  %v6848_v53 = vmul.f32 %v6484_v27, %v9439_v1  ;;  %v9441_v25 = vld [vmem:[#allocation136_spill] sm:$0xff]  ;;  %v9443_v19 = vld [vmem:[#allocation137_spill] sm:$0xff] }
 0x37a   : > { %9434 = vst [vmem:[#allocation132_spill] sm:$0xff] %v6836_v57  ;;  %9436 = vst [vmem:[#allocation133_spill] sm:$0xff] %v6840_v61  ;;  %v6852_v63 = vmul.f32 %v6484_v27, %v9441_v25  ;;  %v6856_v51 = vmul.f32 %v6484_v27, %v9443_v19  ;;  %v9445_v57 = vld [vmem:[#allocation138_spill] sm:$0xff]  ;;  %v9447_v61 = vld [vmem:[#allocation139_spill] sm:$0xff] }
 0x37b   : > { %9438 = vst [vmem:[#allocation134_spill] sm:$0xff] %v6844_v59  ;;  %9440 = vst [vmem:[#allocation135_spill] sm:$0xff] %v6848_v53  ;;  %v6860_v9 = vmul.f32 %v6484_v27, %v9445_v57  ;;  %v6864_v55 = vmul.f32 %v6484_v27, %v9447_v61  ;;  %v9449_v59 = vld [vmem:[#allocation140_spill] sm:$0xff]  ;;  %v9451_v53 = vld [vmem:[#allocation141_spill] sm:$0xff] }
 0x37c   : > { %9442 = vst [vmem:[#allocation136_spill] sm:$0xff] %v6852_v63  ;;  %9444 = vst [vmem:[#allocation137_spill] sm:$0xff] %v6856_v51  ;;  %v6868_v1 = vmul.f32 %v6484_v27, %v9449_v59  ;;  %v6872_v25 = vmul.f32 %v6484_v27, %v9451_v53  ;;  %v9453_v63 = vld [vmem:[#allocation142_spill] sm:$0xff]  ;;  %v9455_v51 = vld [vmem:[#allocation143_spill] sm:$0xff] }
 0x37d   : > { %9446 = vst [vmem:[#allocation138_spill] sm:$0xff] %v6860_v9  ;;  %9448 = vst [vmem:[#allocation139_spill] sm:$0xff] %v6864_v55  ;;  %v6876_v19 = vmul.f32 %v6484_v27, %v9453_v63  ;;  %v6880_v57 = vmul.f32 %v6484_v27, %v9455_v51  ;;  %v9457_v9 = vld [vmem:[#allocation144_spill] sm:$0xff]  ;;  %v9459_v55 = vld [vmem:[#allocation145_spill] sm:$0xff] }
 0x37e   : > { %9450 = vst [vmem:[#allocation140_spill] sm:$0xff] %v6868_v1  ;;  %9452 = vst [vmem:[#allocation141_spill] sm:$0xff] %v6872_v25  ;;  %v6884_v61 = vmul.f32 %v6484_v27, %v9457_v9  ;;  %v6888_v59 = vmul.f32 %v6484_v27, %v9459_v55  ;;  %v9461_v1 = vld [vmem:[#allocation146_spill] sm:$0xff]  ;;  %v9463_v25 = vld [vmem:[#allocation147_spill] sm:$0xff] }
 0x37f   : > { %9454 = vst [vmem:[#allocation142_spill] sm:$0xff] %v6876_v19  ;;  %9456 = vst [vmem:[#allocation143_spill] sm:$0xff] %v6880_v57  ;;  %v6892_v53 = vmul.f32 %v6484_v27, %v9461_v1  ;;  %v6896_v63 = vmul.f32 %v6484_v27, %v9463_v25  ;;  %v9465_v19 = vld [vmem:[#allocation148_spill] sm:$0xff]  ;;  %v9467_v57 = vld [vmem:[#allocation149_spill] sm:$0xff] }
 0x380   : > { %9458 = vst [vmem:[#allocation144_spill] sm:$0xff] %v6884_v61  ;;  %9460 = vst [vmem:[#allocation145_spill] sm:$0xff] %v6888_v59  ;;  %v6900_v51 = vmul.f32 %v6484_v27, %v9465_v19  ;;  %v6904_v9 = vmul.f32 %v6484_v27, %v9467_v57  ;;  %v9469_v61 = vld [vmem:[#allocation150_spill] sm:$0xff]  ;;  %v9471_v59 = vld [vmem:[#allocation151_spill] sm:$0xff] }
 0x381   : > { %9462 = vst [vmem:[#allocation146_spill] sm:$0xff] %v6892_v53  ;;  %9464 = vst [vmem:[#allocation147_spill] sm:$0xff] %v6896_v63  ;;  %v6908_v55 = vmul.f32 %v6484_v27, %v9469_v61  ;;  %v6912_v1 = vmul.f32 %v6484_v27, %v9471_v59  ;;  %v9473_v53 = vld [vmem:[#allocation152_spill] sm:$0xff]  ;;  %v9475_v63 = vld [vmem:[#allocation153_spill] sm:$0xff] }
 0x382   : > { %9466 = vst [vmem:[#allocation148_spill] sm:$0xff] %v6900_v51  ;;  %9468 = vst [vmem:[#allocation149_spill] sm:$0xff] %v6904_v9  ;;  %v6916_v25 = vmul.f32 %v6484_v27, %v9473_v53  ;;  %v6920_v19 = vmul.f32 %v6484_v27, %v9475_v63  ;;  %v9477_v51 = vld [vmem:[#allocation154_spill] sm:$0xff]  ;;  %v9479_v9 = vld [vmem:[#allocation155_spill] sm:$0xff] }
 0x383   : > { %9470 = vst [vmem:[#allocation150_spill] sm:$0xff] %v6908_v55  ;;  %9472 = vst [vmem:[#allocation151_spill] sm:$0xff] %v6912_v1  ;;  %v6924_v57 = vmul.f32 %v6484_v27, %v9477_v51  ;;  %v6928_v61 = vmul.f32 %v6484_v27, %v9479_v9  ;;  %v9481_v55 = vld [vmem:[#allocation156_spill] sm:$0xff]  ;;  %v9483_v1 = vld [vmem:[#allocation157_spill] sm:$0xff] }
 0x384   : > { %9474 = vst [vmem:[#allocation152_spill] sm:$0xff] %v6916_v25  ;;  %9476 = vst [vmem:[#allocation153_spill] sm:$0xff] %v6920_v19  ;;  %v6932_v59 = vmul.f32 %v6484_v27, %v9481_v55  ;;  %v6936_v53 = vmul.f32 %v6484_v27, %v9483_v1  ;;  %v9485_v25 = vld [vmem:[#allocation158_spill] sm:$0xff]  ;;  %v9487_v19 = vld [vmem:[#allocation159_spill] sm:$0xff] }
 0x385   : > { %9478 = vst [vmem:[#allocation154_spill] sm:$0xff] %v6924_v57  ;;  %9480 = vst [vmem:[#allocation155_spill] sm:$0xff] %v6928_v61  ;;  %v6940_v63 = vmul.f32 %v6484_v27, %v9485_v25  ;;  %v6944_v51 = vmul.f32 %v6484_v27, %v9487_v19  ;;  %v9489_v57 = vld [vmem:[#allocation160_spill] sm:$0xff]  ;;  %v9491_v61 = vld [vmem:[#allocation161_spill] sm:$0xff] }
 0x386   : > { %9482 = vst [vmem:[#allocation156_spill] sm:$0xff] %v6932_v59  ;;  %9484 = vst [vmem:[#allocation157_spill] sm:$0xff] %v6936_v53  ;;  %v6948_v9 = vmul.f32 %v6484_v27, %v9489_v57  ;;  %v6952_v55 = vmul.f32 %v6484_v27, %v9491_v61  ;;  %v9493_v59 = vld [vmem:[#allocation162_spill] sm:$0xff]  ;;  %v9495_v53 = vld [vmem:[#allocation163_spill] sm:$0xff] }
 0x387   : > { %9486 = vst [vmem:[#allocation158_spill] sm:$0xff] %v6940_v63  ;;  %9488 = vst [vmem:[#allocation159_spill] sm:$0xff] %v6944_v51  ;;  %v6956_v1 = vmul.f32 %v6484_v27, %v9493_v59  ;;  %v6960_v25 = vmul.f32 %v6484_v27, %v9495_v53  ;;  %v9497_v63 = vld [vmem:[#allocation164_spill] sm:$0xff]  ;;  %v9499_v51 = vld [vmem:[#allocation165_spill] sm:$0xff] }
 0x388   : > { %9490 = vst [vmem:[#allocation160_spill] sm:$0xff] %v6948_v9  ;;  %9492 = vst [vmem:[#allocation161_spill] sm:$0xff] %v6952_v55  ;;  %v6964_v19 = vmul.f32 %v6484_v27, %v9497_v63  ;;  %v6968_v57 = vmul.f32 %v6484_v27, %v9499_v51  ;;  %v9500_v9 = vld [vmem:[#allocation166_spill] sm:$0xff]  ;;  %v9502_v55 = vld [vmem:[#allocation167_spill] sm:$0xff] }
 0x389   : > { %9494 = vst [vmem:[#allocation162_spill] sm:$0xff] %v6956_v1  ;;  %9496 = vst [vmem:[#allocation163_spill] sm:$0xff] %v6960_v25  ;;  %v6972_v61 = vmul.f32 %v6484_v27, %v9500_v9  ;;  %v6976_v59 = vmul.f32 %v6484_v27, %v9502_v55  ;;  %v9503_v1 = vld [vmem:[#allocation168_spill] sm:$0xff]  ;;  %v9505_v25 = vld [vmem:[#allocation169_spill] sm:$0xff]  ;;  %v6992_v9 = vmul.f32 %v6484_v27, %v6449_v3 }
 0x38a   : > { %9498 = vst [vmem:[#allocation164_spill] sm:$0xff] %v6964_v19  ;;  %v6980_v53 = vmul.f32 %v6484_v27, %v9503_v1  ;;  %v6984_v63 = vmul.f32 %v6484_v27, %v9505_v25  ;;  %v9507_v19 = vld [vmem:[#allocation170_spill] sm:$0xff]  ;;  %v7000_v1 = vmul.f32 %v6484_v27, %v6461_v45  ;;  %v7021_v45 = vmul.f32 %v6484_v27, %v6490_v39 }
 0x38b   : > { %9501 = vst [vmem:[#allocation165_spill] sm:$0xff] %v6972_v61  ;;  %v6988_v51 = vmul.f32 %v6484_v27, %v9507_v19  ;;  %v9509_v61 = vld [vmem:[#allocation171_spill] sm:$0xff]  ;;  %v7041_v39 = vmul.f32 %v6484_v27, %v6520_v8 }
 0x38c   : > { %9504 = vst [vmem:[#allocation166_spill] sm:$0xff] %v6980_v53  ;;  %9506 = vst [vmem:[#allocation167_spill] sm:$0xff] %v6984_v63  ;;  %v6996_v55 = vmul.f32 %v6484_v27, %v9509_v61  ;;  %v9510_v53 = vld [vmem:[#allocation172_spill] sm:$0xff]  ;;  %v9511_v63 = vld [vmem:[#allocation173_spill] sm:$0xff] }
 0x38d   : > { %9508 = vst [vmem:[#allocation168_spill] sm:$0xff] %v6988_v51  ;;  %v7004_v25 = vmul.f32 %v6484_v27, %v9510_v53  ;;  %v7008_v19 = vmul.f32 %v6484_v27, %v9511_v63  ;;  %v9512_v51 = vld [vmem:[#allocation174_spill] sm:$0xff]  ;;  %v7017_v61 = vld [vmem:[%s8632_s4] ss:$0 sm:$0xff]  ;;  %v7025_v53 = vmul.f32 %v6484_v27, %v6496_v41  ;;  %v7029_v63 = vmul.f32 %v6484_v27, %v6502_v11 }
 0x38e   : > { %v7012_v3 = vmul.f32 %v6484_v27, %v9512_v51  ;;  %v7033_v51 = vmul.f32 %v6484_v27, %v6508_v47  ;;  %v7045_v41 = vmul.f32 %v6484_v27, %v6526_v17  ;;  %v7049_v11 = vmul.f32 %v6484_v27, %v6532_v49 }
 0x38f   : > { %v7053_v47 = vadd.f32 %v7017_v61, %v6536_v7  ;;  %v7061_v8 = vadd.f32 %v7017_v61, %v6544_v23  ;;  %v7065_v17 = vadd.f32 %v7017_v61, %v6548_v15  ;;  %v7073_v49 = vadd.f32 %v7017_v61, %v6556_v21 }
 0x390   : > { %9513 = vst [vmem:[#allocation169_spill] sm:$0xff] %v7012_v3  ;;  %v7037_v3 = vmul.f32 %v6484_v27, %v6514_v37  ;;  %v7057_v37 = vadd.f32 %v7017_v61, %v6540_v43  ;;  %v7069_v27 = vadd.f32 %v7017_v61, %v6552_v29  ;;  %v7077_v7 = vadd.f32 %v7017_v61, %v6560_v35 }
 0x391   : > { %v7081_v43 = vadd.f32 %v7017_v61, %v6564_v2  ;;  %v7085_v23 = vadd.f32 %v7017_v61, %v6568_v5  ;;  %v7089_v15 = vadd.f32 %v7017_v61, %v6572_v4  ;;  %v7093_v29 = vadd.f32 %v7017_v61, %v6576_v31 }
 0x392   : > { %v7097_v21 = vadd.f32 %v7017_v61, %v6580_v33  ;;  %v7101_v35 = vadd.f32 %v7017_v61, %v6584_v13  ;;  %v7105_v2 = vadd.f32 %v7017_v61, %v6588_v6  ;;  %v7109_v5 = vadd.f32 %v7017_v61, %v6592_v12 }
 0x393   : > { %v7113_v4 = vadd.f32 %v7017_v61, %v6596_v16  ;;  %v7117_v31 = vadd.f32 %v7017_v61, %v6600_v10  ;;  %v7121_v33 = vadd.f32 %v7017_v61, %v6604_v14  ;;  %v7125_v13 = vadd.f32 %v7017_v61, %v6608_v20 }
 0x394   : > { %v7129_v6 = vadd.f32 %v7017_v61, %v6612_v24  ;;  %v7133_v12 = vadd.f32 %v7017_v61, %v6616_v18  ;;  %v7137_v16 = vadd.f32 %v7017_v61, %v6620_v22  ;;  %v7141_v10 = vadd.f32 %v7017_v61, %v6624_v28 }
 0x395   : > { %v7145_v14 = vadd.f32 %v7017_v61, %v6628_v32  ;;  %v7149_v20 = vadd.f32 %v7017_v61, %v6632_v26  ;;  %v7153_v24 = vadd.f32 %v7017_v61, %v6636_v30  ;;  %v7157_v18 = vadd.f32 %v7017_v61, %v6640_v36 }
 0x396   : > { %v7161_v22 = vadd.f32 %v7017_v61, %v6644_v40  ;;  %v7165_v28 = vadd.f32 %v7017_v61, %v6648_v34  ;;  %v7169_v32 = vadd.f32 %v7017_v61, %v6652_v38  ;;  %v7173_v26 = vadd.f32 %v7017_v61, %v6656_v44 }
 0x397   : > { %v7177_v30 = vadd.f32 %v7017_v61, %v6660_v48  ;;  %v7181_v36 = vadd.f32 %v7017_v61, %v6664_v42  ;;  %v7185_v40 = vadd.f32 %v7017_v61, %v6668_v46  ;;  %v7189_v34 = vadd.f32 %v7017_v61, %v6672_v52 }
 0x398   : > { %9514 = vst [vmem:[#allocation170_spill] sm:$0xff] %v7161_v22  ;;  %9515 = vst [vmem:[#allocation171_spill] sm:$0xff] %v7165_v28  ;;  %v7193_v38 = vadd.f32 %v7017_v61, %v6676_v56  ;;  %v7197_v44 = vadd.f32 %v7017_v61, %v6680_v50  ;;  %v7201_v48 = vadd.f32 %v7017_v61, %v6684_v54  ;;  %v9529_v50 = vld [vmem:[#allocation175_spill] sm:$0xff]  ;;  %v9746_v22 = vmax.f32 (!%p3896_p7), %v7057_v37, 0.0 }
 0x399   : > { %9516 = vst [vmem:[#allocation172_spill] sm:$0xff] %v7169_v32  ;;  %9517 = vst [vmem:[#allocation173_spill] sm:$0xff] %v7173_v26  ;;  %v7205_v42 = vadd.f32 %v7017_v61, %v6688_v60  ;;  %v7209_v46 = vadd.f32 %v7017_v61, %v6692_v0  ;;  %v7213_v52 = vadd.f32 %v7017_v61, %v6696_v58  ;;  %v9751_v32 = vmax.f32 (!%p3896_p7), %v7077_v7, 0.0 }
 0x39a   : > { %9518 = vst [vmem:[#allocation174_spill] sm:$0xff] %v7177_v30  ;;  %9519 = vst [vmem:[#allocation177_spill] sm:$0xff] %v7181_v36  ;;  %v7217_v56 = vadd.f32 %v7017_v61, %v6700_v62  ;;  %v7221_v54 = vadd.f32 %v7017_v61, %v9529_v50 }
 0x39b   : > { %9520 = vst [vmem:[#allocation178_spill] sm:$0xff] %v7185_v40  ;;  %9521 = vst [vmem:[#allocation179_spill] sm:$0xff] %v7189_v34 }
 0x39c   : > { %9522 = vst [vmem:[#allocation180_spill] sm:$0xff] %v7193_v38  ;;  %9523 = vst [vmem:[#allocation181_spill] sm:$0xff] %v7197_v44 }
 0x39d   : > { %9524 = vst [vmem:[#allocation182_spill] sm:$0xff] %v7201_v48  ;;  %9525 = vst [vmem:[#allocation183_spill] sm:$0xff] %v7205_v42  ;;  %v9531_v48 = vld [vmem:[#allocation176_spill] sm:$0xff]  ;;  %v9533_v42 = vld [vmem:[#allocation101_spill] sm:$0xff] }
 0x39e   : > { %9526 = vst [vmem:[#allocation184_spill] sm:$0xff] %v7209_v46  ;;  %9527 = vst [vmem:[#allocation185_spill] sm:$0xff] %v7213_v52  ;;  %v7225_v60 = vadd.f32 %v7017_v61, %v9531_v48  ;;  %v7229_v0 = vadd.f32 %v7017_v61, %v9533_v42  ;;  %v9535_v46 = vld [vmem:[#allocation102_spill] sm:$0xff]  ;;  %v9537_v52 = vld [vmem:[#allocation103_spill] sm:$0xff] }
 0x39f   : > { %9528 = vst [vmem:[#allocation186_spill] sm:$0xff] %v7217_v56  ;;  %9530 = vst [vmem:[#allocation175_spill] sm:$0xff] %v7221_v54  ;;  %v7233_v58 = vadd.f32 %v7017_v61, %v9535_v46  ;;  %v7237_v62 = vadd.f32 %v7017_v61, %v9537_v52  ;;  %v9539_v56 = vld [vmem:[#allocation104_spill] sm:$0xff]  ;;  %v9541_v54 = vld [vmem:[#allocation105_spill] sm:$0xff] }
 0x3a0   : > { %9532 = vst [vmem:[#allocation176_spill] sm:$0xff] %v7225_v60  ;;  %9534 = vst [vmem:[#allocation101_spill] sm:$0xff] %v7229_v0  ;;  %v7241_v50 = vadd.f32 %v7017_v61, %v9539_v56  ;;  %v7245_v48 = vadd.f32 %v7017_v61, %v9541_v54  ;;  %v9543_v60 = vld [vmem:[#allocation106_spill] sm:$0xff]  ;;  %v9545_v0 = vld [vmem:[#allocation107_spill] sm:$0xff] }
 0x3a1   : > { %9536 = vst [vmem:[#allocation102_spill] sm:$0xff] %v7233_v58  ;;  %9538 = vst [vmem:[#allocation103_spill] sm:$0xff] %v7237_v62  ;;  %v7249_v42 = vadd.f32 %v7017_v61, %v9543_v60  ;;  %v7253_v46 = vadd.f32 %v7017_v61, %v9545_v0  ;;  %v9547_v58 = vld [vmem:[#allocation108_spill] sm:$0xff]  ;;  %v9549_v62 = vld [vmem:[#allocation109_spill] sm:$0xff] }
 0x3a2   : > { %9540 = vst [vmem:[#allocation104_spill] sm:$0xff] %v7241_v50  ;;  %9542 = vst [vmem:[#allocation105_spill] sm:$0xff] %v7245_v48  ;;  %v7257_v52 = vadd.f32 %v7017_v61, %v9547_v58  ;;  %v7261_v56 = vadd.f32 %v7017_v61, %v9549_v62  ;;  %v9551_v50 = vld [vmem:[#allocation110_spill] sm:$0xff]  ;;  %v9553_v48 = vld [vmem:[#allocation111_spill] sm:$0xff] }
 0x3a3   : > { %9544 = vst [vmem:[#allocation106_spill] sm:$0xff] %v7249_v42  ;;  %9546 = vst [vmem:[#allocation107_spill] sm:$0xff] %v7253_v46  ;;  %v7265_v54 = vadd.f32 %v7017_v61, %v9551_v50  ;;  %v7269_v60 = vadd.f32 %v7017_v61, %v9553_v48  ;;  %v9555_v42 = vld [vmem:[#allocation112_spill] sm:$0xff]  ;;  %v9557_v46 = vld [vmem:[#allocation113_spill] sm:$0xff] }
 0x3a4   : > { %9548 = vst [vmem:[#allocation108_spill] sm:$0xff] %v7257_v52  ;;  %9550 = vst [vmem:[#allocation109_spill] sm:$0xff] %v7261_v56  ;;  %v7273_v0 = vadd.f32 %v7017_v61, %v9555_v42  ;;  %v7277_v58 = vadd.f32 %v7017_v61, %v9557_v46  ;;  %v9559_v52 = vld [vmem:[#allocation114_spill] sm:$0xff]  ;;  %v9561_v56 = vld [vmem:[#allocation115_spill] sm:$0xff] }
 0x3a5   : > { %9552 = vst [vmem:[#allocation110_spill] sm:$0xff] %v7265_v54  ;;  %9554 = vst [vmem:[#allocation111_spill] sm:$0xff] %v7269_v60  ;;  %v7281_v62 = vadd.f32 %v7017_v61, %v9559_v52  ;;  %v7285_v50 = vadd.f32 %v7017_v61, %v9561_v56  ;;  %v9563_v54 = vld [vmem:[#allocation116_spill] sm:$0xff]  ;;  %v9565_v60 = vld [vmem:[#allocation117_spill] sm:$0xff] }
 0x3a6   : > { %9556 = vst [vmem:[#allocation112_spill] sm:$0xff] %v7273_v0  ;;  %9558 = vst [vmem:[#allocation113_spill] sm:$0xff] %v7277_v58  ;;  %v7289_v48 = vadd.f32 %v7017_v61, %v9563_v54  ;;  %v7293_v42 = vadd.f32 %v7017_v61, %v9565_v60  ;;  %v9567_v0 = vld [vmem:[#allocation118_spill] sm:$0xff]  ;;  %v9569_v58 = vld [vmem:[#allocation119_spill] sm:$0xff] }
 0x3a7   : > { %9560 = vst [vmem:[#allocation114_spill] sm:$0xff] %v7281_v62  ;;  %9562 = vst [vmem:[#allocation115_spill] sm:$0xff] %v7285_v50  ;;  %v7297_v46 = vadd.f32 %v7017_v61, %v9567_v0  ;;  %v7301_v52 = vadd.f32 %v7017_v61, %v9569_v58  ;;  %v9571_v62 = vld [vmem:[#allocation120_spill] sm:$0xff]  ;;  %v9573_v50 = vld [vmem:[#allocation121_spill] sm:$0xff] }
 0x3a8   : > { %9564 = vst [vmem:[#allocation116_spill] sm:$0xff] %v7289_v48  ;;  %9566 = vst [vmem:[#allocation117_spill] sm:$0xff] %v7293_v42  ;;  %v7305_v56 = vadd.f32 %v7017_v61, %v9571_v62  ;;  %v7309_v54 = vadd.f32 %v7017_v61, %v9573_v50  ;;  %v9575_v48 = vld [vmem:[#allocation122_spill] sm:$0xff]  ;;  %v9577_v42 = vld [vmem:[#allocation123_spill] sm:$0xff] }
 0x3a9   : > { %9568 = vst [vmem:[#allocation118_spill] sm:$0xff] %v7297_v46  ;;  %9570 = vst [vmem:[#allocation119_spill] sm:$0xff] %v7301_v52  ;;  %v7313_v60 = vadd.f32 %v7017_v61, %v9575_v48  ;;  %v7317_v0 = vadd.f32 %v7017_v61, %v9577_v42  ;;  %v9579_v46 = vld [vmem:[#allocation124_spill] sm:$0xff]  ;;  %v9581_v52 = vld [vmem:[#allocation125_spill] sm:$0xff] }
 0x3aa   : > { %9572 = vst [vmem:[#allocation120_spill] sm:$0xff] %v7305_v56  ;;  %9574 = vst [vmem:[#allocation121_spill] sm:$0xff] %v7309_v54  ;;  %v7321_v58 = vadd.f32 %v7017_v61, %v9579_v46  ;;  %v7325_v62 = vadd.f32 %v7017_v61, %v9581_v52  ;;  %v9583_v56 = vld [vmem:[#allocation126_spill] sm:$0xff]  ;;  %v9585_v54 = vld [vmem:[#allocation127_spill] sm:$0xff] }
 0x3ab   : > { %9576 = vst [vmem:[#allocation122_spill] sm:$0xff] %v7313_v60  ;;  %9578 = vst [vmem:[#allocation123_spill] sm:$0xff] %v7317_v0  ;;  %v7329_v50 = vadd.f32 %v7017_v61, %v9583_v56  ;;  %v7333_v48 = vadd.f32 %v7017_v61, %v9585_v54  ;;  %v9587_v60 = vld [vmem:[#allocation128_spill] sm:$0xff]  ;;  %v9589_v0 = vld [vmem:[#allocation129_spill] sm:$0xff] }
 0x3ac   : > { %9580 = vst [vmem:[#allocation124_spill] sm:$0xff] %v7321_v58  ;;  %9582 = vst [vmem:[#allocation125_spill] sm:$0xff] %v7325_v62  ;;  %v7337_v42 = vadd.f32 %v7017_v61, %v9587_v60  ;;  %v7341_v46 = vadd.f32 %v7017_v61, %v9589_v0  ;;  %v9591_v58 = vld [vmem:[#allocation130_spill] sm:$0xff]  ;;  %v9593_v62 = vld [vmem:[#allocation131_spill] sm:$0xff] }
 0x3ad   : > { %9584 = vst [vmem:[#allocation126_spill] sm:$0xff] %v7329_v50  ;;  %9586 = vst [vmem:[#allocation127_spill] sm:$0xff] %v7333_v48  ;;  %v7345_v52 = vadd.f32 %v7017_v61, %v9591_v58  ;;  %v7349_v56 = vadd.f32 %v7017_v61, %v9593_v62  ;;  %v9595_v50 = vld [vmem:[#allocation132_spill] sm:$0xff]  ;;  %v9597_v48 = vld [vmem:[#allocation133_spill] sm:$0xff] }
 0x3ae   : > { %9588 = vst [vmem:[#allocation128_spill] sm:$0xff] %v7337_v42  ;;  %9590 = vst [vmem:[#allocation129_spill] sm:$0xff] %v7341_v46  ;;  %v7353_v54 = vadd.f32 %v7017_v61, %v9595_v50  ;;  %v7357_v60 = vadd.f32 %v7017_v61, %v9597_v48  ;;  %v9599_v42 = vld [vmem:[#allocation134_spill] sm:$0xff]  ;;  %v9601_v46 = vld [vmem:[#allocation135_spill] sm:$0xff] }
 0x3af   : > { %9592 = vst [vmem:[#allocation130_spill] sm:$0xff] %v7345_v52  ;;  %9594 = vst [vmem:[#allocation131_spill] sm:$0xff] %v7349_v56  ;;  %v7361_v0 = vadd.f32 %v7017_v61, %v9599_v42  ;;  %v7365_v58 = vadd.f32 %v7017_v61, %v9601_v46  ;;  %v9603_v52 = vld [vmem:[#allocation136_spill] sm:$0xff]  ;;  %v9605_v56 = vld [vmem:[#allocation137_spill] sm:$0xff] }
 0x3b0   : > { %9596 = vst [vmem:[#allocation132_spill] sm:$0xff] %v7353_v54  ;;  %9598 = vst [vmem:[#allocation133_spill] sm:$0xff] %v7357_v60  ;;  %v7369_v62 = vadd.f32 %v7017_v61, %v9603_v52  ;;  %v7373_v50 = vadd.f32 %v7017_v61, %v9605_v56  ;;  %v9607_v54 = vld [vmem:[#allocation138_spill] sm:$0xff]  ;;  %v9609_v60 = vld [vmem:[#allocation139_spill] sm:$0xff] }
 0x3b1   : > { %9600 = vst [vmem:[#allocation134_spill] sm:$0xff] %v7361_v0  ;;  %9602 = vst [vmem:[#allocation135_spill] sm:$0xff] %v7365_v58  ;;  %v7377_v48 = vadd.f32 %v7017_v61, %v9607_v54  ;;  %v7381_v42 = vadd.f32 %v7017_v61, %v9609_v60  ;;  %v9611_v0 = vld [vmem:[#allocation140_spill] sm:$0xff]  ;;  %v9613_v58 = vld [vmem:[#allocation141_spill] sm:$0xff] }
 0x3b2   : > { %9604 = vst [vmem:[#allocation136_spill] sm:$0xff] %v7369_v62  ;;  %9606 = vst [vmem:[#allocation137_spill] sm:$0xff] %v7373_v50  ;;  %v7385_v46 = vadd.f32 %v7017_v61, %v9611_v0  ;;  %v7389_v52 = vadd.f32 %v7017_v61, %v9613_v58  ;;  %v9615_v62 = vld [vmem:[#allocation142_spill] sm:$0xff]  ;;  %v9617_v50 = vld [vmem:[#allocation143_spill] sm:$0xff] }
 0x3b3   : > { %9608 = vst [vmem:[#allocation138_spill] sm:$0xff] %v7377_v48  ;;  %9610 = vst [vmem:[#allocation139_spill] sm:$0xff] %v7381_v42  ;;  %v7393_v56 = vadd.f32 %v7017_v61, %v9615_v62  ;;  %v7397_v54 = vadd.f32 %v7017_v61, %v9617_v50  ;;  %v9619_v48 = vld [vmem:[#allocation144_spill] sm:$0xff]  ;;  %v9621_v42 = vld [vmem:[#allocation145_spill] sm:$0xff] }
 0x3b4   : > { %9612 = vst [vmem:[#allocation140_spill] sm:$0xff] %v7385_v46  ;;  %9614 = vst [vmem:[#allocation141_spill] sm:$0xff] %v7389_v52  ;;  %v7401_v60 = vadd.f32 %v7017_v61, %v9619_v48  ;;  %v7405_v0 = vadd.f32 %v7017_v61, %v9621_v42  ;;  %v9623_v46 = vld [vmem:[#allocation146_spill] sm:$0xff]  ;;  %v9625_v52 = vld [vmem:[#allocation147_spill] sm:$0xff] }
 0x3b5   : > { %9616 = vst [vmem:[#allocation142_spill] sm:$0xff] %v7393_v56  ;;  %9618 = vst [vmem:[#allocation143_spill] sm:$0xff] %v7397_v54  ;;  %v7409_v58 = vadd.f32 %v7017_v61, %v9623_v46  ;;  %v7413_v62 = vadd.f32 %v7017_v61, %v9625_v52  ;;  %v9627_v56 = vld [vmem:[#allocation148_spill] sm:$0xff]  ;;  %v9629_v54 = vld [vmem:[#allocation149_spill] sm:$0xff] }
 0x3b6   : > { %9620 = vst [vmem:[#allocation144_spill] sm:$0xff] %v7401_v60  ;;  %9622 = vst [vmem:[#allocation145_spill] sm:$0xff] %v7405_v0  ;;  %v7417_v50 = vadd.f32 %v7017_v61, %v9627_v56  ;;  %v7421_v48 = vadd.f32 %v7017_v61, %v9629_v54  ;;  %v9631_v60 = vld [vmem:[#allocation150_spill] sm:$0xff]  ;;  %v9633_v0 = vld [vmem:[#allocation151_spill] sm:$0xff] }
 0x3b7   : > { %9624 = vst [vmem:[#allocation146_spill] sm:$0xff] %v7409_v58  ;;  %9626 = vst [vmem:[#allocation147_spill] sm:$0xff] %v7413_v62  ;;  %v7425_v42 = vadd.f32 %v7017_v61, %v9631_v60  ;;  %v7429_v46 = vadd.f32 %v7017_v61, %v9633_v0  ;;  %v9635_v58 = vld [vmem:[#allocation152_spill] sm:$0xff]  ;;  %v9637_v62 = vld [vmem:[#allocation153_spill] sm:$0xff] }
 0x3b8   : > { %9628 = vst [vmem:[#allocation148_spill] sm:$0xff] %v7417_v50  ;;  %9630 = vst [vmem:[#allocation149_spill] sm:$0xff] %v7421_v48  ;;  %v7433_v52 = vadd.f32 %v7017_v61, %v9635_v58  ;;  %v7437_v56 = vadd.f32 %v7017_v61, %v9637_v62  ;;  %v9639_v50 = vld [vmem:[#allocation154_spill] sm:$0xff]  ;;  %v9641_v48 = vld [vmem:[#allocation155_spill] sm:$0xff] }
 0x3b9   : > { %9632 = vst [vmem:[#allocation150_spill] sm:$0xff] %v7425_v42  ;;  %9634 = vst [vmem:[#allocation151_spill] sm:$0xff] %v7429_v46  ;;  %v7441_v54 = vadd.f32 %v7017_v61, %v9639_v50  ;;  %v7445_v60 = vadd.f32 %v7017_v61, %v9641_v48  ;;  %v9643_v42 = vld [vmem:[#allocation156_spill] sm:$0xff]  ;;  %v9645_v46 = vld [vmem:[#allocation157_spill] sm:$0xff] }
 0x3ba   : > { %9636 = vst [vmem:[#allocation152_spill] sm:$0xff] %v7433_v52  ;;  %9638 = vst [vmem:[#allocation153_spill] sm:$0xff] %v7437_v56  ;;  %v7449_v0 = vadd.f32 %v7017_v61, %v9643_v42  ;;  %v7453_v58 = vadd.f32 %v7017_v61, %v9645_v46  ;;  %v9647_v52 = vld [vmem:[#allocation158_spill] sm:$0xff]  ;;  %v9649_v56 = vld [vmem:[#allocation159_spill] sm:$0xff] }
 0x3bb   : > { %9640 = vst [vmem:[#allocation154_spill] sm:$0xff] %v7441_v54  ;;  %9642 = vst [vmem:[#allocation155_spill] sm:$0xff] %v7445_v60  ;;  %v7457_v62 = vadd.f32 %v7017_v61, %v9647_v52  ;;  %v7461_v50 = vadd.f32 %v7017_v61, %v9649_v56  ;;  %v9650_v54 = vld [vmem:[#allocation160_spill] sm:$0xff]  ;;  %v9652_v60 = vld [vmem:[#allocation161_spill] sm:$0xff] }
 0x3bc   : > { %9644 = vst [vmem:[#allocation156_spill] sm:$0xff] %v7449_v0  ;;  %9646 = vst [vmem:[#allocation157_spill] sm:$0xff] %v7453_v58  ;;  %v7465_v48 = vadd.f32 %v7017_v61, %v9650_v54  ;;  %v7469_v42 = vadd.f32 %v7017_v61, %v9652_v60  ;;  %v9653_v0 = vld [vmem:[#allocation162_spill] sm:$0xff]  ;;  %v9655_v58 = vld [vmem:[#allocation163_spill] sm:$0xff]  ;;  %v7485_v54 = vadd.f32 %v7017_v61, %v6968_v57 }
 0x3bd   : > { %9648 = vst [vmem:[#allocation158_spill] sm:$0xff] %v7457_v62  ;;  %v7473_v46 = vadd.f32 %v7017_v61, %v9653_v0  ;;  %v7477_v52 = vadd.f32 %v7017_v61, %v9655_v58  ;;  %v9657_v62 = vld [vmem:[#allocation164_spill] sm:$0xff]  ;;  %v7493_v0 = vadd.f32 %v7017_v61, %v6976_v59  ;;  %v7513_v59 = vadd.f32 %v7017_v61, %v6996_v55  ;;  %v9772_v40 = vld [vmem:[#allocation170_spill] sm:$0xff] (!%p3896_p7)  ;;  %v9774_v36 = vld [vmem:[#allocation171_spill] sm:$0xff] (!%p3896_p7) }
 0x3be   : > { %9651 = vst [vmem:[#allocation159_spill] sm:$0xff] %v7465_v48  ;;  %v7481_v56 = vadd.f32 %v7017_v61, %v9657_v62  ;;  %v9659_v48 = vld [vmem:[#allocation165_spill] sm:$0xff]  ;;  %v7533_v55 = vadd.f32 %v7017_v61, %v7021_v45  ;;  %v7553_v45 = vadd.f32 %v7017_v61, %v7041_v39  ;;  %2639 = vst [vmem:[#allocation6 + $0x8] sm:$0xff] (!%p3896_p7), %v9746_v22  ;;  %v9753_v22 = vmax.f32 (!%p3896_p7), %v7085_v23, 0.0  ;;  %v9776_v30 = vld [vmem:[#allocation172_spill] sm:$0xff] (!%p3896_p7) }
 0x3bf   : > { %9654 = vst [vmem:[#allocation160_spill] sm:$0xff] %v7473_v46  ;;  %9656 = vst [vmem:[#allocation161_spill] sm:$0xff] %v7477_v52  ;;  %v7489_v60 = vadd.f32 %v7017_v61, %v9659_v48  ;;  %v9660_v46 = vld [vmem:[#allocation166_spill] sm:$0xff]  ;;  %v9661_v52 = vld [vmem:[#allocation167_spill] sm:$0xff]  ;;  %v7509_v48 = vadd.f32 %v7017_v61, %v6992_v9 }
 0x3c0   : > { %9658 = vst [vmem:[#allocation162_spill] sm:$0xff] %v7481_v56  ;;  %v7497_v58 = vadd.f32 %v7017_v61, %v9660_v46  ;;  %v7501_v62 = vadd.f32 %v7017_v61, %v9661_v52  ;;  %v9662_v56 = vld [vmem:[#allocation168_spill] sm:$0xff]  ;;  %v7517_v46 = vadd.f32 %v7017_v61, %v7000_v1  ;;  %v7521_v52 = vadd.f32 %v7017_v61, %v7004_v25 }
 0x3c1   : > { %v7505_v57 = vadd.f32 %v7017_v61, %v9662_v56  ;;  %v7525_v56 = vadd.f32 %v7017_v61, %v7008_v19  ;;  %v7537_v1 = vadd.f32 %v7017_v61, %v7025_v53  ;;  %v7541_v25 = vadd.f32 %v7017_v61, %v7029_v63  ;;  %9668 = vst [vmem:[#allocation167_spill] sm:$0xff] %v7553_v45  ;;  %2637 = sbr.rel (%p3896_p7) target bundleno = 1029 (0x405), region = 52 }
 0x3c2   : > { %v7545_v19 = vadd.f32 %v7017_v61, %v7033_v51  ;;  %v7557_v53 = vadd.f32 %v7017_v61, %v7045_v41  ;;  %v7561_v63 = vadd.f32 %v7017_v61, %v7049_v11  ;;  %v9726_v11 = vld [vmem:[#allocation150_spill] sm:$0xff]  ;;  %v9731_v39 = vld [vmem:[#allocation155_spill] sm:$0xff]  ;;  %2644 = vst [vmem:[#allocation6 + $0x30] sm:$0xff] (!%p3896_p7), %v9751_v32  ;;  %2646 = vst [vmem:[#allocation6 + $0x40] sm:$0xff] (!%p3896_p7), %v9753_v22  ;;  %v9758_v32 = vmax.f32 (!%p3896_p7), %v7105_v2, 0.0 }
 0x3c3   : > { %9663 = vst [vmem:[#allocation163_spill] sm:$0xff] %v7505_v57  ;;  %v9664_v57 = vld [vmem:[#allocation169_spill] sm:$0xff]  ;;  %9665 = vst [vmem:[#allocation164_spill] sm:$0xff] %v7541_v25  ;;  %v2597_v26 = vmax.f32 %v9726_v11, 0.0  ;;  %v8832_v38 = vmax.f32 %v9731_v39, 0.0  ;;  %v9732_v45 = vld [vmem:[#allocation156_spill] sm:$0xff] }
 0x3c4   : > { %v7529_v9 = vadd.f32 %v7017_v61, %v9664_v57  ;;  %9666 = vst [vmem:[#allocation165_spill] sm:$0xff] %v7545_v19  ;;  %v7549_v57 = vadd.f32 %v7017_v61, %v7037_v3  ;;  %9669 = vst [vmem:[#allocation168_spill] sm:$0xff] %v7557_v53  ;;  %v9724_v53 = vld [vmem:[#allocation148_spill] sm:$0xff]  ;;  %v8831_v44 = vmax.f32 %v9732_v45, 0.0  ;;  %v9733_v25 = vld [vmem:[#allocation157_spill] sm:$0xff]  ;;  %v8829_v39 = vmax.f32 %v7525_v56, 0.0 }
 0x3c5   : > { %v2595_v28 = vmax.f32 %v9724_v53, 0.0  ;;  %v8830_v41 = vmax.f32 %v9733_v25, 0.0  ;;  %v9745_v45 = vmax.f32 (!%p3896_p7), %v7053_v47, 0.0  ;;  %v9748_v3 = vmax.f32 (!%p3896_p7), %v7065_v17, 0.0  ;;  %2651 = vst [vmem:[#allocation6 + $0x68] sm:$0xff] (!%p3896_p7), %v9758_v32  ;;  %v9778_v51 = vld [vmem:[#allocation173_spill] sm:$0xff] (!%p3896_p7) }
 0x3c6   : > { %9667 = vst [vmem:[#allocation166_spill] sm:$0xff] %v7549_v57  ;;  %v9730_v57 = vld [vmem:[#allocation154_spill] sm:$0xff]  ;;  %v9749_v19 = vmax.f32 (!%p3896_p7), %v7069_v27, 0.0  ;;  %v9750_v11 = vmax.f32 (!%p3896_p7), %v7073_v49, 0.0  ;;  %v9760_v22 = vmax.f32 (!%p3896_p7), %v7113_v4, 0.0  ;;  %v9765_v32 = vmax.f32 (!%p3896_p7), %v7133_v12, 0.0 }
 0x3c7   : > { %v2601_v34 = vmax.f32 %v9730_v57, 0.0  ;;  %2638 = vst [vmem:[#allocation6] sm:$0xff] (!%p3896_p7), %v9745_v45  ;;  %v9747_v57 = vmax.f32 (!%p3896_p7), %v7061_v8, 0.0  ;;  %2641 = vst [vmem:[#allocation6 + $0x18] sm:$0xff] (!%p3896_p7), %v9748_v3  ;;  %v9752_v45 = vmax.f32 (!%p3896_p7), %v7081_v43, 0.0  ;;  %v9755_v3 = vmax.f32 (!%p3896_p7), %v7093_v29, 0.0 }
 0x3c8   : > { %2642 = vst [vmem:[#allocation6 + $0x20] sm:$0xff] %v9749_v19  ;;  %2643 = vst [vmem:[#allocation6 + $0x28] sm:$0xff] %v9750_v11  ;;  %v9756_v19 = vmax.f32 %v7097_v21, 0.0  ;;  %v9757_v11 = vmax.f32 %v7101_v35, 0.0  ;;  %v9780_v53 = vld [vmem:[#allocation174_spill] sm:$0xff]  ;;  %v9782_v61 = vld [vmem:[#allocation177_spill] sm:$0xff] }
 0x3c9   : > { %2640 = vst [vmem:[#allocation6 + $0x10] sm:$0xff] %v9747_v57  ;;  %2645 = vst [vmem:[#allocation6 + $0x38] sm:$0xff] %v9752_v45  ;;  %v9754_v57 = vmax.f32 %v7089_v15, 0.0  ;;  %v9759_v45 = vmax.f32 %v7109_v5, 0.0  ;;  %v9784_v25 = vld [vmem:[#allocation178_spill] sm:$0xff] }
 0x3ca   : > { %2648 = vst [vmem:[#allocation6 + $0x50] sm:$0xff] %v9755_v3  ;;  %2649 = vst [vmem:[#allocation6 + $0x58] sm:$0xff] %v9756_v19  ;;  %v9762_v3 = vmax.f32 %v7121_v33, 0.0  ;;  %v9763_v19 = vmax.f32 %v7125_v13, 0.0 }
 0x3cb   : > { %2647 = vst [vmem:[#allocation6 + $0x48] sm:$0xff] %v9754_v57  ;;  %2650 = vst [vmem:[#allocation6 + $0x60] sm:$0xff] %v9757_v11  ;;  %v9761_v57 = vmax.f32 %v7117_v31, 0.0  ;;  %v9764_v11 = vmax.f32 %v7129_v6, 0.0 }
 0x3cc   : > { %2652 = vst [vmem:[#allocation6 + $0x70] sm:$0xff] %v9759_v45  ;;  %2653 = vst [vmem:[#allocation6 + $0x78] sm:$0xff] %v9760_v22  ;;  %v9766_v45 = vmax.f32 %v7137_v16, 0.0  ;;  %v9767_v22 = vmax.f32 %v7141_v10, 0.0 }
 0x3cd   : > { %2654 = vst [vmem:[#allocation6 + $0x80] sm:$0xff] %v9761_v57  ;;  %2655 = vst [vmem:[#allocation6 + $0x88] sm:$0xff] %v9762_v3  ;;  %v9768_v57 = vmax.f32 %v7145_v14, 0.0  ;;  %v9769_v3 = vmax.f32 %v7149_v20, 0.0 }
 0x3ce   : > { %2656 = vst [vmem:[#allocation6 + $0x90] sm:$0xff] %v9763_v19  ;;  %2657 = vst [vmem:[#allocation6 + $0x98] sm:$0xff] %v9764_v11  ;;  %v9770_v19 = vmax.f32 %v7153_v24, 0.0  ;;  %v9771_v11 = vmax.f32 %v7157_v18, 0.0 }
 0x3cf   : > { %2658 = vst [vmem:[#allocation6 + $0xa0] sm:$0xff] %v9765_v32  ;;  %2659 = vst [vmem:[#allocation6 + $0xa8] sm:$0xff] %v9766_v45  ;;  %v9773_v32 = vmax.f32 %v9772_v40, 0.0  ;;  %v9775_v45 = vmax.f32 %v9774_v36, 0.0  ;;  %v9786_v40 = vld [vmem:[#allocation179_spill] sm:$0xff]  ;;  %v9788_v36 = vld [vmem:[#allocation180_spill] sm:$0xff] }
 0x3d0   : > { %2660 = vst [vmem:[#allocation6 + $0xb0] sm:$0xff] %v9767_v22  ;;  %2661 = vst [vmem:[#allocation6 + $0xb8] sm:$0xff] %v9768_v57  ;;  %v9777_v22 = vmax.f32 %v9776_v30, 0.0  ;;  %v9779_v57 = vmax.f32 %v9778_v51, 0.0  ;;  %v9790_v30 = vld [vmem:[#allocation181_spill] sm:$0xff]  ;;  %v9792_v51 = vld [vmem:[#allocation182_spill] sm:$0xff] }
 0x3d1   : > { %2662 = vst [vmem:[#allocation6 + $0xc0] sm:$0xff] %v9769_v3  ;;  %2663 = vst [vmem:[#allocation6 + $0xc8] sm:$0xff] %v9770_v19  ;;  %v9781_v3 = vmax.f32 %v9780_v53, 0.0  ;;  %v9783_v19 = vmax.f32 %v9782_v61, 0.0  ;;  %v9794_v53 = vld [vmem:[#allocation183_spill] sm:$0xff]  ;;  %v9796_v61 = vld [vmem:[#allocation184_spill] sm:$0xff] }
 0x3d2   : > { %2664 = vst [vmem:[#allocation6 + $0xd0] sm:$0xff] %v9771_v11  ;;  %2665 = vst [vmem:[#allocation6 + $0xd8] sm:$0xff] %v9773_v32  ;;  %v9785_v11 = vmax.f32 %v9784_v25, 0.0  ;;  %v9787_v32 = vmax.f32 %v9786_v40, 0.0  ;;  %v9798_v25 = vld [vmem:[#allocation185_spill] sm:$0xff]  ;;  %v9800_v40 = vld [vmem:[#allocation186_spill] sm:$0xff] }
 0x3d3   : > { %2666 = vst [vmem:[#allocation6 + $0xe0] sm:$0xff] %v9775_v45  ;;  %2667 = vst [vmem:[#allocation6 + $0xe8] sm:$0xff] %v9777_v22  ;;  %v9789_v45 = vmax.f32 %v9788_v36, 0.0  ;;  %v9791_v22 = vmax.f32 %v9790_v30, 0.0  ;;  %v9802_v36 = vld [vmem:[#allocation175_spill] sm:$0xff]  ;;  %v9804_v30 = vld [vmem:[#allocation176_spill] sm:$0xff] }
 0x3d4   : > { %2668 = vst [vmem:[#allocation6 + $0xf0] sm:$0xff] %v9779_v57  ;;  %2669 = vst [vmem:[#allocation6 + $0xf8] sm:$0xff] %v9781_v3  ;;  %v9793_v57 = vmax.f32 %v9792_v51, 0.0  ;;  %v9795_v3 = vmax.f32 %v9794_v53, 0.0  ;;  %v9806_v51 = vld [vmem:[#allocation101_spill] sm:$0xff]  ;;  %v9808_v53 = vld [vmem:[#allocation102_spill] sm:$0xff] }
 0x3d5   : > { %2670 = vst [vmem:[#allocation6 + $0x100] sm:$0xff] %v9783_v19  ;;  %2671 = vst [vmem:[#allocation6 + $0x108] sm:$0xff] %v9785_v11  ;;  %v9797_v19 = vmax.f32 %v9796_v61, 0.0  ;;  %v9799_v11 = vmax.f32 %v9798_v25, 0.0  ;;  %v9810_v61 = vld [vmem:[#allocation103_spill] sm:$0xff]  ;;  %v9812_v25 = vld [vmem:[#allocation104_spill] sm:$0xff] }
 0x3d6   : > { %2672 = vst [vmem:[#allocation6 + $0x110] sm:$0xff] %v9787_v32  ;;  %2673 = vst [vmem:[#allocation6 + $0x118] sm:$0xff] %v9789_v45  ;;  %v9801_v32 = vmax.f32 %v9800_v40, 0.0  ;;  %v9803_v45 = vmax.f32 %v9802_v36, 0.0  ;;  %v9814_v40 = vld [vmem:[#allocation105_spill] sm:$0xff]  ;;  %v9816_v36 = vld [vmem:[#allocation106_spill] sm:$0xff] }
 0x3d7   : > { %2674 = vst [vmem:[#allocation6 + $0x120] sm:$0xff] %v9791_v22  ;;  %2675 = vst [vmem:[#allocation6 + $0x128] sm:$0xff] %v9793_v57  ;;  %v9805_v22 = vmax.f32 %v9804_v30, 0.0  ;;  %v9807_v57 = vmax.f32 %v9806_v51, 0.0  ;;  %v9818_v30 = vld [vmem:[#allocation107_spill] sm:$0xff]  ;;  %v9820_v51 = vld [vmem:[#allocation108_spill] sm:$0xff] }
 0x3d8   : > { %2676 = vst [vmem:[#allocation6 + $0x130] sm:$0xff] %v9795_v3  ;;  %2677 = vst [vmem:[#allocation6 + $0x138] sm:$0xff] %v9797_v19  ;;  %v9809_v3 = vmax.f32 %v9808_v53, 0.0  ;;  %v9811_v19 = vmax.f32 %v9810_v61, 0.0  ;;  %v9822_v53 = vld [vmem:[#allocation109_spill] sm:$0xff]  ;;  %v9824_v61 = vld [vmem:[#allocation110_spill] sm:$0xff] }
 0x3d9   : > { %2678 = vst [vmem:[#allocation6 + $0x140] sm:$0xff] %v9799_v11  ;;  %2679 = vst [vmem:[#allocation6 + $0x148] sm:$0xff] %v9801_v32  ;;  %v9813_v11 = vmax.f32 %v9812_v25, 0.0  ;;  %v9815_v32 = vmax.f32 %v9814_v40, 0.0  ;;  %v9826_v25 = vld [vmem:[#allocation111_spill] sm:$0xff]  ;;  %v9828_v40 = vld [vmem:[#allocation112_spill] sm:$0xff] }
 0x3da   : > { %2680 = vst [vmem:[#allocation6 + $0x150] sm:$0xff] %v9803_v45  ;;  %2681 = vst [vmem:[#allocation6 + $0x158] sm:$0xff] %v9805_v22  ;;  %v9817_v45 = vmax.f32 %v9816_v36, 0.0  ;;  %v9819_v22 = vmax.f32 %v9818_v30, 0.0  ;;  %v9830_v36 = vld [vmem:[#allocation113_spill] sm:$0xff]  ;;  %v9832_v30 = vld [vmem:[#allocation114_spill] sm:$0xff] }
 0x3db   : > { %2682 = vst [vmem:[#allocation6 + $0x160] sm:$0xff] %v9807_v57  ;;  %2683 = vst [vmem:[#allocation6 + $0x168] sm:$0xff] %v9809_v3  ;;  %v9821_v57 = vmax.f32 %v9820_v51, 0.0  ;;  %v9823_v3 = vmax.f32 %v9822_v53, 0.0  ;;  %v9834_v51 = vld [vmem:[#allocation115_spill] sm:$0xff]  ;;  %v9836_v53 = vld [vmem:[#allocation116_spill] sm:$0xff] }
 0x3dc   : > { %2684 = vst [vmem:[#allocation6 + $0x170] sm:$0xff] %v9811_v19  ;;  %2685 = vst [vmem:[#allocation6 + $0x178] sm:$0xff] %v9813_v11  ;;  %v9825_v19 = vmax.f32 %v9824_v61, 0.0  ;;  %v9827_v11 = vmax.f32 %v9826_v25, 0.0  ;;  %v9838_v61 = vld [vmem:[#allocation117_spill] sm:$0xff]  ;;  %v9840_v25 = vld [vmem:[#allocation118_spill] sm:$0xff] }
 0x3dd   : > { %2686 = vst [vmem:[#allocation6 + $0x180] sm:$0xff] %v9815_v32  ;;  %2687 = vst [vmem:[#allocation6 + $0x188] sm:$0xff] %v9817_v45  ;;  %v9829_v32 = vmax.f32 %v9828_v40, 0.0  ;;  %v9831_v45 = vmax.f32 %v9830_v36, 0.0  ;;  %v9842_v40 = vld [vmem:[#allocation119_spill] sm:$0xff]  ;;  %v9844_v36 = vld [vmem:[#allocation120_spill] sm:$0xff] }
 0x3de   : > { %2688 = vst [vmem:[#allocation6 + $0x190] sm:$0xff] %v9819_v22  ;;  %2689 = vst [vmem:[#allocation6 + $0x198] sm:$0xff] %v9821_v57  ;;  %v9833_v22 = vmax.f32 %v9832_v30, 0.0  ;;  %v9835_v57 = vmax.f32 %v9834_v51, 0.0  ;;  %v9846_v30 = vld [vmem:[#allocation121_spill] sm:$0xff]  ;;  %v9848_v51 = vld [vmem:[#allocation122_spill] sm:$0xff] }
 0x3df   : > { %2690 = vst [vmem:[#allocation6 + $0x1a0] sm:$0xff] %v9823_v3  ;;  %2691 = vst [vmem:[#allocation6 + $0x1a8] sm:$0xff] %v9825_v19  ;;  %v9837_v3 = vmax.f32 %v9836_v53, 0.0  ;;  %v9839_v19 = vmax.f32 %v9838_v61, 0.0  ;;  %v9850_v53 = vld [vmem:[#allocation123_spill] sm:$0xff]  ;;  %v9852_v61 = vld [vmem:[#allocation124_spill] sm:$0xff] }
 0x3e0   : > { %2692 = vst [vmem:[#allocation6 + $0x1b0] sm:$0xff] %v9827_v11  ;;  %2693 = vst [vmem:[#allocation6 + $0x1b8] sm:$0xff] %v9829_v32  ;;  %v9841_v11 = vmax.f32 %v9840_v25, 0.0  ;;  %v9843_v32 = vmax.f32 %v9842_v40, 0.0  ;;  %v9854_v25 = vld [vmem:[#allocation125_spill] sm:$0xff]  ;;  %v9856_v40 = vld [vmem:[#allocation126_spill] sm:$0xff] }
 0x3e1   : > { %2694 = vst [vmem:[#allocation6 + $0x1c0] sm:$0xff] %v9831_v45  ;;  %2695 = vst [vmem:[#allocation6 + $0x1c8] sm:$0xff] %v9833_v22  ;;  %v9845_v45 = vmax.f32 %v9844_v36, 0.0  ;;  %v9847_v22 = vmax.f32 %v9846_v30, 0.0  ;;  %v9858_v36 = vld [vmem:[#allocation127_spill] sm:$0xff]  ;;  %v9860_v30 = vld [vmem:[#allocation128_spill] sm:$0xff] }
 0x3e2   : > { %2696 = vst [vmem:[#allocation6 + $0x1d0] sm:$0xff] %v9835_v57  ;;  %2697 = vst [vmem:[#allocation6 + $0x1d8] sm:$0xff] %v9837_v3  ;;  %v9849_v57 = vmax.f32 %v9848_v51, 0.0  ;;  %v9851_v3 = vmax.f32 %v9850_v53, 0.0  ;;  %v9862_v51 = vld [vmem:[#allocation129_spill] sm:$0xff]  ;;  %v9864_v53 = vld [vmem:[#allocation130_spill] sm:$0xff] }
 0x3e3   : > { %2698 = vst [vmem:[#allocation6 + $0x1e0] sm:$0xff] %v9839_v19  ;;  %2699 = vst [vmem:[#allocation6 + $0x1e8] sm:$0xff] %v9841_v11  ;;  %v9853_v19 = vmax.f32 %v9852_v61, 0.0  ;;  %v9855_v11 = vmax.f32 %v9854_v25, 0.0  ;;  %v9866_v61 = vld [vmem:[#allocation131_spill] sm:$0xff]  ;;  %v9868_v25 = vld [vmem:[#allocation132_spill] sm:$0xff] }
 0x3e4   : > { %2700 = vst [vmem:[#allocation6 + $0x1f0] sm:$0xff] %v9843_v32  ;;  %2701 = vst [vmem:[#allocation6 + $0x1f8] sm:$0xff] %v9845_v45  ;;  %v9857_v32 = vmax.f32 %v9856_v40, 0.0  ;;  %v9859_v45 = vmax.f32 %v9858_v36, 0.0  ;;  %v9870_v40 = vld [vmem:[#allocation133_spill] sm:$0xff]  ;;  %v9872_v36 = vld [vmem:[#allocation134_spill] sm:$0xff] }
 0x3e5   : > { %2702 = vst [vmem:[#allocation6 + $0x200] sm:$0xff] %v9847_v22  ;;  %2703 = vst [vmem:[#allocation6 + $0x208] sm:$0xff] %v9849_v57  ;;  %v9861_v22 = vmax.f32 %v9860_v30, 0.0  ;;  %v9863_v57 = vmax.f32 %v9862_v51, 0.0  ;;  %v9874_v30 = vld [vmem:[#allocation135_spill] sm:$0xff]  ;;  %v9876_v51 = vld [vmem:[#allocation136_spill] sm:$0xff] }
 0x3e6   : > { %2704 = vst [vmem:[#allocation6 + $0x210] sm:$0xff] %v9851_v3  ;;  %2705 = vst [vmem:[#allocation6 + $0x218] sm:$0xff] %v9853_v19  ;;  %v9865_v3 = vmax.f32 %v9864_v53, 0.0  ;;  %v9867_v19 = vmax.f32 %v9866_v61, 0.0  ;;  %v9878_v53 = vld [vmem:[#allocation137_spill] sm:$0xff]  ;;  %v9880_v61 = vld [vmem:[#allocation138_spill] sm:$0xff] }
 0x3e7   : > { %2706 = vst [vmem:[#allocation6 + $0x220] sm:$0xff] %v9855_v11  ;;  %2707 = vst [vmem:[#allocation6 + $0x228] sm:$0xff] %v9857_v32  ;;  %v9869_v11 = vmax.f32 %v9868_v25, 0.0  ;;  %v9871_v32 = vmax.f32 %v9870_v40, 0.0  ;;  %v9882_v25 = vld [vmem:[#allocation139_spill] sm:$0xff]  ;;  %v9884_v40 = vld [vmem:[#allocation140_spill] sm:$0xff] }
 0x3e8   : > { %2708 = vst [vmem:[#allocation6 + $0x230] sm:$0xff] %v9859_v45  ;;  %2709 = vst [vmem:[#allocation6 + $0x238] sm:$0xff] %v9861_v22  ;;  %v9873_v45 = vmax.f32 %v9872_v36, 0.0  ;;  %v9875_v22 = vmax.f32 %v9874_v30, 0.0  ;;  %v9886_v36 = vld [vmem:[#allocation141_spill] sm:$0xff]  ;;  %v9888_v30 = vld [vmem:[#allocation142_spill] sm:$0xff] }
 0x3e9   : > { %2710 = vst [vmem:[#allocation6 + $0x240] sm:$0xff] %v9863_v57  ;;  %2711 = vst [vmem:[#allocation6 + $0x248] sm:$0xff] %v9865_v3  ;;  %v9877_v57 = vmax.f32 %v9876_v51, 0.0  ;;  %v9879_v3 = vmax.f32 %v9878_v53, 0.0  ;;  %v9890_v51 = vld [vmem:[#allocation143_spill] sm:$0xff]  ;;  %v9892_v53 = vld [vmem:[#allocation144_spill] sm:$0xff] }
 0x3ea   : > { %2712 = vst [vmem:[#allocation6 + $0x250] sm:$0xff] %v9867_v19  ;;  %2713 = vst [vmem:[#allocation6 + $0x258] sm:$0xff] %v9869_v11  ;;  %v9881_v19 = vmax.f32 %v9880_v61, 0.0  ;;  %v9883_v11 = vmax.f32 %v9882_v25, 0.0  ;;  %v9894_v61 = vld [vmem:[#allocation145_spill] sm:$0xff]  ;;  %v9896_v25 = vld [vmem:[#allocation146_spill] sm:$0xff] }
 0x3eb   : > { %2714 = vst [vmem:[#allocation6 + $0x260] sm:$0xff] %v9871_v32  ;;  %2715 = vst [vmem:[#allocation6 + $0x268] sm:$0xff] %v9873_v45  ;;  %v9885_v32 = vmax.f32 %v9884_v40, 0.0  ;;  %v9887_v45 = vmax.f32 %v9886_v36, 0.0  ;;  %v9898_v40 = vld [vmem:[#allocation147_spill] sm:$0xff]  ;;  %v9914_v36 = vld [vmem:[#allocation158_spill] sm:$0xff] }
 0x3ec   : > { %2716 = vst [vmem:[#allocation6 + $0x270] sm:$0xff] %v9875_v22  ;;  %2717 = vst [vmem:[#allocation6 + $0x278] sm:$0xff] %v9877_v57  ;;  %v9889_v22 = vmax.f32 %v9888_v30, 0.0  ;;  %v9891_v57 = vmax.f32 %v9890_v51, 0.0  ;;  %v9904_v51 = vld [vmem:[#allocation151_spill] sm:$0xff] }
 0x3ed   : > { %2718 = vst [vmem:[#allocation6 + $0x280] sm:$0xff] %v9879_v3  ;;  %2719 = vst [vmem:[#allocation6 + $0x288] sm:$0xff] %v9881_v19  ;;  %v9893_v3 = vmax.f32 %v9892_v53, 0.0  ;;  %v9895_v19 = vmax.f32 %v9894_v61, 0.0  ;;  %v9906_v53 = vld [vmem:[#allocation152_spill] sm:$0xff]  ;;  %v9908_v61 = vld [vmem:[#allocation153_spill] sm:$0xff] }
 0x3ee   : > { %2720 = vst [vmem:[#allocation6 + $0x290] sm:$0xff] %v9883_v11  ;;  %2721 = vst [vmem:[#allocation6 + $0x298] sm:$0xff] %v9885_v32  ;;  %v9897_v11 = vmax.f32 %v9896_v25, 0.0  ;;  %v9899_v32 = vmax.f32 %v9898_v40, 0.0  ;;  %v9924_v25 = vld [vmem:[#allocation162_spill] sm:$0xff]  ;;  %v9926_v40 = vmax.f32 %v7485_v54, 0.0 }
 0x3ef   : > { %2722 = vst [vmem:[#allocation6 + $0x2a0] sm:$0xff] %v9887_v45  ;;  %2723 = vst [vmem:[#allocation6 + $0x2a8] sm:$0xff] %v9889_v22  ;;  %v9901_v45 = vld [vmem:[#allocation149_spill] sm:$0xff]  ;;  %v9917_v22 = vld [vmem:[#allocation159_spill] sm:$0xff] }
 0x3f0   : > { %2724 = vst [vmem:[#allocation6 + $0x2b0] sm:$0xff] %v9891_v57  ;;  %2725 = vst [vmem:[#allocation6 + $0x2b8] sm:$0xff] %v9893_v3  ;;  %v9902_v30 = vmax.f32 %v9901_v45, 0.0  ;;  %v9905_v57 = vmax.f32 %v9904_v51, 0.0  ;;  %v9907_v3 = vmax.f32 %v9906_v53, 0.0  ;;  %v9915_v45 = vmax.f32 %v9914_v36, 0.0 }
 0x3f1   : > { %2726 = vst [vmem:[#allocation6 + $0x2c0] sm:$0xff] %v9895_v19  ;;  %2727 = vst [vmem:[#allocation6 + $0x2c8] sm:$0xff] %v9897_v11  ;;  %v9909_v19 = vmax.f32 %v9908_v61, 0.0  ;;  %v9918_v51 = vmax.f32 %v9917_v22, 0.0  ;;  %v9920_v53 = vld [vmem:[#allocation160_spill] sm:$0xff]  ;;  %v9922_v61 = vld [vmem:[#allocation161_spill] sm:$0xff] }
 0x3f2   : > { %2728 = vst [vmem:[#allocation6 + $0x2d0] sm:$0xff] %v9899_v32  ;;  %2729 = vst [vmem:[#allocation6 + $0x2d8] sm:$0xff] %v2595_v28  ;;  %v9925_v11 = vmax.f32 %v9924_v25, 0.0  ;;  %v9927_v32 = vmax.f32 %v7489_v60, 0.0  ;;  %v9928_v36 = vmax.f32 %v7493_v0, 0.0  ;;  %v9931_v22 = vld [vmem:[#allocation163_spill] sm:$0xff] }
 0x3f3   : > { %2730 = vst [vmem:[#allocation6 + $0x2e0] sm:$0xff] %v9902_v30  ;;  %2731 = vst [vmem:[#allocation6 + $0x2e8] sm:$0xff] %v2597_v26  ;;  %v9916_v30 = vmax.f32 %v7461_v50, 0.0  ;;  %v9938_v25 = vmax.f32 %v7533_v55, 0.0 }
 0x3f4   : > { %2732 = vst [vmem:[#allocation6 + $0x2f0] sm:$0xff] %v9905_v57  ;;  %2733 = vst [vmem:[#allocation6 + $0x2f8] sm:$0xff] %v9907_v3  ;;  %v9919_v57 = vmax.f32 %v7469_v42, 0.0  ;;  %v9921_v3 = vmax.f32 %v9920_v53, 0.0  ;;  %v9934_v53 = vmax.f32 %v7513_v59, 0.0 }
 0x3f5   : > { %2734 = vst [vmem:[#allocation6 + $0x300] sm:$0xff] %v9909_v19  ;;  %2735 = vst [vmem:[#allocation6 + $0x308] sm:$0xff] %v2601_v34  ;;  %v9923_v19 = vmax.f32 %v9922_v61, 0.0  ;;  %v9936_v61 = vmax.f32 %v7521_v52, 0.0 }
 0x3f6   : > { %2736 = vst [vmem:[#allocation6 + $0x310] sm:$0xff] %v8832_v38  ;;  %2737 = vst [vmem:[#allocation6 + $0x318] sm:$0xff] %v8831_v44 }
 0x3f7   : > { %2738 = vst [vmem:[#allocation6 + $0x320] sm:$0xff] %v8830_v41  ;;  %2739 = vst [vmem:[#allocation6 + $0x328] sm:$0xff] %v9915_v45  ;;  %v9929_v45 = vmax.f32 %v7497_v58, 0.0 }
 0x3f8   : > { %2740 = vst [vmem:[#allocation6 + $0x330] sm:$0xff] %v9916_v30  ;;  %2741 = vst [vmem:[#allocation6 + $0x338] sm:$0xff] %v9918_v51  ;;  %v9930_v30 = vmax.f32 %v7501_v62, 0.0  ;;  %v9932_v51 = vmax.f32 %v9931_v22, 0.0 }
 0x3f9   : > { %2742 = vst [vmem:[#allocation6 + $0x340] sm:$0xff] %v9919_v57  ;;  %2743 = vst [vmem:[#allocation6 + $0x348] sm:$0xff] %v9921_v3  ;;  %v9933_v57 = vmax.f32 %v7509_v48, 0.0  ;;  %v9935_v3 = vmax.f32 %v7517_v46, 0.0 }
 0x3fa   : > { %2744 = vst [vmem:[#allocation6 + $0x350] sm:$0xff] %v9923_v19  ;;  %2745 = vst [vmem:[#allocation6 + $0x358] sm:$0xff] %v9925_v11  ;;  %v9937_v19 = vmax.f32 %v7529_v9, 0.0  ;;  %v9939_v11 = vmax.f32 %v7537_v1, 0.0 }
 0x3fb   : > { %2746 = vst [vmem:[#allocation6 + $0x360] sm:$0xff] %v9926_v40  ;;  %2747 = vst [vmem:[#allocation6 + $0x368] sm:$0xff] %v9927_v32  ;;  %v9940_v40 = vld [vmem:[#allocation164_spill] sm:$0xff] }
 0x3fc   : > { %2748 = vst [vmem:[#allocation6 + $0x370] sm:$0xff] %v9928_v36  ;;  %2749 = vst [vmem:[#allocation6 + $0x378] sm:$0xff] %v9929_v45  ;;  %v9941_v32 = vmax.f32 %v9940_v40, 0.0  ;;  %v9942_v36 = vld [vmem:[#allocation165_spill] sm:$0xff] }
 0x3fd   : > { %2750 = vst [vmem:[#allocation6 + $0x380] sm:$0xff] %v9930_v30  ;;  %2751 = vst [vmem:[#allocation6 + $0x388] sm:$0xff] %v9932_v51  ;;  %v9943_v45 = vmax.f32 %v9942_v36, 0.0  ;;  %v9944_v30 = vld [vmem:[#allocation166_spill] sm:$0xff]  ;;  %v9946_v51 = vld [vmem:[#allocation167_spill] sm:$0xff] }
 0x3fe   : > { %2752 = vst [vmem:[#allocation6 + $0x390] sm:$0xff] %v9933_v57  ;;  %2753 = vst [vmem:[#allocation6 + $0x398] sm:$0xff] %v9934_v53  ;;  %v9945_v22 = vmax.f32 %v9944_v30, 0.0  ;;  %v9947_v57 = vmax.f32 %v9946_v51, 0.0  ;;  %v9948_v53 = vld [vmem:[#allocation168_spill] sm:$0xff] }
 0x3ff   : > { %2754 = vst [vmem:[#allocation6 + $0x3a0] sm:$0xff] %v9935_v3  ;;  %2755 = vst [vmem:[#allocation6 + $0x3a8] sm:$0xff] %v9936_v61  ;;  %v9949_v3 = vmax.f32 %v9948_v53, 0.0  ;;  %v9950_v61 = vmax.f32 %v7561_v63, 0.0 }
 0x400   : > { %2756 = vst [vmem:[#allocation6 + $0x3b0] sm:$0xff] %v8829_v39  ;;  %2757 = vst [vmem:[#allocation6 + $0x3b8] sm:$0xff] %v9937_v19 }
 0x401   : > { %2758 = vst [vmem:[#allocation6 + $0x3c0] sm:$0xff] %v9938_v25  ;;  %2759 = vst [vmem:[#allocation6 + $0x3c8] sm:$0xff] %v9939_v11 }
 0x402   : > { %2760 = vst [vmem:[#allocation6 + $0x3d0] sm:$0xff] %v9941_v32  ;;  %2761 = vst [vmem:[#allocation6 + $0x3d8] sm:$0xff] %v9943_v45 }
 0x403   : > { %2762 = vst [vmem:[#allocation6 + $0x3e0] sm:$0xff] %v9945_v22  ;;  %2763 = vst [vmem:[#allocation6 + $0x3e8] sm:$0xff] %v9947_v57 }
 0x404   : > { %2764 = vst [vmem:[#allocation6 + $0x3f0] sm:$0xff] %v9949_v3  ;;  %2765 = vst [vmem:[#allocation6 + $0x3f8] sm:$0xff] %v9950_v61 }
 0x405 PF: > { %p3897_p8 = scmp.ge.s32.totalorder %s4454_s25, 1024 }
 0x406   : > { %v7950_v19 = vstv (!%p3897_p8), %s4454_s25  ;;  %v9951_v25 = vld [vmem:[#allocation100_spill] sm:$0xff] (!%p3897_p8)  ;;  %v4395_v30 = vmov (!%p3897_p8), 0.0   ;;  %v9952_v57 = vmax.f32 (!%p3897_p8), %v7053_v47, 0.0  ;;  %v9953_v39 = vmax.f32 (!%p3897_p8), %v7057_v37, 0.0 }
 0x407   : > { %2768 = sbr.rel (%p3897_p8) target bundleno = 1193 (0x4a9), region = 56  ;;  %v2771_v11 = vadd.s32 (!%p3897_p8), 8, %v9951_v25  ;;  %v2772_v40 = vadd.s32 (!%p3897_p8), 16, %v9951_v25  ;;  %vm3028_vm2 = vcmp.lt.s32.totalorder (!%p3897_p8), %v9951_v25, %v7950_v19  ;;  %v2773_v32 = vadd.s32 (!%p3897_p8), 24, %v9951_v25 }
 0x408   : > { %v2774_v36 = vadd.s32 (!%p3897_p8), 32, %v9951_v25  ;;  %v2775_v45 = vadd.s32 (!%p3897_p8), 40, %v9951_v25  ;;  %v3898_v22 = vsel (!%p3897_p8), %vm3028_vm2, 1.0, %v4395_v30  ;;  %v2776_v51 = vadd.s32 (!%p3897_p8), 48, %v9951_v25 }
 0x409   : > { %vm3029_vm3 = vcmp.lt.s32.totalorder (!%p3897_p8), %v2771_v11, %v7950_v19  ;;  %vm3030_vm4 = vcmp.lt.s32.totalorder (!%p3897_p8), %v2772_v40, %v7950_v19  ;;  %v3412_v53 = vmul.f32 (!%p3897_p8), %v3898_v22, %v9952_v57  ;;  %vm3031_vm5 = vcmp.lt.s32.totalorder (!%p3897_p8), %v2773_v32, %v7950_v19 }
 0x40a   : > { %v3899_v3 = vsel (!%p3897_p8), %vm3029_vm3, 1.0, %v4395_v30  ;;  %v3900_v61 = vsel (!%p3897_p8), %vm3030_vm4, 1.0, %v4395_v30  ;;  %v9954_v44 = vmax.f32 (!%p3897_p8), %v7061_v8, 0.0  ;;  %v3901_v11 = vsel (!%p3897_p8), %vm3031_vm5, 1.0, %v4395_v30 }
 0x40b   : > { %v3413_v41 = vmul.f32 (!%p3897_p8), %v3899_v3, %v9953_v39  ;;  %vm3032_vm6 = vcmp.lt.s32.totalorder (!%p3897_p8), %v2774_v36, %v7950_v19  ;;  %3540 = vst [vmem:[#allocation6] sm:$0xff] (!%p3897_p8), %v3412_v53  ;;  %v9955_v47 = vmax.f32 (!%p3897_p8), %v7065_v17, 0.0  ;;  %vm3033_vm7 = vcmp.lt.s32.totalorder (!%p3897_p8), %v2775_v45, %v7950_v19 }
 0x40c   : > { %v3414_v38 = vmul.f32 (!%p3897_p8), %v3900_v61, %v9954_v44  ;;  %v3902_v22 = vsel (!%p3897_p8), %vm3032_vm6, 1.0, %v4395_v30  ;;  %vm3034_vm8 = vcmp.lt.s32.totalorder (!%p3897_p8), %v2776_v51, %v7950_v19  ;;  %v9956_v37 = vmax.f32 (!%p3897_p8), %v7069_v27, 0.0 }
 0x40d   : > { %v3415_v40 = vmul.f32 (!%p3897_p8), %v3901_v11, %v9955_v47  ;;  %3541 = vst [vmem:[#allocation6 + $0x8] sm:$0xff] (!%p3897_p8), %v3413_v41  ;;  %v3903_v44 = vsel (!%p3897_p8), %vm3033_vm7, 1.0, %v4395_v30  ;;  %v3904_v39 = vsel (!%p3897_p8), %vm3034_vm8, 1.0, %v4395_v30  ;;  %v2777_v32 = vadd.s32 (!%p3897_p8), 56, %v9951_v25 }
 0x40e   : > { %3542 = vst [vmem:[#allocation6 + $0x10] sm:$0xff] %v3414_v38  ;;  %v3416_v8 = vmul.f32 %v3902_v22, %v9956_v37  ;;  %v9957_v17 = vmax.f32 %v7073_v49, 0.0  ;;  %v9958_v57 = vmax.f32 %v7077_v7, 0.0  ;;  %v2778_v51 = vadd.s32 64, %v9951_v25 }
 0x40f   : > { %3543 = vst [vmem:[#allocation6 + $0x18] sm:$0xff] %v3415_v40  ;;  %v2779_v38 = vadd.s32 72, %v9951_v25  ;;  %vm3035_vm9 = vcmp.lt.s32.totalorder %v2777_v32, %v7950_v19  ;;  %v2780_v27 = vadd.s32 80, %v9951_v25  ;;  %v2781_v41 = vadd.s32 88, %v9951_v25 }
 0x410   : > { %v3417_v36 = vmul.f32 %v3903_v44, %v9957_v17  ;;  %v3418_v45 = vmul.f32 %v3904_v39, %v9958_v57  ;;  %3544 = vst [vmem:[#allocation6 + $0x20] sm:$0xff] %v3416_v8  ;;  %v2782_v53 = vadd.s32 96, %v9951_v25  ;;  %v3905_v49 = vsel %vm3035_vm9, 1.0, %v4395_v30 }
 0x411   : > { %vm3036_vm10 = vcmp.lt.s32.totalorder %v2778_v51, %v7950_v19  ;;  %vm3037_vm11 = vcmp.lt.s32.totalorder %v2779_v38, %v7950_v19  ;;  %v2783_v7 = vadd.s32 104, %v9951_v25  ;;  %v9959_v3 = vmax.f32 %v7081_v43, 0.0 }
 0x412   : > { %3545 = vst [vmem:[#allocation6 + $0x28] sm:$0xff] %v3417_v36  ;;  %3546 = vst [vmem:[#allocation6 + $0x30] sm:$0xff] %v3418_v45  ;;  %v3906_v11 = vsel %vm3036_vm10, 1.0, %v4395_v30  ;;  %v3907_v47 = vsel %vm3037_vm11, 1.0, %v4395_v30  ;;  %vm3038_vm12 = vcmp.lt.s32.totalorder %v2780_v27, %v7950_v19  ;;  %v9960_v40 = vmax.f32 %v7085_v23, 0.0 }
 0x413   : > { %v3419_v61 = vmul.f32 %v3905_v49, %v9959_v3  ;;  %v9961_v37 = vmax.f32 %v7089_v15, 0.0  ;;  %v3908_v44 = vsel %vm3038_vm12, 1.0, %v4395_v30  ;;  %vm3039_vm13 = vcmp.lt.s32.totalorder %v2781_v41, %v7950_v19 }
 0x414   : > { %v3420_v22 = vmul.f32 %v3906_v11, %v9960_v40  ;;  %v9962_v43 = vmax.f32 %v7093_v29, 0.0  ;;  %v3909_v32 = vsel %vm3039_vm13, 1.0, %v4395_v30  ;;  %vm3040_vm14 = vcmp.lt.s32.totalorder %v2782_v53, %v7950_v19 }
 0x415   : > { %v3421_v8 = vmul.f32 %v3907_v47, %v9961_v37  ;;  %3547 = vst [vmem:[#allocation6 + $0x38] sm:$0xff] %v3419_v61  ;;  %vm3041_vm15 = vcmp.lt.s32.totalorder %v2783_v7, %v7950_v19  ;;  %v9963_v23 = vmax.f32 %v7097_v21, 0.0  ;;  %v3910_v17 = vsel %vm3040_vm14, 1.0, %v4395_v30 }
 0x416   : > { %v3422_v39 = vmul.f32 %v3908_v44, %v9962_v43  ;;  %3548 = vst [vmem:[#allocation6 + $0x40] sm:$0xff] %v3420_v22  ;;  %v3911_v36 = vsel %vm3041_vm15, 1.0, %v4395_v30  ;;  %v2784_v57 = vadd.s32 112, %v9951_v25  ;;  %v9964_v29 = vmax.f32 %v7101_v35, 0.0 }
 0x417   : > { %3549 = vst [vmem:[#allocation6 + $0x48] sm:$0xff] %v3421_v8  ;;  %v3423_v15 = vmul.f32 %v3909_v32, %v9963_v23  ;;  %v9965_v51 = vmax.f32 %v7105_v2, 0.0  ;;  %v2785_v27 = vadd.s32 120, %v9951_v25  ;;  %v2786_v41 = vadd.s32 128, %v9951_v25 }
 0x418   : > { %3550 = vst [vmem:[#allocation6 + $0x50] sm:$0xff] %v3422_v39  ;;  %v3424_v45 = vmul.f32 %v3910_v17, %v9964_v29  ;;  %vm3042_vm0 = vcmp.lt.s32.totalorder %v2784_v57, %v7950_v19  ;;  %v2787_v21 = vadd.s32 136, %v9951_v25  ;;  %v2788_v53 = vadd.s32 144, %v9951_v25 }
 0x419   : > { %v3425_v38 = vmul.f32 %v3911_v36, %v9965_v51  ;;  %3551 = vst [vmem:[#allocation6 + $0x58] sm:$0xff] %v3423_v15  ;;  %v2789_v49 = vadd.s32 152, %v9951_v25  ;;  %v3912_v35 = vsel %vm3042_vm0, 1.0, %v4395_v30  ;;  %vm3043_vm1 = vcmp.lt.s32.totalorder %v2785_v27, %v7950_v19 }
 0x41a   : > { %3552 = vst [vmem:[#allocation6 + $0x60] sm:$0xff] %v3424_v45  ;;  %vm3044_vm2 = vcmp.lt.s32.totalorder %v2786_v41, %v7950_v19  ;;  %v2790_v2 = vadd.s32 160, %v9951_v25  ;;  %v9966_v7 = vmax.f32 %v7109_v5, 0.0  ;;  %v3913_v61 = vsel %vm3043_vm1, 1.0, %v4395_v30 }
 0x41b   : > { %3553 = vst [vmem:[#allocation6 + $0x68] sm:$0xff] %v3425_v38  ;;  %v3914_v11 = vsel %vm3044_vm2, 1.0, %v4395_v30  ;;  %vm3045_vm3 = vcmp.lt.s32.totalorder %v2787_v21, %v7950_v19  ;;  %v9967_v47 = vmax.f32 %v7113_v4, 0.0  ;;  %v9968_v22 = vmax.f32 %v7117_v31, 0.0 }
 0x41c   : > { %v3426_v3 = vmul.f32 %v3912_v35, %v9966_v7  ;;  %v3915_v8 = vsel %vm3045_vm3, 1.0, %v4395_v30  ;;  %vm3046_vm4 = vcmp.lt.s32.totalorder %v2788_v53, %v7950_v19  ;;  %v9969_v5 = vmax.f32 %v7121_v33, 0.0 }
 0x41d   : > { %v3427_v40 = vmul.f32 %v3913_v61, %v9967_v47  ;;  %v3428_v37 = vmul.f32 %v3914_v11, %v9968_v22  ;;  %v3916_v43 = vsel %vm3046_vm4, 1.0, %v4395_v30  ;;  %vm3047_vm5 = vcmp.lt.s32.totalorder %v2789_v49, %v7950_v19 }
 0x41e   : > { %3554 = vst [vmem:[#allocation6 + $0x70] sm:$0xff] %v3426_v3  ;;  %v3429_v44 = vmul.f32 %v3915_v8, %v9969_v5  ;;  %vm3048_vm6 = vcmp.lt.s32.totalorder %v2790_v2, %v7950_v19  ;;  %v9970_v4 = vmax.f32 %v7125_v13, 0.0  ;;  %v3917_v39 = vsel %vm3047_vm5, 1.0, %v4395_v30 }
 0x41f   : > { %3555 = vst [vmem:[#allocation6 + $0x78] sm:$0xff] %v3427_v40  ;;  %3556 = vst [vmem:[#allocation6 + $0x80] sm:$0xff] %v3428_v37  ;;  %v3918_v32 = vsel %vm3048_vm6, 1.0, %v4395_v30  ;;  %v2791_v23 = vadd.s32 168, %v9951_v25  ;;  %v9971_v33 = vmax.f32 %v7129_v6, 0.0  ;;  %v9972_v17 = vmax.f32 %v7133_v12, 0.0 }
 0x420   : > { %v3430_v31 = vmul.f32 %v3916_v43, %v9970_v4  ;;  %3557 = vst [vmem:[#allocation6 + $0x88] sm:$0xff] %v3429_v44  ;;  %v2792_v57 = vadd.s32 176, %v9951_v25  ;;  %v2793_v29 = vadd.s32 184, %v9951_v25  ;;  %v2794_v13 = vadd.s32 192, %v9951_v25  ;;  %v9979_v37 = vld [vmem:[#allocation170_spill] sm:$0xff] }
 0x421   : > { %v3431_v15 = vmul.f32 %v3917_v39, %v9971_v33  ;;  %v3432_v36 = vmul.f32 %v3918_v32, %v9972_v17  ;;  %vm3049_vm7 = vcmp.lt.s32.totalorder %v2791_v23, %v7950_v19  ;;  %v2795_v45 = vadd.s32 200, %v9951_v25  ;;  %v9981_v32 = vld [vmem:[#allocation171_spill] sm:$0xff] }
 0x422   : > { %3558 = vst [vmem:[#allocation6 + $0x90] sm:$0xff] %v3430_v31  ;;  %v2796_v51 = vadd.s32 208, %v9951_v25  ;;  %v3919_v6 = vsel %vm3049_vm7, 1.0, %v4395_v30  ;;  %vm3050_vm8 = vcmp.lt.s32.totalorder %v2792_v57, %v7950_v19  ;;  %vm3051_vm9 = vcmp.lt.s32.totalorder %v2793_v29, %v7950_v19 }
 0x423   : > { %3559 = vst [vmem:[#allocation6 + $0x98] sm:$0xff] %v3431_v15  ;;  %3560 = vst [vmem:[#allocation6 + $0xa0] sm:$0xff] %v3432_v36  ;;  %v2797_v12 = vadd.s32 216, %v9951_v25  ;;  %v9973_v38 = vmax.f32 %v7137_v16, 0.0  ;;  %v3920_v41 = vsel %vm3050_vm8, 1.0, %v4395_v30  ;;  %v3921_v21 = vsel %vm3051_vm9, 1.0, %v4395_v30 }
 0x424   : > { %vm3052_vm10 = vcmp.lt.s32.totalorder %v2794_v13, %v7950_v19  ;;  %v9974_v53 = vmax.f32 %v7141_v10, 0.0  ;;  %v9975_v35 = vmax.f32 %v7145_v14, 0.0  ;;  %vm3053_vm11 = vcmp.lt.s32.totalorder %v2795_v45, %v7950_v19  ;;  %v9983_v36 = vld [vmem:[#allocation172_spill] sm:$0xff]  ;;  %v9985_v13 = vld [vmem:[#allocation173_spill] sm:$0xff] }
 0x425   : > { %v3433_v27 = vmul.f32 %v3919_v6, %v9973_v38  ;;  %v3922_v7 = vsel %vm3052_vm10, 1.0, %v4395_v30  ;;  %v9976_v16 = vmax.f32 %v7149_v20, 0.0  ;;  %v3923_v61 = vsel %vm3053_vm11, 1.0, %v4395_v30 }
 0x426   : > { %v3434_v49 = vmul.f32 %v3920_v41, %v9974_v53  ;;  %v3435_v2 = vmul.f32 %v3921_v21, %v9975_v35  ;;  %vm3054_vm12 = vcmp.lt.s32.totalorder %v2796_v51, %v7950_v19  ;;  %vm3055_vm13 = vcmp.lt.s32.totalorder %v2797_v12, %v7950_v19  ;;  %v9987_v12 = vld [vmem:[#allocation174_spill] sm:$0xff]  ;;  %v9989_v21 = vld [vmem:[#allocation177_spill] sm:$0xff] }
 0x427   : > { %3561 = vst [vmem:[#allocation6 + $0xa8] sm:$0xff] %v3433_v27  ;;  %v3436_v3 = vmul.f32 %v3922_v7, %v9976_v16  ;;  %v9977_v10 = vmax.f32 %v7153_v24, 0.0  ;;  %v3924_v11 = vsel %vm3054_vm12, 1.0, %v4395_v30  ;;  %v3925_v47 = vsel %vm3055_vm13, 1.0, %v4395_v30  ;;  %v9991_v16 = vld [vmem:[#allocation178_spill] sm:$0xff] }
 0x428   : > { %3562 = vst [vmem:[#allocation6 + $0xb0] sm:$0xff] %v3434_v49  ;;  %3563 = vst [vmem:[#allocation6 + $0xb8] sm:$0xff] %v3435_v2  ;;  %v2798_v40 = vadd.s32 224, %v9951_v25  ;;  %v9978_v20 = vmax.f32 %v7157_v18, 0.0  ;;  %v9980_v8 = vmax.f32 %v9979_v37, 0.0  ;;  %v2799_v44 = vadd.s32 232, %v9951_v25 }
 0x429   : > { %v3437_v14 = vmul.f32 %v3923_v61, %v9977_v10  ;;  %3564 = vst [vmem:[#allocation6 + $0xc0] sm:$0xff] %v3436_v3  ;;  %v2800_v43 = vadd.s32 240, %v9951_v25  ;;  %v2801_v24 = vadd.s32 248, %v9951_v25  ;;  %v2802_v4 = vadd.s32 256, %v9951_v25  ;;  %v9993_v10 = vld [vmem:[#allocation179_spill] sm:$0xff] }
 0x42a   : > { %v3438_v22 = vmul.f32 %v3924_v11, %v9978_v20  ;;  %v3439_v5 = vmul.f32 %v3925_v47, %v9980_v8  ;;  %vm3056_vm14 = vcmp.lt.s32.totalorder %v2798_v40, %v7950_v19  ;;  %v2803_v31 = vadd.s32 264, %v9951_v25 }
 0x42b   : > { %3565 = vst [vmem:[#allocation6 + $0xc8] sm:$0xff] %v3437_v14  ;;  %v3926_v18 = vsel %vm3056_vm14, 1.0, %v4395_v30  ;;  %vm3057_vm15 = vcmp.lt.s32.totalorder %v2799_v44, %v7950_v19  ;;  %vm3058_vm0 = vcmp.lt.s32.totalorder %v2800_v43, %v7950_v19  ;;  %v2804_v39 = vadd.s32 272, %v9951_v25  ;;  %v9995_v44 = vld [vmem:[#allocation180_spill] sm:$0xff] }
 0x42c   : > { %3566 = vst [vmem:[#allocation6 + $0xd0] sm:$0xff] %v3438_v22  ;;  %3567 = vst [vmem:[#allocation6 + $0xd8] sm:$0xff] %v3439_v5  ;;  %v9982_v23 = vmax.f32 %v9981_v32, 0.0  ;;  %v3927_v15 = vsel %vm3057_vm15, 1.0, %v4395_v30  ;;  %v3928_v17 = vsel %vm3058_vm0, 1.0, %v4395_v30  ;;  %vm3059_vm1 = vcmp.lt.s32.totalorder %v2801_v24, %v7950_v19 }
 0x42d   : > { %v9984_v57 = vmax.f32 %v9983_v36, 0.0  ;;  %v9986_v45 = vmax.f32 %v9985_v13, 0.0  ;;  %v3929_v6 = vsel %vm3059_vm1, 1.0, %v4395_v30  ;;  %vm3060_vm2 = vcmp.lt.s32.totalorder %v2802_v4, %v7950_v19  ;;  %v10001_v36 = vld [vmem:[#allocation183_spill] sm:$0xff] }
 0x42e   : > { %v3440_v33 = vmul.f32 %v3926_v18, %v9982_v23  ;;  %v9988_v38 = vmax.f32 %v9987_v12, 0.0  ;;  %v3930_v41 = vsel %vm3060_vm2, 1.0, %v4395_v30  ;;  %vm3061_vm3 = vcmp.lt.s32.totalorder %v2803_v31, %v7950_v19  ;;  %v9997_v18 = vld [vmem:[#allocation181_spill] sm:$0xff]  ;;  %v9999_v23 = vld [vmem:[#allocation182_spill] sm:$0xff] }
 0x42f   : > { %v3441_v29 = vmul.f32 %v3927_v15, %v9984_v57  ;;  %v3442_v51 = vmul.f32 %v3928_v17, %v9986_v45  ;;  %vm3062_vm4 = vcmp.lt.s32.totalorder %v2804_v39, %v7950_v19  ;;  %v9990_v53 = vmax.f32 %v9989_v21, 0.0  ;;  %v10003_v45 = vld [vmem:[#allocation184_spill] sm:$0xff] }
 0x430   : > { %3568 = vst [vmem:[#allocation6 + $0xe0] sm:$0xff] %v3440_v33  ;;  %v3443_v27 = vmul.f32 %v3929_v6, %v9988_v38  ;;  %v3931_v35 = vsel %vm3061_vm3, 1.0, %v4395_v30  ;;  %v3932_v2 = vsel %vm3062_vm4, 1.0, %v4395_v30  ;;  %v2805_v7 = vadd.s32 280, %v9951_v25 }
 0x431   : > { %3569 = vst [vmem:[#allocation6 + $0xe8] sm:$0xff] %v3441_v29  ;;  %3570 = vst [vmem:[#allocation6 + $0xf0] sm:$0xff] %v3442_v51  ;;  %v3444_v49 = vmul.f32 %v3930_v41, %v9990_v53  ;;  %v9992_v3 = vmax.f32 %v9991_v16, 0.0  ;;  %v9994_v14 = vmax.f32 %v9993_v10, 0.0  ;;  %v2806_v47 = vadd.s32 288, %v9951_v25  ;;  %v10005_v41 = vld [vmem:[#allocation185_spill] sm:$0xff] }
 0x432   : > { %3571 = vst [vmem:[#allocation6 + $0xf8] sm:$0xff] %v3443_v27  ;;  %v2807_v40 = vadd.s32 296, %v9951_v25  ;;  %vm3063_vm5 = vcmp.lt.s32.totalorder %v2805_v7, %v7950_v19  ;;  %v2808_v20 = vadd.s32 304, %v9951_v25  ;;  %v2809_v22 = vadd.s32 312, %v9951_v25 }
 0x433   : > { %v3445_v61 = vmul.f32 %v3931_v35, %v9992_v3  ;;  %v3446_v11 = vmul.f32 %v3932_v2, %v9994_v14  ;;  %3572 = vst [vmem:[#allocation6 + $0x100] sm:$0xff] %v3444_v49  ;;  %v2810_v37 = vadd.s32 320, %v9951_v25  ;;  %v3933_v8 = vsel %vm3063_vm5, 1.0, %v4395_v30  ;;  %v10007_v49 = vld [vmem:[#allocation186_spill] sm:$0xff] }
 0x434   : > { %vm3064_vm6 = vcmp.lt.s32.totalorder %v2806_v47, %v7950_v19  ;;  %vm3065_vm7 = vcmp.lt.s32.totalorder %v2807_v40, %v7950_v19  ;;  %v2811_v5 = vadd.s32 328, %v9951_v25  ;;  %v9996_v43 = vmax.f32 %v9995_v44, 0.0  ;;  %v10009_v47 = vld [vmem:[#allocation175_spill] sm:$0xff] }
 0x435   : > { %3573 = vst [vmem:[#allocation6 + $0x108] sm:$0xff] %v3445_v61  ;;  %3574 = vst [vmem:[#allocation6 + $0x110] sm:$0xff] %v3446_v11  ;;  %v3934_v4 = vsel %vm3064_vm6, 1.0, %v4395_v30  ;;  %v3935_v31 = vsel %vm3065_vm7, 1.0, %v4395_v30  ;;  %vm3066_vm8 = vcmp.lt.s32.totalorder %v2808_v20, %v7950_v19  ;;  %v9998_v39 = vmax.f32 %v9997_v18, 0.0  ;;  %v10015_v18 = vld [vmem:[#allocation102_spill] sm:$0xff] }
 0x436   : > { %v3447_v24 = vmul.f32 %v3933_v8, %v9996_v43  ;;  %v10000_v33 = vmax.f32 %v9999_v23, 0.0  ;;  %v3936_v17 = vsel %vm3066_vm8, 1.0, %v4395_v30  ;;  %vm3067_vm9 = vcmp.lt.s32.totalorder %v2809_v22, %v7950_v19  ;;  %v10011_v8 = vld [vmem:[#allocation176_spill] sm:$0xff]  ;;  %v10013_v43 = vld [vmem:[#allocation101_spill] sm:$0xff] }
 0x437   : > { %v3448_v32 = vmul.f32 %v3934_v4, %v9998_v39  ;;  %v10002_v57 = vmax.f32 %v10001_v36, 0.0  ;;  %v3937_v13 = vsel %vm3067_vm9, 1.0, %v4395_v30  ;;  %vm3068_vm10 = vcmp.lt.s32.totalorder %v2810_v37, %v7950_v19 }
 0x438   : > { %v3449_v15 = vmul.f32 %v3935_v31, %v10000_v33  ;;  %3575 = vst [vmem:[#allocation6 + $0x118] sm:$0xff] %v3447_v24  ;;  %vm3069_vm11 = vcmp.lt.s32.totalorder %v2811_v5, %v7950_v19  ;;  %v10004_v51 = vmax.f32 %v10003_v45, 0.0  ;;  %v3938_v12 = vsel %vm3068_vm10, 1.0, %v4395_v30  ;;  %v10017_v33 = vld [vmem:[#allocation103_spill] sm:$0xff] }
 0x439   : > { %v3450_v29 = vmul.f32 %v3936_v17, %v10002_v57  ;;  %3576 = vst [vmem:[#allocation6 + $0x120] sm:$0xff] %v3448_v32  ;;  %v3939_v38 = vsel %vm3069_vm11, 1.0, %v4395_v30  ;;  %v2812_v27 = vadd.s32 336, %v9951_v25  ;;  %v10006_v21 = vmax.f32 %v10005_v41, 0.0 }
 0x43a   : > { %3577 = vst [vmem:[#allocation6 + $0x128] sm:$0xff] %v3449_v15  ;;  %v3451_v6 = vmul.f32 %v3937_v13, %v10004_v51  ;;  %v10008_v35 = vmax.f32 %v10007_v49, 0.0  ;;  %v2813_v7 = vadd.s32 344, %v9951_v25  ;;  %v2814_v16 = vadd.s32 352, %v9951_v25  ;;  %v10019_v13 = vld [vmem:[#allocation104_spill] sm:$0xff] }
 0x43b   : > { %3578 = vst [vmem:[#allocation6 + $0x130] sm:$0xff] %v3450_v29  ;;  %v3452_v53 = vmul.f32 %v3938_v12, %v10006_v21  ;;  %vm3070_vm12 = vcmp.lt.s32.totalorder %v2812_v27, %v7950_v19  ;;  %v2815_v3 = vadd.s32 360, %v9951_v25  ;;  %v2816_v61 = vadd.s32 368, %v9951_v25 }
 0x43c   : > { %v3453_v2 = vmul.f32 %v3939_v38, %v10008_v35  ;;  %3579 = vst [vmem:[#allocation6 + $0x138] sm:$0xff] %v3451_v6  ;;  %v2817_v10 = vadd.s32 376, %v9951_v25  ;;  %v3940_v14 = vsel %vm3070_vm12, 1.0, %v4395_v30  ;;  %vm3071_vm13 = vcmp.lt.s32.totalorder %v2813_v7, %v7950_v19  ;;  %v10021_v6 = vld [vmem:[#allocation105_spill] sm:$0xff]  ;;  %v10023_v7 = vld [vmem:[#allocation106_spill] sm:$0xff] }
 0x43d   : > { %3580 = vst [vmem:[#allocation6 + $0x140] sm:$0xff] %v3452_v53  ;;  %vm3072_vm14 = vcmp.lt.s32.totalorder %v2814_v16, %v7950_v19  ;;  %v2818_v11 = vadd.s32 384, %v9951_v25  ;;  %v10010_v40 = vmax.f32 %v10009_v47, 0.0  ;;  %v3941_v22 = vsel %vm3071_vm13, 1.0, %v4395_v30 }
 0x43e   : > { %3581 = vst [vmem:[#allocation6 + $0x148] sm:$0xff] %v3453_v2  ;;  %v3942_v37 = vsel %vm3072_vm14, 1.0, %v4395_v30  ;;  %vm3073_vm15 = vcmp.lt.s32.totalorder %v2815_v3, %v7950_v19  ;;  %v10012_v5 = vmax.f32 %v10011_v8, 0.0  ;;  %v10014_v24 = vmax.f32 %v10013_v43, 0.0  ;;  %v10029_v8 = vld [vmem:[#allocation109_spill] sm:$0xff] }
 0x43f   : > { %v3454_v20 = vmul.f32 %v3940_v14, %v10010_v40  ;;  %v3943_v31 = vsel %vm3073_vm15, 1.0, %v4395_v30  ;;  %vm3074_vm0 = vcmp.lt.s32.totalorder %v2816_v61, %v7950_v19  ;;  %v10016_v39 = vmax.f32 %v10015_v18, 0.0  ;;  %v10025_v14 = vld [vmem:[#allocation107_spill] sm:$0xff]  ;;  %v10027_v40 = vld [vmem:[#allocation108_spill] sm:$0xff] }
 0x440   : > { %v3455_v44 = vmul.f32 %v3941_v22, %v10012_v5  ;;  %v3456_v4 = vmul.f32 %v3942_v37, %v10014_v24  ;;  %v3944_v23 = vsel %vm3074_vm0, 1.0, %v4395_v30  ;;  %vm3075_vm1 = vcmp.lt.s32.totalorder %v2817_v10, %v7950_v19  ;;  %v10031_v24 = vld [vmem:[#allocation110_spill] sm:$0xff] }
 0x441   : > { %3582 = vst [vmem:[#allocation6 + $0x150] sm:$0xff] %v3454_v20  ;;  %v3457_v32 = vmul.f32 %v3943_v31, %v10016_v39  ;;  %vm3076_vm2 = vcmp.lt.s32.totalorder %v2818_v11, %v7950_v19  ;;  %v10018_v15 = vmax.f32 %v10017_v33, 0.0  ;;  %v3945_v36 = vsel %vm3075_vm1, 1.0, %v4395_v30 }
 0x442   : > { %3583 = vst [vmem:[#allocation6 + $0x158] sm:$0xff] %v3455_v44  ;;  %3584 = vst [vmem:[#allocation6 + $0x160] sm:$0xff] %v3456_v4  ;;  %v3946_v57 = vsel %vm3076_vm2, 1.0, %v4395_v30  ;;  %v2819_v29 = vadd.s32 392, %v9951_v25  ;;  %v10020_v45 = vmax.f32 %v10019_v13, 0.0  ;;  %v10022_v12 = vmax.f32 %v10021_v6, 0.0 }
 0x443   : > { %v3458_v17 = vmul.f32 %v3944_v23, %v10018_v15  ;;  %3585 = vst [vmem:[#allocation6 + $0x168] sm:$0xff] %v3457_v32  ;;  %v2820_v27 = vadd.s32 400, %v9951_v25  ;;  %v2821_v41 = vadd.s32 408, %v9951_v25  ;;  %v2822_v21 = vadd.s32 416, %v9951_v25  ;;  %v10033_v23 = vld [vmem:[#allocation111_spill] sm:$0xff] }
 0x444   : > { %v3459_v51 = vmul.f32 %v3945_v36, %v10020_v45  ;;  %v3460_v38 = vmul.f32 %v3946_v57, %v10022_v12  ;;  %vm3077_vm3 = vcmp.lt.s32.totalorder %v2819_v29, %v7950_v19  ;;  %v2823_v53 = vadd.s32 424, %v9951_v25 }
 0x445   : > { %3586 = vst [vmem:[#allocation6 + $0x170] sm:$0xff] %v3458_v17  ;;  %v2824_v49 = vadd.s32 432, %v9951_v25  ;;  %v3947_v35 = vsel %vm3077_vm3, 1.0, %v4395_v30  ;;  %vm3078_vm4 = vcmp.lt.s32.totalorder %v2820_v27, %v7950_v19  ;;  %vm3079_vm5 = vcmp.lt.s32.totalorder %v2821_v41, %v7950_v19  ;;  %v10035_v17 = vld [vmem:[#allocation112_spill] sm:$0xff]  ;;  %v10037_v27 = vld [vmem:[#allocation113_spill] sm:$0xff] }
 0x446   : > { %3587 = vst [vmem:[#allocation6 + $0x178] sm:$0xff] %v3459_v51  ;;  %3588 = vst [vmem:[#allocation6 + $0x180] sm:$0xff] %v3460_v38  ;;  %v2825_v2 = vadd.s32 440, %v9951_v25  ;;  %v10024_v16 = vmax.f32 %v10023_v7, 0.0  ;;  %v3948_v61 = vsel %vm3078_vm4, 1.0, %v4395_v30  ;;  %v3949_v10 = vsel %vm3079_vm5, 1.0, %v4395_v30 }
 0x447   : > { %vm3080_vm6 = vcmp.lt.s32.totalorder %v2822_v21, %v7950_v19  ;;  %v10026_v11 = vmax.f32 %v10025_v14, 0.0  ;;  %v10028_v20 = vmax.f32 %v10027_v40, 0.0  ;;  %vm3081_vm7 = vcmp.lt.s32.totalorder %v2823_v53, %v7950_v19  ;;  %v10043_v14 = vld [vmem:[#allocation116_spill] sm:$0xff] }
 0x448   : > { %v3461_v3 = vmul.f32 %v3947_v35, %v10024_v16  ;;  %v3950_v37 = vsel %vm3080_vm6, 1.0, %v4395_v30  ;;  %v10030_v5 = vmax.f32 %v10029_v8, 0.0  ;;  %v3951_v43 = vsel %vm3081_vm7, 1.0, %v4395_v30  ;;  %v10039_v35 = vld [vmem:[#allocation114_spill] sm:$0xff]  ;;  %v10041_v16 = vld [vmem:[#allocation115_spill] sm:$0xff] }
 0x449   : > { %v3462_v47 = vmul.f32 %v3948_v61, %v10026_v11  ;;  %v3463_v22 = vmul.f32 %v3949_v10, %v10028_v20  ;;  %vm3082_vm8 = vcmp.lt.s32.totalorder %v2824_v49, %v7950_v19  ;;  %vm3083_vm9 = vcmp.lt.s32.totalorder %v2825_v2, %v7950_v19  ;;  %v10045_v20 = vld [vmem:[#allocation117_spill] sm:$0xff] }
 0x44a   : > { %3589 = vst [vmem:[#allocation6 + $0x188] sm:$0xff] %v3461_v3  ;;  %v3464_v44 = vmul.f32 %v3950_v37, %v10030_v5  ;;  %v10032_v4 = vmax.f32 %v10031_v24, 0.0  ;;  %v3952_v18 = vsel %vm3082_vm8, 1.0, %v4395_v30  ;;  %v3953_v39 = vsel %vm3083_vm9, 1.0, %v4395_v30 }
 0x44b   : > { %3590 = vst [vmem:[#allocation6 + $0x190] sm:$0xff] %v3462_v47  ;;  %3591 = vst [vmem:[#allocation6 + $0x198] sm:$0xff] %v3463_v22  ;;  %v2826_v32 = vadd.s32 448, %v9951_v25  ;;  %v10034_v33 = vmax.f32 %v10033_v23, 0.0  ;;  %v10036_v36 = vmax.f32 %v10035_v17, 0.0  ;;  %v2827_v29 = vadd.s32 456, %v9951_v25 }
 0x44c   : > { %v3465_v31 = vmul.f32 %v3951_v43, %v10032_v4  ;;  %3592 = vst [vmem:[#allocation6 + $0x1a0] sm:$0xff] %v3464_v44  ;;  %v2828_v13 = vadd.s32 464, %v9951_v25  ;;  %v2829_v45 = vadd.s32 472, %v9951_v25  ;;  %v2830_v51 = vadd.s32 480, %v9951_v25  ;;  %v10047_v43 = vld [vmem:[#allocation118_spill] sm:$0xff] }
 0x44d   : > { %v3466_v15 = vmul.f32 %v3952_v18, %v10034_v33  ;;  %v3467_v57 = vmul.f32 %v3953_v39, %v10036_v36  ;;  %vm3084_vm10 = vcmp.lt.s32.totalorder %v2826_v32, %v7950_v19  ;;  %v2831_v6 = vadd.s32 488, %v9951_v25 }
 0x44e   : > { %3593 = vst [vmem:[#allocation6 + $0x1a8] sm:$0xff] %v3465_v31  ;;  %v3954_v12 = vsel %vm3084_vm10, 1.0, %v4395_v30  ;;  %vm3085_vm11 = vcmp.lt.s32.totalorder %v2827_v29, %v7950_v19  ;;  %vm3086_vm12 = vcmp.lt.s32.totalorder %v2828_v13, %v7950_v19  ;;  %v2832_v38 = vadd.s32 496, %v9951_v25  ;;  %v10049_v31 = vld [vmem:[#allocation119_spill] sm:$0xff]  ;;  %v10051_v29 = vld [vmem:[#allocation120_spill] sm:$0xff] }
 0x44f   : > { %3594 = vst [vmem:[#allocation6 + $0x1b0] sm:$0xff] %v3466_v15  ;;  %3595 = vst [vmem:[#allocation6 + $0x1b8] sm:$0xff] %v3467_v57  ;;  %v10038_v41 = vmax.f32 %v10037_v27, 0.0  ;;  %v3955_v53 = vsel %vm3085_vm11, 1.0, %v4395_v30  ;;  %v3956_v49 = vsel %vm3086_vm12, 1.0, %v4395_v30  ;;  %vm3087_vm13 = vcmp.lt.s32.totalorder %v2829_v45, %v7950_v19 }
 0x450   : > { %v10040_v2 = vmax.f32 %v10039_v35, 0.0  ;;  %v10042_v3 = vmax.f32 %v10041_v16, 0.0  ;;  %v3957_v10 = vsel %vm3087_vm13, 1.0, %v4395_v30  ;;  %vm3088_vm14 = vcmp.lt.s32.totalorder %v2830_v51, %v7950_v19  ;;  %v10057_v35 = vld [vmem:[#allocation123_spill] sm:$0xff] }
 0x451   : > { %v3468_v21 = vmul.f32 %v3954_v12, %v10038_v41  ;;  %v10044_v11 = vmax.f32 %v10043_v14, 0.0  ;;  %v3958_v40 = vsel %vm3088_vm14, 1.0, %v4395_v30  ;;  %vm3089_vm15 = vcmp.lt.s32.totalorder %v2831_v6, %v7950_v19  ;;  %v10053_v12 = vld [vmem:[#allocation121_spill] sm:$0xff]  ;;  %v10055_v41 = vld [vmem:[#allocation122_spill] sm:$0xff] }
 0x452   : > { %v3469_v7 = vmul.f32 %v3955_v53, %v10040_v2  ;;  %v3470_v61 = vmul.f32 %v3956_v49, %v10042_v3  ;;  %vm3090_vm0 = vcmp.lt.s32.totalorder %v2832_v38, %v7950_v19  ;;  %v10046_v22 = vmax.f32 %v10045_v20, 0.0  ;;  %v10059_v3 = vld [vmem:[#allocation124_spill] sm:$0xff] }
 0x453   : > { %3596 = vst [vmem:[#allocation6 + $0x1c0] sm:$0xff] %v3468_v21  ;;  %v3471_v47 = vmul.f32 %v3957_v10, %v10044_v11  ;;  %v3959_v8 = vsel %vm3089_vm15, 1.0, %v4395_v30  ;;  %v3960_v5 = vsel %vm3090_vm0, 1.0, %v4395_v30  ;;  %v2833_v44 = vadd.s32 504, %v9951_v25 }
 0x454   : > { %3597 = vst [vmem:[#allocation6 + $0x1c8] sm:$0xff] %v3469_v7  ;;  %3598 = vst [vmem:[#allocation6 + $0x1d0] sm:$0xff] %v3470_v61  ;;  %v3472_v37 = vmul.f32 %v3958_v40, %v10046_v22  ;;  %v10048_v24 = vmax.f32 %v10047_v43, 0.0  ;;  %v10050_v18 = vmax.f32 %v10049_v31, 0.0  ;;  %v2834_v32 = vadd.s32 512, %v9951_v25  ;;  %v10061_v40 = vld [vmem:[#allocation125_spill] sm:$0xff] }
 0x455   : > { %3599 = vst [vmem:[#allocation6 + $0x1d8] sm:$0xff] %v3471_v47  ;;  %v2835_v23 = vadd.s32 520, %v9951_v25  ;;  %vm3091_vm1 = vcmp.lt.s32.totalorder %v2833_v44, %v7950_v19  ;;  %v2836_v33 = vadd.s32 528, %v9951_v25  ;;  %v2837_v15 = vadd.s32 536, %v9951_v25 }
 0x456   : > { %v3473_v4 = vmul.f32 %v3959_v8, %v10048_v24  ;;  %v3474_v39 = vmul.f32 %v3960_v5, %v10050_v18  ;;  %3600 = vst [vmem:[#allocation6 + $0x1e0] sm:$0xff] %v3472_v37  ;;  %v2838_v17 = vadd.s32 544, %v9951_v25  ;;  %v3961_v36 = vsel %vm3091_vm1, 1.0, %v4395_v30  ;;  %v10063_v37 = vld [vmem:[#allocation126_spill] sm:$0xff] }
 0x457   : > { %vm3092_vm2 = vcmp.lt.s32.totalorder %v2834_v32, %v7950_v19  ;;  %vm3093_vm3 = vcmp.lt.s32.totalorder %v2835_v23, %v7950_v19  ;;  %v2839_v57 = vadd.s32 552, %v9951_v25  ;;  %v10052_v13 = vmax.f32 %v10051_v29, 0.0  ;;  %v10065_v32 = vld [vmem:[#allocation127_spill] sm:$0xff] }
 0x458   : > { %3601 = vst [vmem:[#allocation6 + $0x1e8] sm:$0xff] %v3473_v4  ;;  %3602 = vst [vmem:[#allocation6 + $0x1f0] sm:$0xff] %v3474_v39  ;;  %v3962_v51 = vsel %vm3092_vm2, 1.0, %v4395_v30  ;;  %v3963_v6 = vsel %vm3093_vm3, 1.0, %v4395_v30  ;;  %vm3094_vm4 = vcmp.lt.s32.totalorder %v2836_v33, %v7950_v19  ;;  %v10054_v38 = vmax.f32 %v10053_v12, 0.0  ;;  %v10071_v12 = vld [vmem:[#allocation130_spill] sm:$0xff] }
 0x459   : > { %v3475_v45 = vmul.f32 %v3961_v36, %v10052_v13  ;;  %v10056_v21 = vmax.f32 %v10055_v41, 0.0  ;;  %v3964_v49 = vsel %vm3094_vm4, 1.0, %v4395_v30  ;;  %vm3095_vm5 = vcmp.lt.s32.totalorder %v2837_v15, %v7950_v19  ;;  %v10067_v36 = vld [vmem:[#allocation128_spill] sm:$0xff]  ;;  %v10069_v13 = vld [vmem:[#allocation129_spill] sm:$0xff] }
 0x45a   : > { %v3476_v27 = vmul.f32 %v3962_v51, %v10054_v38  ;;  %v10058_v2 = vmax.f32 %v10057_v35, 0.0  ;;  %v3965_v16 = vsel %vm3095_vm5, 1.0, %v4395_v30  ;;  %vm3096_vm6 = vcmp.lt.s32.totalorder %v2838_v17, %v7950_v19 }
 0x45b   : > { %v3477_v53 = vmul.f32 %v3963_v6, %v10056_v21  ;;  %3603 = vst [vmem:[#allocation6 + $0x1f8] sm:$0xff] %v3475_v45  ;;  %vm3097_vm7 = vcmp.lt.s32.totalorder %v2839_v57, %v7950_v19  ;;  %v10060_v61 = vmax.f32 %v10059_v3, 0.0  ;;  %v3966_v14 = vsel %vm3096_vm6, 1.0, %v4395_v30  ;;  %v10073_v21 = vld [vmem:[#allocation131_spill] sm:$0xff] }
 0x45c   : > { %v3478_v7 = vmul.f32 %v3964_v49, %v10058_v2  ;;  %3604 = vst [vmem:[#allocation6 + $0x200] sm:$0xff] %v3476_v27  ;;  %v3967_v11 = vsel %vm3097_vm7, 1.0, %v4395_v30  ;;  %v2840_v47 = vadd.s32 560, %v9951_v25  ;;  %v10062_v20 = vmax.f32 %v10061_v40, 0.0 }
 0x45d   : > { %3605 = vst [vmem:[#allocation6 + $0x208] sm:$0xff] %v3477_v53  ;;  %v3479_v10 = vmul.f32 %v3965_v16, %v10060_v61  ;;  %v10064_v8 = vmax.f32 %v10063_v37, 0.0  ;;  %v2841_v44 = vadd.s32 568, %v9951_v25  ;;  %v2842_v43 = vadd.s32 576, %v9951_v25  ;;  %v10075_v16 = vld [vmem:[#allocation132_spill] sm:$0xff] }
 0x45e   : > { %3606 = vst [vmem:[#allocation6 + $0x210] sm:$0xff] %v3478_v7  ;;  %v3480_v22 = vmul.f32 %v3966_v14, %v10062_v20  ;;  %vm3098_vm8 = vcmp.lt.s32.totalorder %v2840_v47, %v7950_v19  ;;  %v2843_v24 = vadd.s32 584, %v9951_v25  ;;  %v2844_v4 = vadd.s32 592, %v9951_v25 }
 0x45f   : > { %v3481_v5 = vmul.f32 %v3967_v11, %v10064_v8  ;;  %3607 = vst [vmem:[#allocation6 + $0x218] sm:$0xff] %v3479_v10  ;;  %v2845_v31 = vadd.s32 600, %v9951_v25  ;;  %v3968_v18 = vsel %vm3098_vm8, 1.0, %v4395_v30  ;;  %vm3099_vm9 = vcmp.lt.s32.totalorder %v2841_v44, %v7950_v19  ;;  %v10077_v10 = vld [vmem:[#allocation133_spill] sm:$0xff]  ;;  %v10079_v44 = vld [vmem:[#allocation134_spill] sm:$0xff] }
 0x460   : > { %3608 = vst [vmem:[#allocation6 + $0x220] sm:$0xff] %v3480_v22  ;;  %vm3100_vm10 = vcmp.lt.s32.totalorder %v2842_v43, %v7950_v19  ;;  %v2846_v39 = vadd.s32 608, %v9951_v25  ;;  %v10066_v23 = vmax.f32 %v10065_v32, 0.0  ;;  %v3969_v15 = vsel %vm3099_vm9, 1.0, %v4395_v30 }
 0x461   : > { %3609 = vst [vmem:[#allocation6 + $0x228] sm:$0xff] %v3481_v5  ;;  %v3970_v17 = vsel %vm3100_vm10, 1.0, %v4395_v30  ;;  %vm3101_vm11 = vcmp.lt.s32.totalorder %v2843_v24, %v7950_v19  ;;  %v10068_v57 = vmax.f32 %v10067_v36, 0.0  ;;  %v10070_v45 = vmax.f32 %v10069_v13, 0.0  ;;  %v10085_v36 = vld [vmem:[#allocation137_spill] sm:$0xff] }
 0x462   : > { %v3482_v33 = vmul.f32 %v3968_v18, %v10066_v23  ;;  %v3971_v6 = vsel %vm3101_vm11, 1.0, %v4395_v30  ;;  %vm3102_vm12 = vcmp.lt.s32.totalorder %v2844_v4, %v7950_v19  ;;  %v10072_v38 = vmax.f32 %v10071_v12, 0.0  ;;  %v10081_v18 = vld [vmem:[#allocation135_spill] sm:$0xff]  ;;  %v10083_v23 = vld [vmem:[#allocation136_spill] sm:$0xff] }
 0x463   : > { %v3483_v29 = vmul.f32 %v3969_v15, %v10068_v57  ;;  %v3484_v51 = vmul.f32 %v3970_v17, %v10070_v45  ;;  %v3972_v41 = vsel %vm3102_vm12, 1.0, %v4395_v30  ;;  %vm3103_vm13 = vcmp.lt.s32.totalorder %v2845_v31, %v7950_v19  ;;  %v10087_v45 = vld [vmem:[#allocation138_spill] sm:$0xff] }
 0x464   : > { %3610 = vst [vmem:[#allocation6 + $0x230] sm:$0xff] %v3482_v33  ;;  %v3485_v27 = vmul.f32 %v3971_v6, %v10072_v38  ;;  %vm3104_vm14 = vcmp.lt.s32.totalorder %v2846_v39, %v7950_v19  ;;  %v10074_v53 = vmax.f32 %v10073_v21, 0.0  ;;  %v3973_v35 = vsel %vm3103_vm13, 1.0, %v4395_v30 }
 0x465   : > { %3611 = vst [vmem:[#allocation6 + $0x238] sm:$0xff] %v3483_v29  ;;  %3612 = vst [vmem:[#allocation6 + $0x240] sm:$0xff] %v3484_v51  ;;  %v3974_v2 = vsel %vm3104_vm14, 1.0, %v4395_v30  ;;  %v2847_v7 = vadd.s32 616, %v9951_v25  ;;  %v10076_v3 = vmax.f32 %v10075_v16, 0.0  ;;  %v10078_v14 = vmax.f32 %v10077_v10, 0.0 }
 0x466   : > { %v3486_v49 = vmul.f32 %v3972_v41, %v10074_v53  ;;  %3613 = vst [vmem:[#allocation6 + $0x248] sm:$0xff] %v3485_v27  ;;  %v2848_v47 = vadd.s32 624, %v9951_v25  ;;  %v2849_v40 = vadd.s32 632, %v9951_v25  ;;  %v2850_v20 = vadd.s32 640, %v9951_v25  ;;  %v10089_v41 = vld [vmem:[#allocation139_spill] sm:$0xff] }
 0x467   : > { %v3487_v61 = vmul.f32 %v3973_v35, %v10076_v3  ;;  %v3488_v11 = vmul.f32 %v3974_v2, %v10078_v14  ;;  %vm3105_vm15 = vcmp.lt.s32.totalorder %v2847_v7, %v7950_v19  ;;  %v2851_v22 = vadd.s32 648, %v9951_v25 }
 0x468   : > { %3614 = vst [vmem:[#allocation6 + $0x250] sm:$0xff] %v3486_v49  ;;  %v2852_v37 = vadd.s32 656, %v9951_v25  ;;  %v3975_v8 = vsel %vm3105_vm15, 1.0, %v4395_v30  ;;  %vm3106_vm0 = vcmp.lt.s32.totalorder %v2848_v47, %v7950_v19  ;;  %vm3107_vm1 = vcmp.lt.s32.totalorder %v2849_v40, %v7950_v19  ;;  %v10091_v49 = vld [vmem:[#allocation140_spill] sm:$0xff]  ;;  %v10093_v47 = vld [vmem:[#allocation141_spill] sm:$0xff] }
 0x469   : > { %3615 = vst [vmem:[#allocation6 + $0x258] sm:$0xff] %v3487_v61  ;;  %3616 = vst [vmem:[#allocation6 + $0x260] sm:$0xff] %v3488_v11  ;;  %v2853_v5 = vadd.s32 664, %v9951_v25  ;;  %v10080_v43 = vmax.f32 %v10079_v44, 0.0  ;;  %v3976_v4 = vsel %vm3106_vm0, 1.0, %v4395_v30  ;;  %v3977_v31 = vsel %vm3107_vm1, 1.0, %v4395_v30 }
 0x46a   : > { %vm3108_vm2 = vcmp.lt.s32.totalorder %v2850_v20, %v7950_v19  ;;  %v10082_v39 = vmax.f32 %v10081_v18, 0.0  ;;  %v10084_v33 = vmax.f32 %v10083_v23, 0.0  ;;  %vm3109_vm3 = vcmp.lt.s32.totalorder %v2851_v22, %v7950_v19  ;;  %v10099_v18 = vld [vmem:[#allocation144_spill] sm:$0xff] }
 0x46b   : > { %v3489_v24 = vmul.f32 %v3975_v8, %v10080_v43  ;;  %v3978_v17 = vsel %vm3108_vm2, 1.0, %v4395_v30  ;;  %v10086_v57 = vmax.f32 %v10085_v36, 0.0  ;;  %v3979_v13 = vsel %vm3109_vm3, 1.0, %v4395_v30  ;;  %v10095_v8 = vld [vmem:[#allocation142_spill] sm:$0xff]  ;;  %v10097_v43 = vld [vmem:[#allocation143_spill] sm:$0xff] }
 0x46c   : > { %v3490_v32 = vmul.f32 %v3976_v4, %v10082_v39  ;;  %v3491_v15 = vmul.f32 %v3977_v31, %v10084_v33  ;;  %vm3110_vm4 = vcmp.lt.s32.totalorder %v2852_v37, %v7950_v19  ;;  %vm3111_vm5 = vcmp.lt.s32.totalorder %v2853_v5, %v7950_v19  ;;  %v10101_v33 = vld [vmem:[#allocation145_spill] sm:$0xff] }
 0x46d   : > { %3617 = vst [vmem:[#allocation6 + $0x268] sm:$0xff] %v3489_v24  ;;  %v3492_v29 = vmul.f32 %v3978_v17, %v10086_v57  ;;  %v10088_v51 = vmax.f32 %v10087_v45, 0.0  ;;  %v3980_v12 = vsel %vm3110_vm4, 1.0, %v4395_v30  ;;  %v3981_v38 = vsel %vm3111_vm5, 1.0, %v4395_v30 }
 0x46e   : > { %3618 = vst [vmem:[#allocation6 + $0x270] sm:$0xff] %v3490_v32  ;;  %3619 = vst [vmem:[#allocation6 + $0x278] sm:$0xff] %v3491_v15  ;;  %v2854_v27 = vadd.s32 672, %v9951_v25  ;;  %v10090_v21 = vmax.f32 %v10089_v41, 0.0  ;;  %v10092_v35 = vmax.f32 %v10091_v49, 0.0  ;;  %v2855_v7 = vadd.s32 680, %v9951_v25 }
 0x46f   : > { %v3493_v6 = vmul.f32 %v3979_v13, %v10088_v51  ;;  %3620 = vst [vmem:[#allocation6 + $0x280] sm:$0xff] %v3492_v29  ;;  %v2856_v16 = vadd.s32 688, %v9951_v25  ;;  %v2857_v3 = vadd.s32 696, %v9951_v25  ;;  %v2858_v61 = vadd.s32 704, %v9951_v25  ;;  %v10103_v13 = vld [vmem:[#allocation146_spill] sm:$0xff] }
 0x470   : > { %v3494_v53 = vmul.f32 %v3980_v12, %v10090_v21  ;;  %v3495_v2 = vmul.f32 %v3981_v38, %v10092_v35  ;;  %vm3112_vm6 = vcmp.lt.s32.totalorder %v2854_v27, %v7950_v19  ;;  %v2859_v10 = vadd.s32 712, %v9951_v25 }
 0x471   : > { %3621 = vst [vmem:[#allocation6 + $0x288] sm:$0xff] %v3493_v6  ;;  %v3982_v14 = vsel %vm3112_vm6, 1.0, %v4395_v30  ;;  %vm3113_vm7 = vcmp.lt.s32.totalorder %v2855_v7, %v7950_v19  ;;  %vm3114_vm8 = vcmp.lt.s32.totalorder %v2856_v16, %v7950_v19  ;;  %v2860_v11 = vadd.s32 720, %v9951_v25  ;;  %v10105_v6 = vld [vmem:[#allocation147_spill] sm:$0xff] }
 0x472   : > { %3622 = vst [vmem:[#allocation6 + $0x290] sm:$0xff] %v3494_v53  ;;  %3623 = vst [vmem:[#allocation6 + $0x298] sm:$0xff] %v3495_v2  ;;  %v10094_v40 = vmax.f32 %v10093_v47, 0.0  ;;  %v3983_v22 = vsel %vm3113_vm7, 1.0, %v4395_v30  ;;  %v3984_v37 = vsel %vm3114_vm8, 1.0, %v4395_v30  ;;  %vm3115_vm9 = vcmp.lt.s32.totalorder %v2857_v3, %v7950_v19 }
 0x473   : > { %v10096_v5 = vmax.f32 %v10095_v8, 0.0  ;;  %v10098_v24 = vmax.f32 %v10097_v43, 0.0  ;;  %v3985_v31 = vsel %vm3115_vm9, 1.0, %v4395_v30  ;;  %vm3116_vm10 = vcmp.lt.s32.totalorder %v2858_v61, %v7950_v19 }
 0x474   : > { %v3496_v20 = vmul.f32 %v3982_v14, %v10094_v40  ;;  %v10100_v39 = vmax.f32 %v10099_v18, 0.0  ;;  %v3986_v23 = vsel %vm3116_vm10, 1.0, %v4395_v30  ;;  %vm3117_vm11 = vcmp.lt.s32.totalorder %v2859_v10, %v7950_v19  ;;  %v10108_v10 = vld [vmem:[#allocation149_spill] sm:$0xff] }
 0x475   : > { %v3497_v44 = vmul.f32 %v3983_v22, %v10096_v5  ;;  %v3498_v4 = vmul.f32 %v3984_v37, %v10098_v24  ;;  %vm3118_vm12 = vcmp.lt.s32.totalorder %v2860_v11, %v7950_v19  ;;  %v10102_v15 = vmax.f32 %v10101_v33, 0.0  ;;  %v10111_v22 = vld [vmem:[#allocation151_spill] sm:$0xff]  ;;  %v10113_v5 = vld [vmem:[#allocation152_spill] sm:$0xff] }
 0x476   : > { %3624 = vst [vmem:[#allocation6 + $0x2a0] sm:$0xff] %v3496_v20  ;;  %v3499_v32 = vmul.f32 %v3985_v31, %v10100_v39  ;;  %v3987_v36 = vsel %vm3117_vm11, 1.0, %v4395_v30  ;;  %v3988_v57 = vsel %vm3118_vm12, 1.0, %v4395_v30  ;;  %v2861_v29 = vadd.s32 728, %v9951_v25  ;;  %v10115_v31 = vld [vmem:[#allocation153_spill] sm:$0xff] }
 0x477   : > { %3625 = vst [vmem:[#allocation6 + $0x2a8] sm:$0xff] %v3497_v44  ;;  %3626 = vst [vmem:[#allocation6 + $0x2b0] sm:$0xff] %v3498_v4  ;;  %v3500_v17 = vmul.f32 %v3986_v23, %v10102_v15  ;;  %v10104_v45 = vmax.f32 %v10103_v13, 0.0  ;;  %v10106_v12 = vmax.f32 %v10105_v6, 0.0  ;;  %v2862_v27 = vadd.s32 736, %v9951_v25  ;;  %v10118_v13 = vld [vmem:[#allocation155_spill] sm:$0xff] }
 0x478   : > { %3627 = vst [vmem:[#allocation6 + $0x2b8] sm:$0xff] %v3499_v32  ;;  %v2863_v41 = vadd.s32 744, %v9951_v25  ;;  %vm3119_vm13 = vcmp.lt.s32.totalorder %v2861_v29, %v7950_v19  ;;  %v2864_v21 = vadd.s32 752, %v9951_v25  ;;  %v2865_v53 = vadd.s32 760, %v9951_v25  ;;  %v10132_v32 = vld [vmem:[#allocation161_spill] sm:$0xff] }
 0x479   : > { %v3501_v51 = vmul.f32 %v3987_v36, %v10104_v45  ;;  %v3502_v38 = vmul.f32 %v3988_v57, %v10106_v12  ;;  %3628 = vst [vmem:[#allocation6 + $0x2c0] sm:$0xff] %v3500_v17  ;;  %v2866_v49 = vadd.s32 768, %v9951_v25  ;;  %v3989_v35 = vsel %vm3119_vm13, 1.0, %v4395_v30 }
 0x47a   : > { %vm3120_vm14 = vcmp.lt.s32.totalorder %v2862_v27, %v7950_v19  ;;  %vm3121_vm15 = vcmp.lt.s32.totalorder %v2863_v41, %v7950_v19  ;;  %v2867_v2 = vadd.s32 776, %v9951_v25  ;;  %v3503_v16 = vmul.f32 %v3989_v35, %v2595_v28 }
 0x47b   : > { %3629 = vst [vmem:[#allocation6 + $0x2c8] sm:$0xff] %v3501_v51  ;;  %3630 = vst [vmem:[#allocation6 + $0x2d0] sm:$0xff] %v3502_v38  ;;  %v3990_v3 = vsel %vm3120_vm14, 1.0, %v4395_v30  ;;  %v3991_v61 = vsel %vm3121_vm15, 1.0, %v4395_v30  ;;  %vm3122_vm0 = vcmp.lt.s32.totalorder %v2864_v21, %v7950_v19  ;;  %v10109_v14 = vmax.f32 %v10108_v10, 0.0  ;;  %v10120_v38 = vld [vmem:[#allocation156_spill] sm:$0xff] }
 0x47c   : > { %v3505_v40 = vmul.f32 %v3991_v61, %v2597_v26  ;;  %v3992_v20 = vsel %vm3122_vm0, 1.0, %v4395_v30  ;;  %vm3123_vm1 = vcmp.lt.s32.totalorder %v2865_v53, %v7950_v19  ;;  %3631 = vst [vmem:[#allocation6 + $0x2d8] sm:$0xff] %v3503_v16  ;;  %v10112_v37 = vmax.f32 %v10111_v22, 0.0  ;;  %v10122_v21 = vld [vmem:[#allocation157_spill] sm:$0xff] }
 0x47d   : > { %v3504_v11 = vmul.f32 %v3990_v3, %v10109_v14  ;;  %v3993_v8 = vsel %vm3123_vm1, 1.0, %v4395_v30  ;;  %vm3124_vm2 = vcmp.lt.s32.totalorder %v2866_v49, %v7950_v19  ;;  %vm3125_vm3 = vcmp.lt.s32.totalorder %v2867_v2, %v7950_v19  ;;  %v10124_v2 = vld [vmem:[#allocation158_spill] sm:$0xff] }
 0x47e   : > { %v3506_v28 = vmul.f32 %v3992_v20, %v10112_v37  ;;  %3633 = vst [vmem:[#allocation6 + $0x2e8] sm:$0xff] %v3505_v40  ;;  %v10114_v44 = vmax.f32 %v10113_v5, 0.0  ;;  %v3994_v26 = vsel %vm3124_vm2, 1.0, %v4395_v30  ;;  %v3995_v24 = vsel %vm3125_vm3, 1.0, %v4395_v30  ;;  %v10127_v40 = vld [vmem:[#allocation159_spill] sm:$0xff] }
 0x47f   : > { %3632 = vst [vmem:[#allocation6 + $0x2e0] sm:$0xff] %v3504_v11  ;;  %v2868_v4 = vadd.s32 784, %v9951_v25  ;;  %v10116_v18 = vmax.f32 %v10115_v31, 0.0  ;;  %v3509_v23 = vmul.f32 %v3995_v24, %v2601_v34  ;;  %v2869_v33 = vadd.s32 792, %v9951_v25  ;;  %v10130_v24 = vld [vmem:[#allocation160_spill] sm:$0xff] }
 0x480   : > { %v3507_v43 = vmul.f32 %v3993_v8, %v10114_v44  ;;  %3634 = vst [vmem:[#allocation6 + $0x2f0] sm:$0xff] %v3506_v28  ;;  %v2870_v15 = vadd.s32 800, %v9951_v25  ;;  %v2871_v17 = vadd.s32 808, %v9951_v25  ;;  %v2872_v36 = vadd.s32 816, %v9951_v25 }
 0x481   : > { %v3508_v39 = vmul.f32 %v3994_v26, %v10116_v18  ;;  %vm3126_vm4 = vcmp.lt.s32.totalorder %v2868_v4, %v7950_v19  ;;  %v2873_v57 = vadd.s32 824, %v9951_v25  ;;  %3637 = vst [vmem:[#allocation6 + $0x308] sm:$0xff] %v3509_v23  ;;  %vm3127_vm5 = vcmp.lt.s32.totalorder %v2869_v33, %v7950_v19 }
 0x482   : > { %3635 = vst [vmem:[#allocation6 + $0x2f8] sm:$0xff] %v3507_v43  ;;  %v3996_v29 = vsel %vm3126_vm4, 1.0, %v4395_v30  ;;  %vm3128_vm6 = vcmp.lt.s32.totalorder %v2870_v15, %v7950_v19  ;;  %v2874_v34 = vadd.s32 832, %v9951_v25  ;;  %v10119_v45 = vmax.f32 %v10118_v13, 0.0  ;;  %v10134_v15 = vld [vmem:[#allocation162_spill] sm:$0xff] }
 0x483   : > { %3636 = vst [vmem:[#allocation6 + $0x300] sm:$0xff] %v3508_v39  ;;  %v3997_v6 = vsel %vm3127_vm5, 1.0, %v4395_v30  ;;  %v3998_v12 = vsel %vm3128_vm6, 1.0, %v4395_v30  ;;  %vm3129_vm7 = vcmp.lt.s32.totalorder %v2871_v17, %v7950_v19  ;;  %v10121_v27 = vmax.f32 %v10120_v38, 0.0 }
 0x484   : > { %v3510_v51 = vmul.f32 %v3996_v29, %v10119_v45  ;;  %v10123_v53 = vmax.f32 %v10122_v21, 0.0  ;;  %v3999_v35 = vsel %vm3129_vm7, 1.0, %v4395_v30  ;;  %vm3130_vm8 = vcmp.lt.s32.totalorder %v2872_v36, %v7950_v19 }
 0x485   : > { %v3511_v41 = vmul.f32 %v3997_v6, %v10121_v27  ;;  %v10125_v7 = vmax.f32 %v10124_v2, 0.0  ;;  %v4000_v3 = vsel %vm3130_vm8, 1.0, %v4395_v30  ;;  %vm3131_vm9 = vcmp.lt.s32.totalorder %v2873_v57, %v7950_v19 }
 0x486   : > { %v3512_v49 = vmul.f32 %v3998_v12, %v10123_v53  ;;  %3638 = vst [vmem:[#allocation6 + $0x310] sm:$0xff] %v3510_v51  ;;  %vm3132_vm10 = vcmp.lt.s32.totalorder %v2874_v34, %v7950_v19  ;;  %v10126_v61 = vmax.f32 %v7461_v50, 0.0  ;;  %v4001_v14 = vsel %vm3131_vm9, 1.0, %v4395_v30 }
 0x487   : > { %v3513_v16 = vmul.f32 %v3999_v35, %v10125_v7  ;;  %3639 = vst [vmem:[#allocation6 + $0x318] sm:$0xff] %v3511_v41  ;;  %v4002_v11 = vsel %vm3132_vm10, 1.0, %v4395_v30  ;;  %v2875_v47 = vadd.s32 840, %v9951_v25  ;;  %v10128_v20 = vmax.f32 %v10127_v40, 0.0 }
 0x488   : > { %3640 = vst [vmem:[#allocation6 + $0x320] sm:$0xff] %v3512_v49  ;;  %v3514_v10 = vmul.f32 %v4000_v3, %v10126_v61  ;;  %v10129_v37 = vmax.f32 %v7469_v42, 0.0  ;;  %v2876_v8 = vadd.s32 848, %v9951_v25  ;;  %v2877_v5 = vadd.s32 856, %v9951_v25 }
 0x489   : > { %3641 = vst [vmem:[#allocation6 + $0x328] sm:$0xff] %v3513_v16  ;;  %v3515_v22 = vmul.f32 %v4001_v14, %v10128_v20  ;;  %vm3133_vm11 = vcmp.lt.s32.totalorder %v2875_v47, %v7950_v19  ;;  %v2878_v50 = vadd.s32 864, %v9951_v25  ;;  %v2879_v44 = vadd.s32 872, %v9951_v25 }
 0x48a   : > { %v3516_v28 = vmul.f32 %v4002_v11, %v10129_v37  ;;  %3642 = vst [vmem:[#allocation6 + $0x330] sm:$0xff] %v3514_v10  ;;  %v2880_v43 = vadd.s32 880, %v9951_v25  ;;  %v4003_v26 = vsel %vm3133_vm11, 1.0, %v4395_v30  ;;  %vm3134_vm12 = vcmp.lt.s32.totalorder %v2876_v8, %v7950_v19  ;;  %v10141_v10 = vld [vmem:[#allocation163_spill] sm:$0xff] }
 0x48b   : > { %3643 = vst [vmem:[#allocation6 + $0x338] sm:$0xff] %v3515_v22  ;;  %vm3135_vm13 = vcmp.lt.s32.totalorder %v2877_v5, %v7950_v19  ;;  %v2881_v42 = vadd.s32 888, %v9951_v25  ;;  %v10131_v4 = vmax.f32 %v10130_v24, 0.0  ;;  %v4004_v18 = vsel %vm3134_vm12, 1.0, %v4395_v30 }
 0x48c   : > { %3644 = vst [vmem:[#allocation6 + $0x340] sm:$0xff] %v3516_v28  ;;  %v4005_v39 = vsel %vm3135_vm13, 1.0, %v4395_v30  ;;  %vm3136_vm14 = vcmp.lt.s32.totalorder %v2878_v50, %v7950_v19  ;;  %v10133_v23 = vmax.f32 %v10132_v32, 0.0  ;;  %v10135_v17 = vmax.f32 %v10134_v15, 0.0 }
 0x48d   : > { %v3517_v31 = vmul.f32 %v4003_v26, %v10131_v4  ;;  %v4006_v57 = vsel %vm3136_vm14, 1.0, %v4395_v30  ;;  %vm3137_vm15 = vcmp.lt.s32.totalorder %v2879_v44, %v7950_v19  ;;  %v10136_v29 = vmax.f32 %v7485_v54, 0.0 }
 0x48e   : > { %v3518_v33 = vmul.f32 %v4004_v18, %v10133_v23  ;;  %v3519_v36 = vmul.f32 %v4005_v39, %v10135_v17  ;;  %v4007_v13 = vsel %vm3137_vm15, 1.0, %v4395_v30  ;;  %vm3138_vm0 = vcmp.lt.s32.totalorder %v2880_v43, %v7950_v19 }
 0x48f   : > { %3645 = vst [vmem:[#allocation6 + $0x348] sm:$0xff] %v3517_v31  ;;  %v3520_v34 = vmul.f32 %v4006_v57, %v10136_v29  ;;  %vm3139_vm1 = vcmp.lt.s32.totalorder %v2881_v42, %v7950_v19  ;;  %v10137_v45 = vmax.f32 %v7489_v60, 0.0  ;;  %v4008_v6 = vsel %vm3138_vm0, 1.0, %v4395_v30  ;;  %v10151_v29 = vld [vmem:[#allocation164_spill] sm:$0xff] }
 0x490   : > { %3646 = vst [vmem:[#allocation6 + $0x350] sm:$0xff] %v3518_v33  ;;  %3647 = vst [vmem:[#allocation6 + $0x358] sm:$0xff] %v3519_v36  ;;  %v4009_v12 = vsel %vm3139_vm1, 1.0, %v4395_v30  ;;  %v2882_v38 = vadd.s32 896, %v9951_v25  ;;  %v10138_v54 = vmax.f32 %v7493_v0, 0.0  ;;  %v10139_v41 = vmax.f32 %v7497_v58, 0.0 }
 0x491   : > { %v3521_v51 = vmul.f32 %v4007_v13, %v10137_v45  ;;  %3648 = vst [vmem:[#allocation6 + $0x360] sm:$0xff] %v3520_v34  ;;  %v2883_v53 = vadd.s32 904, %v9951_v25  ;;  %v2884_v49 = vadd.s32 912, %v9951_v25  ;;  %v2885_v60 = vadd.s32 920, %v9951_v25 }
 0x492   : > { %v3522_v27 = vmul.f32 %v4008_v6, %v10138_v54  ;;  %v3523_v21 = vmul.f32 %v4009_v12, %v10139_v41  ;;  %vm3140_vm2 = vcmp.lt.s32.totalorder %v2882_v38, %v7950_v19  ;;  %v2886_v35 = vadd.s32 928, %v9951_v25  ;;  %v10155_v38 = vld [vmem:[#allocation166_spill] sm:$0xff]  ;;  %v10157_v41 = vld [vmem:[#allocation167_spill] sm:$0xff] }
 0x493   : > { %3649 = vst [vmem:[#allocation6 + $0x368] sm:$0xff] %v3521_v51  ;;  %v2887_v2 = vadd.s32 936, %v9951_v25  ;;  %v4010_v0 = vsel %vm3140_vm2, 1.0, %v4395_v30  ;;  %vm3141_vm3 = vcmp.lt.s32.totalorder %v2883_v53, %v7950_v19  ;;  %vm3142_vm4 = vcmp.lt.s32.totalorder %v2884_v49, %v7950_v19 }
 0x494   : > { %3650 = vst [vmem:[#allocation6 + $0x370] sm:$0xff] %v3522_v27  ;;  %3651 = vst [vmem:[#allocation6 + $0x378] sm:$0xff] %v3523_v21  ;;  %v2888_v58 = vadd.s32 944, %v9951_v25  ;;  %v10140_v7 = vmax.f32 %v7501_v62, 0.0  ;;  %v4011_v3 = vsel %vm3141_vm3, 1.0, %v4395_v30  ;;  %v4012_v61 = vsel %vm3142_vm4, 1.0, %v4395_v30 }
 0x495   : > { %vm3143_vm5 = vcmp.lt.s32.totalorder %v2885_v60, %v7950_v19  ;;  %v10142_v14 = vmax.f32 %v10141_v10, 0.0  ;;  %v10143_v47 = vmax.f32 %v7509_v48, 0.0  ;;  %vm3144_vm6 = vcmp.lt.s32.totalorder %v2886_v35, %v7950_v19  ;;  %v10159_v35 = vld [vmem:[#allocation168_spill] sm:$0xff] }
 0x496   : > { %v3524_v16 = vmul.f32 %v4010_v0, %v10140_v7  ;;  %v4013_v20 = vsel %vm3143_vm5, 1.0, %v4395_v30  ;;  %v10144_v62 = vmax.f32 %v7513_v59, 0.0  ;;  %v4014_v37 = vsel %vm3144_vm6, 1.0, %v4395_v30 }
 0x497   : > { %v3525_v11 = vmul.f32 %v4011_v3, %v10142_v14  ;;  %v3526_v40 = vmul.f32 %v4012_v61, %v10143_v47  ;;  %vm3145_vm7 = vcmp.lt.s32.totalorder %v2887_v2, %v7950_v19  ;;  %vm3146_vm8 = vcmp.lt.s32.totalorder %v2888_v58, %v7950_v19 }
 0x498   : > { %3652 = vst [vmem:[#allocation6 + $0x380] sm:$0xff] %v3524_v16  ;;  %v3527_v22 = vmul.f32 %v4013_v20, %v10144_v62  ;;  %v10145_v28 = vmax.f32 %v7517_v46, 0.0  ;;  %v4015_v8 = vsel %vm3145_vm7, 1.0, %v4395_v30  ;;  %v4016_v5 = vsel %vm3146_vm8, 1.0, %v4395_v30 }
 0x499   : > { %3653 = vst [vmem:[#allocation6 + $0x388] sm:$0xff] %v3525_v11  ;;  %3654 = vst [vmem:[#allocation6 + $0x390] sm:$0xff] %v3526_v40  ;;  %v2889_v50 = vadd.s32 952, %v9951_v25  ;;  %v10146_v59 = vmax.f32 %v7521_v52, 0.0  ;;  %v10147_v43 = vmax.f32 %v7525_v56, 0.0  ;;  %v2890_v42 = vadd.s32 960, %v9951_v25 }
 0x49a   : > { %v3528_v48 = vmul.f32 %v4014_v37, %v10145_v28  ;;  %3655 = vst [vmem:[#allocation6 + $0x398] sm:$0xff] %v3527_v22  ;;  %v2891_v24 = vadd.s32 968, %v9951_v25  ;;  %v2892_v46 = vadd.s32 976, %v9951_v25  ;;  %v2893_v4 = vadd.s32 984, %v9951_v25 }
 0x49b   : > { %v3529_v44 = vmul.f32 %v4015_v8, %v10146_v59  ;;  %v3530_v26 = vmul.f32 %v4016_v5, %v10147_v43  ;;  %vm3147_vm9 = vcmp.lt.s32.totalorder %v2889_v50, %v7950_v19  ;;  %v2894_v31 = vadd.s32 992, %v9951_v25 }
 0x49c   : > { %3656 = vst [vmem:[#allocation6 + $0x3a0] sm:$0xff] %v3528_v48  ;;  %v4017_v52 = vsel %vm3147_vm9, 1.0, %v4395_v30  ;;  %vm3148_vm10 = vcmp.lt.s32.totalorder %v2890_v42, %v7950_v19  ;;  %vm3149_vm11 = vcmp.lt.s32.totalorder %v2891_v24, %v7950_v19  ;;  %v2895_v56 = vadd.s32 1000, %v9951_v25 }
 0x49d   : > { %3657 = vst [vmem:[#allocation6 + $0x3a8] sm:$0xff] %v3529_v44  ;;  %3658 = vst [vmem:[#allocation6 + $0x3b0] sm:$0xff] %v3530_v26  ;;  %v10148_v18 = vmax.f32 %v7529_v9, 0.0  ;;  %v4018_v32 = vsel %vm3148_vm10, 1.0, %v4395_v30  ;;  %v4019_v23 = vsel %vm3149_vm11, 1.0, %v4395_v30  ;;  %vm3150_vm12 = vcmp.lt.s32.totalorder %v2892_v46, %v7950_v19 }
 0x49e   : > { %v10149_v33 = vmax.f32 %v7533_v55, 0.0  ;;  %v10150_v17 = vmax.f32 %v7537_v1, 0.0  ;;  %v4020_v57 = vsel %vm3150_vm12, 1.0, %v4395_v30  ;;  %vm3151_vm13 = vcmp.lt.s32.totalorder %v2893_v4, %v7950_v19  ;;  %v10153_v55 = vld [vmem:[#allocation165_spill] sm:$0xff] }
 0x49f   : > { %v3531_v39 = vmul.f32 %v4017_v52, %v10148_v18  ;;  %v10152_v9 = vmax.f32 %v10151_v29, 0.0  ;;  %v4021_v13 = vsel %vm3151_vm13, 1.0, %v4395_v30  ;;  %vm3152_vm14 = vcmp.lt.s32.totalorder %v2894_v31, %v7950_v19 }
 0x4a0   : > { %v3532_v15 = vmul.f32 %v4018_v32, %v10149_v33  ;;  %v3533_v36 = vmul.f32 %v4019_v23, %v10150_v17  ;;  %vm3153_vm15 = vcmp.lt.s32.totalorder %v2895_v56, %v7950_v19  ;;  %v10154_v45 = vmax.f32 %v10153_v55, 0.0 }
 0x4a1   : > { %3659 = vst [vmem:[#allocation6 + $0x3b8] sm:$0xff] %v3531_v39  ;;  %v3534_v34 = vmul.f32 %v4020_v57, %v10152_v9  ;;  %v4022_v51 = vsel %vm3152_vm14, 1.0, %v4395_v30  ;;  %v4023_v6 = vsel %vm3153_vm15, 1.0, %v4395_v30  ;;  %v2896_v12 = vadd.s32 1008, %v9951_v25 }
 0x4a2   : > { %3660 = vst [vmem:[#allocation6 + $0x3c0] sm:$0xff] %v3532_v15  ;;  %3661 = vst [vmem:[#allocation6 + $0x3c8] sm:$0xff] %v3533_v36  ;;  %v3535_v1 = vmul.f32 %v4021_v13, %v10154_v45  ;;  %v10156_v54 = vmax.f32 %v10155_v38, 0.0  ;;  %v10158_v21 = vmax.f32 %v10157_v41, 0.0  ;;  %v2897_v49 = vadd.s32 1016, %v9951_v25 }
 0x4a3   : > { %3662 = vst [vmem:[#allocation6 + $0x3d0] sm:$0xff] %v3534_v34  ;;  %vm3154_vm0 = vcmp.lt.s32.totalorder %v2896_v12, %v7950_v19  ;;  %v10160_v2 = vmax.f32 %v10159_v35, 0.0  ;;  %v10161_v7 = vmax.f32 %v7561_v63, 0.0 }
 0x4a4   : > { %v3536_v27 = vmul.f32 %v4022_v51, %v10156_v54  ;;  %v3537_v53 = vmul.f32 %v4023_v6, %v10158_v21  ;;  %3663 = vst [vmem:[#allocation6 + $0x3d8] sm:$0xff] %v3535_v1  ;;  %v4024_v60 = vsel %vm3154_vm0, 1.0, %v4395_v30  ;;  %vm3155_vm1 = vcmp.lt.s32.totalorder %v2897_v49, %v7950_v19 }
 0x4a5   : > { %v3538_v0 = vmul.f32 %v4024_v60, %v10160_v2  ;;  %v4025_v58 = vsel %vm3155_vm1, 1.0, %v4395_v30 }
 0x4a6   : > { %3664 = vst [vmem:[#allocation6 + $0x3e0] sm:$0xff] %v3536_v27  ;;  %3665 = vst [vmem:[#allocation6 + $0x3e8] sm:$0xff] %v3537_v53  ;;  %v3539_v16 = vmul.f32 %v4025_v58, %v10161_v7 }
 0x4a7   : > { %3666 = vst [vmem:[#allocation6 + $0x3f0] sm:$0xff] %v3538_v0 }
 0x4a8   : > { %3667 = vst [vmem:[#allocation6 + $0x3f8] sm:$0xff] %v3539_v16 }
 0x4a9 PF: > { %p8594_p9 = scmp.eq.s32.totalorder %s3756_s0, 1  ;;  %s4396_s29 = smov [#allocation6]  }
 0x4aa   : > { %s3683_s30 = sshll.u32 %s4396_s29, 4  ;;  %s3684_s30 = int_to_ptr.vmem [resolvable:$true] %s3683_s30 }
 0x4ab   : > { %s4339_s6 = scalar_lea.vmem %s3684_s30, 16384  ;;  %s4345_s7 = scalar_lea.vmem %s3684_s30, 32768 }
 0x4ac   : > { %p4340_p10 = scmp.ne.s32.totalorder %s3684_s30, %s4339_s6  ;;  %p4346_p13 = scmp.lt.s32.totalorder %s3684_s30, %s3684_s30 }
 0x4ad   : > { %p4347_p0 = scmp.lt.s32.totalorder %s4345_s7, %s4339_s6 }
 0x4ae   : > { %p4341_p11 = pnand %p4340_p10, %p8594_p9 }
 0x4af   : > { %p4348_p1 = por %p4347_p0, %p4346_p13 }
 0x4b0   : > { %p4342_p12 = pneg %p4341_p11 }
 0x4b2   : > { %p4349_p2 = pnand %p4348_p1, %p4342_p12 }
 0x4b4   : > { %4352 = shalt.err (!%p4349_p2)
}
 0x4b5   : > { %s4353_s9 = scalar_lea.hbm %s8633_s5, 16384 }
 0x4b6   : > { %p4354_p3 = scmp.ne.s32.totalorder %s8633_s5, %s4353_s9  ;;  %p4359_p6 = scmp.lt.u32.totalorder %s4353_s9, %s8633_s5 }
 0x4b8   : > { %p4355_p4 = pnand %p4354_p3, %p8594_p9 }
 0x4ba   : > { %p4356_p5 = pneg %p4355_p4 }
 0x4bc   : > { %p4361_p7 = pnand %p4359_p6, %p4356_p5 }
 0x4be   : > { %4364 = shalt.err (!%p4361_p7)
}
 0x4bf   : > { %s4397_s14 = smov 128   ;;  %s4398_s15 = smov 8  }
 0x4c0   : > { %4231 = dma.vmem_to_hbm [thread:$0]  (%p8594_p9), %s3684_s30, 16384, %s8633_s5, [#allocation7], %s4397_s14, %s4397_s14, %s4398_s15  }
 0x4c1 PF: > { %p4239_p8 = scmp.ge.s32.totalorder %s4391_s22, 2  ;;  %p4240_p10 = scmp.eq.s32.totalorder %s3757_s23, 1 }
 0x4c3   : > { %p4235_p11 = pnand %p4240_p10, %p4239_p8 }
 0x4c5   : > { %4378 = dma.done.wait (!%p4235_p11), [#allocation7], 16384  }
 0x4c6   : > { %4380 = vsyncadd (!%p4235_p11), [#allocation7], 4294950912  ;;  %s19_s22 = sadd.s32 1, %s4391_s22   ;;  %s10163_s20 = smov %s4387_s21 }
 0x4c7   : > { %p16_p12 = scmp.ge.s32.totalorder %s19_s22, 4   ;;  %s10164_s21 = smov %s10166_s24 }
 0x4c9   :  { %18 = sbr.rel (!%p16_p12) target bundleno = 5 (0x5), region = 91 }
 0x4d0   :  { %3704 = vsyncpa [#allocation7], 1 }
 0x4d1   :  { %3706 = vsyncpa [#allocation7 + $0x1], 1 }

</bundles_post_ra>
